<compile_context>
chip_gen: v6e
topology: v6e:2x2x1
jax: 0.10.0
libtpu: 0.0.40
codegen_flags: <defaults>
</compile_context>

<pallas_src>
import jax
import jax.numpy as jnp
from jax import lax
from jax.experimental import pallas as pl
from jax.experimental.pallas import tpu as pltpu

C_IN = 2048
HEAD = 128                 # C // n_head = 2048 // 16
QK = 2 * HEAD              # fused [q0 | k0] projection width = 256
LANE = 128
SUBLANE = 8


def _round_up(n, m):
    return ((n + m - 1) // m) * m


def _vmem_budget_bytes():
    """Per-generation VMEM budget: 3/4 of physical (v5e/v6e 128MiB -> 96MiB,
    v7x 64MiB -> 48MiB). Falls back to a v7x-safe 48MiB if the query fails."""
    cap = 64 * 1024 * 1024
    try:
        info = pltpu.get_tpu_info()
        cap = int(getattr(info, "vmem_capacity_bytes", cap) or cap)
    except Exception:  # pragma: no cover - query unavailable
        pass
    return (cap * 3) // 4


def _pick_score_tiles(t_k, t_q, budget):
    """Pick (tk, tq) for the score kernel.

    tk: k-row tile, multiple of 8.  tq: q-column (lane) tile, multiple of 128.
    Double-buffered footprint of q tile + k tile + out tile must fit budget.
    """
    tq = min(t_q, 2048)           # multiple of 128 (t_q is)
    tk = min(t_k, 2048)           # multiple of 8   (t_k is)

    def footprint(tk_, tq_):
        # 2 pipeline buffers each, f32
        return 2 * 4 * (tq_ * HEAD + tk_ * HEAD + tk_ * tq_)

    limit = int(budget * 0.9)     # leave slack inside vmem_limit_bytes
    while footprint(tk, tq) > limit:
        if tq >= tk and tq > LANE:
            tq = max(LANE, (tq // 2) // LANE * LANE)
        elif tk > SUBLANE:
            tk = max(SUBLANE, (tk // 2) // SUBLANE * SUBLANE)
        else:
            break
    return tk, tq


def _proj_kernel(x_ref, w_ref, b_ref, oq_ref, ok_ref):
    """(tm, 2048) @ (2048, 256) + (1, 256); split into q0 (tm,128), k0 (tm,128)."""
    y = jnp.dot(x_ref[...], w_ref[...], preferred_element_type=jnp.float32) \
        + b_ref[...]
    oq_ref[...] = y[:, :HEAD]
    ok_ref[...] = y[:, HEAD:]


def _score_kernel(q_ref, k_ref, o_ref):
    """o[k_row, q_col] = sum_c k0[k_row, c] * q0[q_col, c].

    q_ref: (tq, 128) q0 column tile
    k_ref: (tk, 128) k0 row tile
    o_ref: (tk, tq)  lane-dense score tile
    """
    o_ref[...] = lax.dot_general(
        k_ref[...], q_ref[...],
        dimension_numbers=(((1,), (1,)), ((), ())),   # contract last dims, no .T
        preferred_element_type=jnp.float32,
    )


def fuse_linear3_params(w3, b3):
    """Fuse the only-used linear3 channels into one (2048,256) weight + (1,256)
    bias.  Called once, outside the per-step forward path."""
    w_qk = jnp.concatenate(
        [w3[0:HEAD, :], w3[C_IN:C_IN + HEAD, :]], axis=0
    ).T                                                    # (2048, 256)
    b_qk = jnp.concatenate(
        [b3[0:HEAD], b3[C_IN:C_IN + HEAD]]
    ).reshape(1, QK)                                       # (1, 256)
    return w_qk, b_qk


@jax.jit
def my_model_forward(x, w_qk, b_qk):
    """x: (B, T, 2048) f32; w_qk: (2048, 256); b_qk: (1, 256) (pre-fused)."""
    B, T, C = x.shape
    assert C == C_IN

    budget = _vmem_budget_bytes()

    # q / lane axis of the scores must be lane-dense (multiple of 128);
    # k / sublane axis only needs 8-row granularity (no 128 padding).
    t_q = _round_up(T, LANE)
    t_k = _round_up(T, SUBLANE)

    if t_q != T:
        x = jnp.pad(x, ((0, 0), (0, t_q - T), (0, 0)))
    m = B * t_q
    x_flat = x.reshape(m, C_IN)

    # ---------------- stage 1: [q0 | k0] = x @ W_qk + b (tiled over rows) ----
    tm = min(m, 1024)                      # m is a multiple of 128
    proj_cost = pl.CostEstimate(
        flops=2 * m * C_IN * QK,
        transcendentals=0,
        bytes_accessed=4 * (m * C_IN + C_IN * QK + QK + 2 * m * HEAD),
    )
    q0_flat, k0_flat = pl.pallas_call(
        _proj_kernel,
        out_shape=(jax.ShapeDtypeStruct((m, HEAD), jnp.float32),
                   jax.ShapeDtypeStruct((m, HEAD), jnp.float32)),
        grid=(pl.cdiv(m, tm),),
        in_specs=[
            pl.BlockSpec((tm, C_IN), lambda i: (i, 0)),    # x row tile
            pl.BlockSpec((C_IN, QK), lambda i: (0, 0)),    # fused weight (resident)
            pl.BlockSpec((1, QK), lambda i: (0, 0)),       # fused bias (resident)
        ],
        out_specs=(pl.BlockSpec((tm, HEAD), lambda i: (i, 0)),
                   pl.BlockSpec((tm, HEAD), lambda i: (i, 0))),
        compiler_params=pltpu.CompilerParams(
            dimension_semantics=("parallel",),
            vmem_limit_bytes=budget),
        cost_estimate=proj_cost,
    )(x_flat, w_qk, b_qk)

    q0 = q0_flat.reshape(B, t_q, HEAD)                     # (B, t_q, 128)
    k0 = k0_flat.reshape(B, t_q, HEAD)
    if t_k != t_q:
        k0 = k0[:, :t_k, :]                                # (B, t_k, 128)

    # ------------- stage 2: scores[b, k, q] = sum_c k0[b,k,c]*q0[b,q,c] ------
    tk, tq = _pick_score_tiles(t_k, t_q, budget)
    score_cost = pl.CostEstimate(
        flops=2 * B * t_k * t_q * HEAD,
        transcendentals=0,
        bytes_accessed=4 * (B * t_q * HEAD + B * t_k * HEAD + B * t_k * t_q),
    )
    scores = pl.pallas_call(
        _score_kernel,
        out_shape=jax.ShapeDtypeStruct((B, t_k, t_q), jnp.float32),
        grid=(B, pl.cdiv(t_k, tk), pl.cdiv(t_q, tq)),
        in_specs=[
            # q0 column tile (contiguous rows, 128 channels)
            pl.BlockSpec((None, tq, HEAD), lambda b, ki, qi: (b, qi, 0)),
            # k0 row tile (contiguous rows, 128 channels)
            pl.BlockSpec((None, tk, HEAD), lambda b, ki, qi: (b, ki, 0)),
        ],
        out_specs=pl.BlockSpec((None, tk, tq), lambda b, ki, qi: (b, ki, qi)),
        compiler_params=pltpu.CompilerParams(
            dimension_semantics=("parallel", "parallel", "parallel"),
            vmem_limit_bytes=budget),
        cost_estimate=score_cost,
    )(q0, k0)

    # einsum('bchq,bkhc->bkhq') with h == 1  ->  (B, T, 1, T)
    return scores[:, :T, :T][:, :, None, :]


def _reference(x, w3, b3):
    """Pure-JAX reference mirroring the PyTorch forward."""
    y = jnp.einsum("btc,oc->bto", x, w3) + b3         # linear3
    q0 = y[..., 0:HEAD]                               # (B, T, 128)
    k0 = y[..., C_IN:C_IN + HEAD]                     # (B, T, 128)
    out = jnp.einsum("bqc,bkc->bkq", q0, k0)          # (B, T, T)
    return out[:, :, None, :]                         # (B, T, 1, T)


if __name__ == "__main__":
    key = jax.random.PRNGKey(0)
    kx, kw, kb = jax.random.split(key, 3)

    B, T = 2, 8
    x = jax.random.normal(kx, (B, T, C_IN), dtype=jnp.float32)

    # Deterministic linear3 parameters (PyTorch layout: (out, in) + (out,)).
    bound = 1.0 / (C_IN ** 0.5)
    w3 = jax.random.uniform(kw, (2 * C_IN, C_IN), jnp.float32, -bound, bound)
    b3 = jax.random.uniform(kb, (2 * C_IN,), jnp.float32, -bound, bound)

    # Fusion of the used linear3 channels is done once, outside the forward.
    w_qk, b_qk = fuse_linear3_params(w3, b3)

    out = my_model_forward(x, w_qk, b_qk)
    out = jax.block_until_ready(out)

    ref = _reference(x, w3, b3)
    assert out.shape == (B, T, 1, T), out.shape
    assert jnp.allclose(out, ref, rtol=1e-4, atol=1e-4)

    print("KERNEL_OK")
</pallas_src>

<mosaic_0001>
module attributes {stable_mosaic.version = 11 : i64} {
  func.func @_score_kernel(%arg0: i32, %arg1: i32, %arg2: i32, %arg3: memref<1x128x128xf32, #tpu.memory_space<vmem>>, %arg4: memref<1x8x128xf32, #tpu.memory_space<vmem>>, %arg5: memref<1x8x128xf32, #tpu.memory_space<vmem>>) attributes {dimension_semantics = [#tpu.dimension_semantics<parallel>, #tpu.dimension_semantics<parallel>, #tpu.dimension_semantics<parallel>], iteration_bounds = array<i64: 2, 1, 1>, scalar_prefetch = 0 : i64, scratch_operands = 0 : i64, tpu.core_type = #tpu.core_type<tc>, window_params = [{transform_indices = @transform_0, window_bounds = array<i64: 1, 128, 128>}, {transform_indices = @transform_1, window_bounds = array<i64: 1, 8, 128>}, {transform_indices = @transform_2, window_bounds = array<i64: 1, 8, 128>}]} {
    %c0 = arith.constant 0 : index
    %c0_0 = arith.constant 0 : index
    %c0_1 = arith.constant 0 : index
    %0 = vector.load %arg4[%c0, %c0_0, %c0_1] : memref<1x8x128xf32, #tpu.memory_space<vmem>>, vector<1x8x128xf32>
    %1 = vector.shape_cast %0 : vector<1x8x128xf32> to vector<8x128xf32>
    %c0_2 = arith.constant 0 : index
    %c0_3 = arith.constant 0 : index
    %c0_4 = arith.constant 0 : index
    %2 = vector.load %arg3[%c0_2, %c0_3, %c0_4] : memref<1x128x128xf32, #tpu.memory_space<vmem>>, vector<1x128x128xf32>
    %3 = vector.shape_cast %2 : vector<1x128x128xf32> to vector<128x128xf32>
    %cst = arith.constant dense<0.000000e+00> : vector<8x128xf32>
    %4 = tpu.matmul %1, %3, %cst {dimension_numbers = #tpu.dot_dimension_numbers<[1], [1], [0], [0], [0, 0, 1, 0], [], []>} : vector<8x128xf32>, vector<128x128xf32>, vector<8x128xf32> -> vector<8x128xf32>
    %c0_5 = arith.constant 0 : index
    %c0_6 = arith.constant 0 : index
    %c0_7 = arith.constant 0 : index
    %5 = vector.load %arg5[%c0_5, %c0_6, %c0_7] : memref<1x8x128xf32, #tpu.memory_space<vmem>>, vector<1x8x128xf32>
    %6 = vector.shape_cast %5 : vector<1x8x128xf32> to vector<8x128xf32>
    %7 = vector.shape_cast %4 : vector<8x128xf32> to vector<1x8x128xf32>
    tpu.vector_store %arg5[%c0_5, %c0_6, %c0_7], %7 {strides = array<i32>} : memref<1x8x128xf32, #tpu.memory_space<vmem>>, vector<1x8x128xf32>,
    return
  }
  func.func @transform_0(%arg0: i32, %arg1: i32, %arg2: i32) -> (i32, i32, i32) {
    %c0_i32 = arith.constant 0 : i32
    %c0_i32_0 = arith.constant 0 : i32
    return %arg0, %arg2, %c0_i32 : i32, i32, i32
  }
  func.func @transform_1(%arg0: i32, %arg1: i32, %arg2: i32) -> (i32, i32, i32) {
    %c0_i32 = arith.constant 0 : i32
    %c0_i32_0 = arith.constant 0 : i32
    return %arg0, %arg1, %c0_i32 : i32, i32, i32
  }
  func.func @transform_2(%arg0: i32, %arg1: i32, %arg2: i32) -> (i32, i32, i32) {
    %c0_i32 = arith.constant 0 : i32
    return %arg0, %arg1, %arg2 : i32, i32, i32
  }
}

module attributes {stable_mosaic.version = 11 : i64} {
  func.func @_proj_kernel(%arg0: i32, %arg1: memref<256x2048xf32, #tpu.memory_space<vmem>>, %arg2: memref<2048x256xf32, #tpu.memory_space<vmem>>, %arg3: memref<1x256xf32, #tpu.memory_space<vmem>>, %arg4: memref<256x128xf32, #tpu.memory_space<vmem>>, %arg5: memref<256x128xf32, #tpu.memory_space<vmem>>) attributes {dimension_semantics = [#tpu.dimension_semantics<parallel>], iteration_bounds = array<i64: 1>, scalar_prefetch = 0 : i64, scratch_operands = 0 : i64, tpu.core_type = #tpu.core_type<tc>, window_params = [{transform_indices = @transform_0, window_bounds = array<i64: 256, 2048>}, {pipeline_mode = #tpu.pipeline_mode<synchronous>, transform_indices = @transform_1, window_bounds = array<i64: 2048, 256>}, {pipeline_mode = #tpu.pipeline_mode<synchronous>, transform_indices = @transform_2, window_bounds = array<i64: 1, 256>}, {transform_indices = @transform_3, window_bounds = array<i64: 256, 128>}, {transform_indices = @transform_4, window_bounds = array<i64: 256, 128>}]} {
    %c0 = arith.constant 0 : index
    %c0_0 = arith.constant 0 : index
    %0 = vector.load %arg1[%c0, %c0_0] : memref<256x2048xf32, #tpu.memory_space<vmem>>, vector<256x2048xf32>
    %c0_1 = arith.constant 0 : index
    %c0_2 = arith.constant 0 : index
    %1 = vector.load %arg2[%c0_1, %c0_2] : memref<2048x256xf32, #tpu.memory_space<vmem>>, vector<2048x256xf32>
    %cst = arith.constant dense<0.000000e+00> : vector<256x256xf32>
    %2 = tpu.matmul %0, %1, %cst {dimension_numbers = #tpu.dot_dimension_numbers<[1], [0], [0], [1], [0, 0, 1, 1], [], []>} : vector<256x2048xf32>, vector<2048x256xf32>, vector<256x256xf32> -> vector<256x256xf32>
    %c0_3 = arith.constant 0 : index
    %c0_4 = arith.constant 0 : index
    %3 = vector.load %arg3[%c0_3, %c0_4] : memref<1x256xf32, #tpu.memory_space<vmem>>, vector<1x256xf32>
    %4 = vector.broadcast %3 : vector<1x256xf32> to vector<256x256xf32>
    %5 = arith.addf %2, %4 : vector<256x256xf32>
    %6 = vector.extract_strided_slice %5 {offsets = [0, 0], sizes = [256, 128], strides = [1, 1]} : vector<256x256xf32> to vector<256x128xf32>
    %c0_5 = arith.constant 0 : index
    %c0_6 = arith.constant 0 : index
    %7 = vector.load %arg4[%c0_5, %c0_6] : memref<256x128xf32, #tpu.memory_space<vmem>>, vector<256x128xf32>
    tpu.vector_store %arg4[%c0_5, %c0_6], %6 {strides = array<i32>} : memref<256x128xf32, #tpu.memory_space<vmem>>, vector<256x128xf32>,
    %8 = vector.extract_strided_slice %5 {offsets = [0, 128], sizes = [256, 128], strides = [1, 1]} : vector<256x256xf32> to vector<256x128xf32>
    %c0_7 = arith.constant 0 : index
    %c0_8 = arith.constant 0 : index
    %9 = vector.load %arg5[%c0_7, %c0_8] : memref<256x128xf32, #tpu.memory_space<vmem>>, vector<256x128xf32>
    tpu.vector_store %arg5[%c0_7, %c0_8], %8 {strides = array<i32>} : memref<256x128xf32, #tpu.memory_space<vmem>>, vector<256x128xf32>,
    return
  }
  func.func @transform_0(%arg0: i32) -> (i32, i32) {
    %c0_i32 = arith.constant 0 : i32
    %c0_i32_0 = arith.constant 0 : i32
    return %arg0, %c0_i32 : i32, i32
  }
  func.func @transform_1(%arg0: i32) -> (i32, i32) {
    %c0_i32 = arith.constant 0 : i32
    %c0_i32_0 = arith.constant 0 : i32
    %c0_i32_1 = arith.constant 0 : i32
    return %c0_i32, %c0_i32_0 : i32, i32
  }
  func.func @transform_2(%arg0: i32) -> (i32, i32) {
    %c0_i32 = arith.constant 0 : i32
    %c0_i32_0 = arith.constant 0 : i32
    %c0_i32_1 = arith.constant 0 : i32
    return %c0_i32, %c0_i32_0 : i32, i32
  }
  func.func @transform_3(%arg0: i32) -> (i32, i32) {
    %c0_i32 = arith.constant 0 : i32
    %c0_i32_0 = arith.constant 0 : i32
    return %arg0, %c0_i32 : i32, i32
  }
  func.func @transform_4(%arg0: i32) -> (i32, i32) {
    %c0_i32 = arith.constant 0 : i32
    %c0_i32_0 = arith.constant 0 : i32
    return %arg0, %c0_i32 : i32, i32
  }
}

</mosaic_0001>

<bundles_post_ra>
// kernel: my_model_forward.3
= control target key start
LH: loop header
LB: loop body
LE: loop exit
PB: predicated region body
PF: predicated region fallthrough
CT: control target
= control target key end

     0   :  { %7 = vsyncpa [#allocation3], 0  ;;  %s761_s0 = inlined_call_operand.vmem [shape: f32[2,128,128], index: 0, kind: input, shape index: {}]   ;;  %s762_s1 = inlined_call_operand.vmem [shape: f32[2,8,128], index: 1, kind: input, shape index: {}]   ;;  %s763_s2 = inlined_call_operand.hbm [shape: f32[2,8,128], index: 2, kind: output, shape index: {}]  }
   0x1   :  { %9 = vsyncpa [#allocation3 + $0x1], 0  ;;  %s625_s9 = smov 0   ;;  %s627_s10 = smov 0  }
   0x2   :  { %s629_s11 = smov 0   ;;  %s631_s12 = smov 0  }
   0x3   :  { %s633_s13 = smov 0   ;;  %s635_s14 = smov 0  }
   0x4 LB: > { %s406_s15 = sadd.s32 4294967295, %s605_s14   ;;  %s407_s16 = sadd.s32 4294967294, %s605_s14   ;;  %s605_s14 = sphi %s635_s14, %s15_s14   ;;  %s601_s13 = sphi %s633_s13, %s770_s13   ;;  %s597_s12 = sphi %s631_s12, %s769_s12   ;;  %s593_s11 = sphi %s629_s11, %s768_s11   ;;  %s589_s10 = sphi %s627_s10, %s767_s10   ;;  %s585_s9 = sphi %s625_s9, %s766_s9  }
   0x5   : > { %s34_s17 = sadd.s32 1, %s601_s13  ;;  %s101_s18 = sadd.s32 1, %s593_s11 }
   0x6   : > { %p36_p0 = scmp.ge.s32.totalorder %s34_s17, 2  ;;  %p111_p1 = scmp.ne.s32.totalorder %s593_s11, %s589_s10 }
   0x7   : > { %p112_p2 = scmp.eq.s32.totalorder %s406_s15, 1  ;;  %p117_p3 = scmp.ne.s32.totalorder %s589_s10, %s585_s9 }
   0x8   : > { %s772_s17 = smov (%p36_p0, %s34_s17), 0  ;;  %p118_p5 = scmp.eq.s32.totalorder %s407_s16, 1 }
   0x9   : > { %p665_p4 = por %p112_p2, %p111_p1  ;;  %s94_s20 = ssub.s32 %s601_s13, %s772_s17 }
   0xa   : > { %p410_p6 = scmp.ge.s32.totalorder %s605_s14, 1  ;;  %p99_p7 = scmp.eq.s32.totalorder %s94_s20, 0 }
   0xb   : > { %p672_p8 = por %p118_p5, %p117_p3  ;;  %p159_p9 = scmp.lt.s32.totalorder %s605_s14, 3 }
   0xc   : > { %s678_s22 = scalar_select %p99_p7, %s593_s11, %s101_s18  }
   0xd   : > { %p160_p10 = pnand %p410_p6, %p159_p9 }
   0xe   : > { %p193_p11 = scmp.lt.s32.totalorder (!%p160_p10), %s597_s12, 1  ;;  %s189_s4 = sand.u32 (!%p160_p10), 1, %s589_s10  }
   0xf   : > { %163 = sbr.rel (%p160_p10) target bundleno = 295 (0x127), region = 28  ;;  %s411_s5 = sshll.u32 (!%p160_p10), %s189_s4, 3 }
  0x10   : > { %s191_s6 = scalar_lea.vmem (!%p160_p10), [#allocation2], %s411_s5  ;;  %s416_s8 = sshll.u32 (!%p160_p10), %s597_s12, 7 }
  0x11   : > { %s313_s7 = sshll.u32 (!%p160_p10), %s191_s6, 4  ;;  %s717_s18 = scalar_lea.hbm (!%p160_p10), %s763_s2, %s416_s8  ;;  %s712_s7 = int_to_ptr.vmem [resolvable:$true] %s313_s7 }
  0x12   : > { %s298_s20 = scalar_lea.sflag (!%p160_p10), [#allocation3], %s189_s4 }
  0x14   : > { %v607_v0 = vmov 0.0   ;;  %vm608_vm0 = vmmov 0   ;;  %s682_s23 = scalar_select %p193_p11, %s597_s12, 1 }
  0x15   : > { %437 = vmatprep.subr.mxu0 %v607_v0  ;;  %469 = vmatprep.mubr.msk.f32.mxu0 %vm608_vm0, %v607_v0  ;;  %s609_s12 = smov [#allocation2]  }
  0x16   : > { %s419_s24 = sshll.u32 %s682_s23, 7  ;;  %s414_s28 = sshll.u32 %s682_s23, 3 }
  0x17   : > { %s688_s27 = scalar_lea.vmem %s761_s0, %s419_s24  ;;  %s208_s3 = scalar_lea.vmem %s762_s1, %s414_s28 }
  0x18   : > { %v225_v1 = vld [vmem:[%s688_s27 + $0x78] sm:$0xff]  ;;  %v224_v2 = vld [vmem:[%s688_s27 + $0x70] sm:$0xff]  ;;  %v223_v3 = vld [vmem:[%s688_s27 + $0x68] sm:$0xff]  ;;  %s529_s23 = scalar_lea.vmem %s712_s7, 128  ;;  %s533_s24 = sshll.u32 %s609_s12, 4  ;;  %s534_s24 = int_to_ptr.vmem [resolvable:$false] %s533_s24 }
  0x19   : > { %438 = vmatpush3.xpose.msra.mxu0 %v225_v1  ;;  %v222_v4 = vld [vmem:[%s688_s27 + $0x60] sm:$0xff]  ;;  %v221_v5 = vld [vmem:[%s688_s27 + $0x58] sm:$0xff]  ;;  %v220_v6 = vld [vmem:[%s688_s27 + $0x50] sm:$0xff]  ;;  %p530_p12 = scmp.ne.s32.totalorder %s712_s7, %s529_s23  ;;  %s535_s25 = scalar_lea.vmem %s534_s24, 256 }
  0x1a   : > { %439 = vmatprep.subr.mxu0 %v607_v0  ;;  %v219_v7 = vld [vmem:[%s688_s27 + $0x48] sm:$0xff]  ;;  %v218_v8 = vld [vmem:[%s688_s27 + $0x40] sm:$0xff]  ;;  %v217_v9 = vld [vmem:[%s688_s27 + $0x38] sm:$0xff]  ;;  %p536_p1 = scmp.lt.s32.totalorder %s712_s7, %s534_s24  ;;  %p537_p2 = scmp.lt.s32.totalorder %s535_s25, %s529_s23 }
  0x1b   : > { %v216_v10 = vld [vmem:[%s688_s27 + $0x30] sm:$0xff]  ;;  %v215_v11 = vld [vmem:[%s688_s27 + $0x28] sm:$0xff]  ;;  %v214_v12 = vld [vmem:[%s688_s27 + $0x20] sm:$0xff]  ;;  %p531_p13 = pnand %p530_p12, %p665_p4 }
  0x1c   : > { %v213_v13 = vld [vmem:[%s688_s27 + $0x18] sm:$0xff]  ;;  %v212_v14 = vld [vmem:[%s688_s27 + $0x10] sm:$0xff]  ;;  %v211_v15 = vld [vmem:[%s688_s27 + $0x8] sm:$0xff]  ;;  %p538_p3 = por %p537_p2, %p536_p1 }
  0x1d   : > { %440 = vmatpush3.xpose.msra.mxu0 %v224_v2  ;;  %v210_v16 = vld [vmem:[%s688_s27] sm:$0xff]  ;;  %p532_p0 = pneg %p531_p13 }
  0x1e   : > { %441 = vmatprep.subr.mxu0 %v607_v0  ;;  %v209_v17 = vld [vmem:[%s208_s3] sm:$0xff] }
  0x1f   : > { %p539_p5 = pnand %p538_p3, %p532_p0 }
  0x21   : > { %442 = vmatpush3.xpose.msra.mxu0 %v223_v3 }
  0x22   : > { %443 = vmatprep.subr.mxu0 %v607_v0 }
  0x25   : > { %444 = vmatpush3.xpose.msra.mxu0 %v222_v4 }
  0x26   : > { %445 = vmatprep.subr.mxu0 %v607_v0 }
  0x29   : > { %446 = vmatpush3.xpose.msra.mxu0 %v221_v5 }
  0x2a   : > { %447 = vmatprep.subr.mxu0 %v607_v0 }
  0x2d   : > { %448 = vmatpush3.xpose.msra.mxu0 %v220_v6 }
  0x2e   : > { %449 = vmatprep.subr.mxu0 %v607_v0 }
  0x31   : > { %450 = vmatpush3.xpose.msra.mxu0 %v219_v7 }
  0x32   : > { %451 = vmatprep.subr.mxu0 %v607_v0 }
  0x35   : > { %452 = vmatpush3.xpose.msra.mxu0 %v218_v8 }
  0x36   : > { %453 = vmatprep.subr.mxu0 %v607_v0 }
  0x39   : > { %454 = vmatpush3.xpose.msra.mxu0 %v217_v9 }
  0x3a   : > { %455 = vmatprep.subr.mxu0 %v607_v0 }
  0x3d   : > { %456 = vmatpush3.xpose.msra.mxu0 %v216_v10 }
  0x3e   : > { %457 = vmatprep.subr.mxu0 %v607_v0 }
  0x41   : > { %458 = vmatpush3.xpose.msra.mxu0 %v215_v11 }
  0x42   : > { %459 = vmatprep.subr.mxu0 %v607_v0 }
  0x45   : > { %460 = vmatpush3.xpose.msra.mxu0 %v214_v12 }
  0x46   : > { %461 = vmatprep.subr.mxu0 %v607_v0 }
  0x49   : > { %462 = vmatpush3.xpose.msra.mxu0 %v213_v13 }
  0x4a   : > { %463 = vmatprep.subr.mxu0 %v607_v0 }
  0x4d   : > { %464 = vmatpush3.xpose.msra.mxu0 %v212_v14 }
  0x4e   : > { %465 = vmatprep.subr.mxu0 %v607_v0 }
  0x51   : > { %466 = vmatpush3.xpose.msra.mxu0 %v211_v15 }
  0x52   : > { %467 = vmatprep.subr.mxu0 %v607_v0 }
  0x55   : > { %468 = vmatpush3.xpose.msra.mxu0 %v210_v16 }
  0x58   : > { %470 = vmatmul.mubr.f32.vlgmr.msra.gmra.mxu0 %v209_v17 }
 0x118   : > { %v292_v18 = vpop.f32.mrf.mxu0 }
 0x119   : > { %296 = vst [vmem:[%s191_s6] sm:$0xff] %v292_v18 }
 0x11a   : > { %v471_v19 = vpop.f32.mrf.mxu0 }
 0x11b   : > { %542 = shalt.err (!%p539_p5)
}
 0x11c   : > { %s543_s26 = scalar_lea.hbm %s717_s18, 128  ;;  %s547_s29 = scalar_lea.hbm %s763_s2, 256 }
 0x11d   : > { %p544_p6 = scmp.ne.s32.totalorder %s717_s18, %s543_s26  ;;  %p548_p10 = scmp.lt.s32.totalorder %s717_s18, %s763_s2 }
 0x11e   : > { %p549_p11 = scmp.lt.s32.totalorder %s547_s29, %s543_s26 }
 0x11f   : > { %p545_p7 = pnand %p544_p6, %p665_p4 }
 0x120   : > { %p550_p12 = por %p549_p11, %p548_p10 }
 0x121   : > { %p546_p9 = pneg %p545_p7 }
 0x123   : > { %p551_p13 = pnand %p550_p12, %p546_p9 }
 0x125   : > { %554 = shalt.err (!%p551_p13)
}
 0x126   : > { %472 = dma.vmem_to_hbm [thread:$0]  (%p665_p4), %s712_s7, 128, %s717_s18, %s298_s20  }
 0x127 PF: > { %p478_p0 = scmp.ge.s32.totalorder %s605_s14, 2  ;;  %s325_s4 = sand.u32 1, %s585_s9  }
 0x128   : > { %s326_s5 = scalar_lea.sflag [#allocation3], %s325_s4 }
 0x129   : > { %p475_p1 = pnand %p478_p0, %p672_p8 }
 0x12b   : > { %p476_p2 = pneg %p475_p1 }
 0x12d   : > { %580 = dma.done.wait (%p476_p2), %s326_s5, 128  }
 0x12e   : > { %582 = vsyncadd (%p476_p2), %s326_s5, 4294967168  ;;  %s15_s14 = sadd.s32 1, %s605_s14   ;;  %s766_s9 = smov %s589_s10 }
 0x12f   : > { %p12_p3 = scmp.ge.s32.totalorder %s15_s14, 4   ;;  %s767_s10 = smov %s593_s11 }
 0x130   : > { %s768_s11 = smov %s678_s22  ;;  %s769_s12 = smov %s601_s13 }
 0x131   : > { %s770_s13 = smov %s772_s17  ;;  %14 = sbr.rel (!%p12_p3) target bundleno = 4 (0x4), region = 66 }
 0x136   :  { %331 = vsyncpa [#allocation3], 1 }
 0x137   :  { %333 = vsyncpa [#allocation3 + $0x1], 1 }

// kernel: my_model_forward.2
= control target key start
LH: loop header
LB: loop body
LE: loop exit
PB: predicated region body
PF: predicated region fallthrough
CT: control target
= control target key end

     0   :  { %s7116_s1 = inlined_call_operand.vmem [shape: f32[2048,256], index: 1, kind: input, shape index: {}]   ;;  %s7117_s0 = inlined_call_operand.vmem [shape: f32[256,2048], index: 0, kind: input, shape index: {}]   ;;  %s7118_s2 = inlined_call_operand.vmem [shape: f32[1,256], index: 2, kind: input, shape index: {}]   ;;  %s7119_s3 = inlined_call_operand.vmem [shape: f32[256,128], index: 3, kind: output, shape index: {0}]   ;;  %s7120_s4 = inlined_call_operand.vmem [shape: f32[256,128], index: 4, kind: output, shape index: {1}]  }
   0x1   :  { %v559_v0 = vld [vmem:[%s7116_s1 + $0xf8] sm:$0xff]  ;;  %v558_v1 = vld [vmem:[%s7116_s1 + $0xf0] sm:$0xff]  ;;  %v557_v3 = vld [vmem:[%s7116_s1 + $0xe8] sm:$0xff] }
   0x2   :  { %v623_v2 = vld [vmem:[%s7116_s1 + $0x2f8] sm:$0xff]  ;;  %1052 = vmatprep.subr.mxu0 %v559_v0  ;;  %v622_v4 = vld [vmem:[%s7116_s1 + $0x2f0] sm:$0xff]  ;;  %v556_v5 = vld [vmem:[%s7116_s1 + $0xe0] sm:$0xff] }
   0x3   :  { %1309 = vmatprep.subr.mxu1 %v623_v2  ;;  %1053 = vmatpush1.msra.mxu0 %v558_v1  ;;  %v621_v6 = vld [vmem:[%s7116_s1 + $0x2e8] sm:$0xff]  ;;  %v555_v7 = vld [vmem:[%s7116_s1 + $0xd8] sm:$0xff]  ;;  %v620_v8 = vld [vmem:[%s7116_s1 + $0x2e0] sm:$0xff] }
   0x4   :  { %1310 = vmatpush1.msra.mxu1 %v622_v4  ;;  %1054 = vmatprep.subr.mxu0 %v557_v3  ;;  %v554_v9 = vld [vmem:[%s7116_s1 + $0xd0] sm:$0xff]  ;;  %v619_v10 = vld [vmem:[%s7116_s1 + $0x2d8] sm:$0xff]  ;;  %v553_v11 = vld [vmem:[%s7116_s1 + $0xc8] sm:$0xff] }
   0x5   :  { %1311 = vmatprep.subr.mxu1 %v621_v6  ;;  %1055 = vmatpush1.msra.mxu0 %v556_v5  ;;  %v618_v12 = vld [vmem:[%s7116_s1 + $0x2d0] sm:$0xff]  ;;  %v617_v13 = vld [vmem:[%s7116_s1 + $0x2c8] sm:$0xff]  ;;  %v552_v14 = vld [vmem:[%s7116_s1 + $0xc0] sm:$0xff] }
   0x6   :  { %1312 = vmatpush1.msra.mxu1 %v620_v8  ;;  %1056 = vmatprep.subr.mxu0 %v555_v7  ;;  %v616_v15 = vld [vmem:[%s7116_s1 + $0x2c0] sm:$0xff]  ;;  %v551_v16 = vld [vmem:[%s7116_s1 + $0xb8] sm:$0xff]  ;;  %v550_v18 = vld [vmem:[%s7116_s1 + $0xb0] sm:$0xff] }
   0x7   :  { %1313 = vmatprep.subr.mxu1 %v619_v10  ;;  %1057 = vmatpush1.msra.mxu0 %v554_v9  ;;  %v615_v17 = vld [vmem:[%s7116_s1 + $0x2b8] sm:$0xff]  ;;  %v614_v19 = vld [vmem:[%s7116_s1 + $0x2b0] sm:$0xff]  ;;  %v549_v20 = vld [vmem:[%s7116_s1 + $0xa8] sm:$0xff] }
   0x8   :  { %1314 = vmatpush1.msra.mxu1 %v618_v12  ;;  %1058 = vmatprep.subr.mxu0 %v553_v11  ;;  %v613_v21 = vld [vmem:[%s7116_s1 + $0x2a8] sm:$0xff]  ;;  %v548_v22 = vld [vmem:[%s7116_s1 + $0xa0] sm:$0xff]  ;;  %v547_v24 = vld [vmem:[%s7116_s1 + $0x98] sm:$0xff] }
   0x9   :  { %1315 = vmatprep.subr.mxu1 %v617_v13  ;;  %1059 = vmatpush1.msra.mxu0 %v552_v14  ;;  %v612_v23 = vld [vmem:[%s7116_s1 + $0x2a0] sm:$0xff]  ;;  %v611_v25 = vld [vmem:[%s7116_s1 + $0x298] sm:$0xff]  ;;  %v546_v26 = vld [vmem:[%s7116_s1 + $0x90] sm:$0xff] }
   0xa   :  { %1316 = vmatpush1.msra.mxu1 %v616_v15  ;;  %1060 = vmatprep.subr.mxu0 %v551_v16  ;;  %v610_v27 = vld [vmem:[%s7116_s1 + $0x290] sm:$0xff]  ;;  %v545_v28 = vld [vmem:[%s7116_s1 + $0x88] sm:$0xff]  ;;  %v544_v30 = vld [vmem:[%s7116_s1 + $0x80] sm:$0xff] }
   0xb   :  { %1317 = vmatprep.subr.mxu1 %v615_v17  ;;  %1061 = vmatpush1.msra.mxu0 %v550_v18  ;;  %v609_v29 = vld [vmem:[%s7116_s1 + $0x288] sm:$0xff]  ;;  %v608_v31 = vld [vmem:[%s7116_s1 + $0x280] sm:$0xff]  ;;  %v543_v32 = vld [vmem:[%s7116_s1 + $0x78] sm:$0xff] }
   0xc   :  { %1318 = vmatpush1.msra.mxu1 %v614_v19  ;;  %1062 = vmatprep.subr.mxu0 %v549_v20  ;;  %v607_v33 = vld [vmem:[%s7116_s1 + $0x278] sm:$0xff]  ;;  %v542_v34 = vld [vmem:[%s7116_s1 + $0x70] sm:$0xff]  ;;  %v541_v36 = vld [vmem:[%s7116_s1 + $0x68] sm:$0xff] }
   0xd   :  { %1319 = vmatprep.subr.mxu1 %v613_v21  ;;  %1063 = vmatpush1.msra.mxu0 %v548_v22  ;;  %v606_v35 = vld [vmem:[%s7116_s1 + $0x270] sm:$0xff]  ;;  %v605_v37 = vld [vmem:[%s7116_s1 + $0x268] sm:$0xff]  ;;  %v540_v38 = vld [vmem:[%s7116_s1 + $0x60] sm:$0xff] }
   0xe   :  { %1320 = vmatpush1.msra.mxu1 %v612_v23  ;;  %1064 = vmatprep.subr.mxu0 %v547_v24  ;;  %v604_v39 = vld [vmem:[%s7116_s1 + $0x260] sm:$0xff]  ;;  %v539_v40 = vld [vmem:[%s7116_s1 + $0x58] sm:$0xff]  ;;  %v538_v42 = vld [vmem:[%s7116_s1 + $0x50] sm:$0xff] }
   0xf   :  { %1321 = vmatprep.subr.mxu1 %v611_v25  ;;  %1065 = vmatpush1.msra.mxu0 %v546_v26  ;;  %v603_v41 = vld [vmem:[%s7116_s1 + $0x258] sm:$0xff]  ;;  %v602_v43 = vld [vmem:[%s7116_s1 + $0x250] sm:$0xff]  ;;  %v537_v44 = vld [vmem:[%s7116_s1 + $0x48] sm:$0xff] }
  0x10   :  { %1322 = vmatpush1.msra.mxu1 %v610_v27  ;;  %1066 = vmatprep.subr.mxu0 %v545_v28  ;;  %v601_v45 = vld [vmem:[%s7116_s1 + $0x248] sm:$0xff]  ;;  %v536_v46 = vld [vmem:[%s7116_s1 + $0x40] sm:$0xff]  ;;  %v535_v48 = vld [vmem:[%s7116_s1 + $0x38] sm:$0xff] }
  0x11   :  { %1323 = vmatprep.subr.mxu1 %v609_v29  ;;  %1067 = vmatpush1.msra.mxu0 %v544_v30  ;;  %v600_v47 = vld [vmem:[%s7116_s1 + $0x240] sm:$0xff]  ;;  %v599_v49 = vld [vmem:[%s7116_s1 + $0x238] sm:$0xff]  ;;  %v534_v50 = vld [vmem:[%s7116_s1 + $0x30] sm:$0xff] }
  0x12   :  { %1324 = vmatpush1.msra.mxu1 %v608_v31  ;;  %1068 = vmatprep.subr.mxu0 %v543_v32  ;;  %v598_v51 = vld [vmem:[%s7116_s1 + $0x230] sm:$0xff]  ;;  %v533_v52 = vld [vmem:[%s7116_s1 + $0x28] sm:$0xff]  ;;  %v532_v54 = vld [vmem:[%s7116_s1 + $0x20] sm:$0xff] }
  0x13   :  { %1325 = vmatprep.subr.mxu1 %v607_v33  ;;  %1069 = vmatpush1.msra.mxu0 %v542_v34  ;;  %v597_v53 = vld [vmem:[%s7116_s1 + $0x228] sm:$0xff]  ;;  %v596_v55 = vld [vmem:[%s7116_s1 + $0x220] sm:$0xff]  ;;  %v531_v56 = vld [vmem:[%s7116_s1 + $0x18] sm:$0xff] }
  0x14   :  { %1326 = vmatpush1.msra.mxu1 %v606_v35  ;;  %1070 = vmatprep.subr.mxu0 %v541_v36  ;;  %v595_v57 = vld [vmem:[%s7116_s1 + $0x218] sm:$0xff]  ;;  %v530_v58 = vld [vmem:[%s7116_s1 + $0x10] sm:$0xff]  ;;  %v529_v60 = vld [vmem:[%s7116_s1 + $0x8] sm:$0xff] }
  0x15   :  { %1327 = vmatprep.subr.mxu1 %v605_v37  ;;  %1071 = vmatpush1.msra.mxu0 %v540_v38  ;;  %v594_v59 = vld [vmem:[%s7116_s1 + $0x210] sm:$0xff]  ;;  %v593_v61 = vld [vmem:[%s7116_s1 + $0x208] sm:$0xff]  ;;  %v528_v62 = vld [vmem:[%s7116_s1] sm:$0xff] }
  0x16   :  { %1328 = vmatpush1.msra.mxu1 %v604_v39  ;;  %1072 = vmatprep.subr.mxu0 %v539_v40  ;;  %v592_v63 = vld [vmem:[%s7116_s1 + $0x200] sm:$0xff]  ;;  %v591_v0 = vld [vmem:[%s7116_s1 + $0x1f8] sm:$0xff]  ;;  %v590_v2 = vld [vmem:[%s7116_s1 + $0x1f0] sm:$0xff] }
  0x17   :  { %1329 = vmatprep.subr.mxu1 %v603_v41  ;;  %1073 = vmatpush1.msra.mxu0 %v538_v42  ;;  %v655_v1 = vld [vmem:[%s7116_s1 + $0x3f8] sm:$0xff]  ;;  %v654_v3 = vld [vmem:[%s7116_s1 + $0x3f0] sm:$0xff]  ;;  %v589_v4 = vld [vmem:[%s7116_s1 + $0x1e8] sm:$0xff] }
  0x18   :  { %1330 = vmatpush1.msra.mxu1 %v602_v43  ;;  %1074 = vmatprep.subr.mxu0 %v537_v44  ;;  %v653_v5 = vld [vmem:[%s7116_s1 + $0x3e8] sm:$0xff]  ;;  %v588_v6 = vld [vmem:[%s7116_s1 + $0x1e0] sm:$0xff]  ;;  %v587_v8 = vld [vmem:[%s7116_s1 + $0x1d8] sm:$0xff] }
  0x19   :  { %1331 = vmatprep.subr.mxu1 %v601_v45  ;;  %1075 = vmatpush1.msra.mxu0 %v536_v46  ;;  %v652_v7 = vld [vmem:[%s7116_s1 + $0x3e0] sm:$0xff]  ;;  %v651_v9 = vld [vmem:[%s7116_s1 + $0x3d8] sm:$0xff]  ;;  %v586_v10 = vld [vmem:[%s7116_s1 + $0x1d0] sm:$0xff] }
  0x1a   :  { %1332 = vmatpush1.msra.mxu1 %v600_v47  ;;  %1076 = vmatprep.subr.mxu0 %v535_v48  ;;  %v650_v11 = vld [vmem:[%s7116_s1 + $0x3d0] sm:$0xff]  ;;  %v585_v12 = vld [vmem:[%s7116_s1 + $0x1c8] sm:$0xff]  ;;  %v584_v14 = vld [vmem:[%s7116_s1 + $0x1c0] sm:$0xff] }
  0x1b   :  { %1333 = vmatprep.subr.mxu1 %v599_v49  ;;  %1077 = vmatpush1.msra.mxu0 %v534_v50  ;;  %v649_v13 = vld [vmem:[%s7116_s1 + $0x3c8] sm:$0xff]  ;;  %v648_v15 = vld [vmem:[%s7116_s1 + $0x3c0] sm:$0xff]  ;;  %v583_v16 = vld [vmem:[%s7116_s1 + $0x1b8] sm:$0xff] }
  0x1c   :  { %1334 = vmatpush1.msra.mxu1 %v598_v51  ;;  %1078 = vmatprep.subr.mxu0 %v533_v52  ;;  %v647_v17 = vld [vmem:[%s7116_s1 + $0x3b8] sm:$0xff]  ;;  %v582_v18 = vld [vmem:[%s7116_s1 + $0x1b0] sm:$0xff]  ;;  %v581_v20 = vld [vmem:[%s7116_s1 + $0x1a8] sm:$0xff] }
  0x1d   :  { %1335 = vmatprep.subr.mxu1 %v597_v53  ;;  %1079 = vmatpush1.msra.mxu0 %v532_v54  ;;  %v646_v19 = vld [vmem:[%s7116_s1 + $0x3b0] sm:$0xff]  ;;  %v645_v21 = vld [vmem:[%s7116_s1 + $0x3a8] sm:$0xff]  ;;  %v580_v22 = vld [vmem:[%s7116_s1 + $0x1a0] sm:$0xff] }
  0x1e   :  { %1336 = vmatpush1.msra.mxu1 %v596_v55  ;;  %1080 = vmatprep.subr.mxu0 %v531_v56  ;;  %v644_v23 = vld [vmem:[%s7116_s1 + $0x3a0] sm:$0xff]  ;;  %v579_v24 = vld [vmem:[%s7116_s1 + $0x198] sm:$0xff]  ;;  %v578_v26 = vld [vmem:[%s7116_s1 + $0x190] sm:$0xff] }
  0x1f   :  { %1337 = vmatprep.subr.mxu1 %v595_v57  ;;  %1081 = vmatpush1.msra.mxu0 %v530_v58  ;;  %v643_v25 = vld [vmem:[%s7116_s1 + $0x398] sm:$0xff]  ;;  %v642_v27 = vld [vmem:[%s7116_s1 + $0x390] sm:$0xff]  ;;  %v577_v28 = vld [vmem:[%s7116_s1 + $0x188] sm:$0xff] }
  0x20   :  { %1338 = vmatpush1.msra.mxu1 %v594_v59  ;;  %1082 = vmatprep.subr.mxu0 %v529_v60  ;;  %v641_v29 = vld [vmem:[%s7116_s1 + $0x388] sm:$0xff]  ;;  %v576_v30 = vld [vmem:[%s7116_s1 + $0x180] sm:$0xff]  ;;  %v575_v32 = vld [vmem:[%s7116_s1 + $0x178] sm:$0xff] }
  0x21   :  { %1339 = vmatprep.subr.mxu1 %v593_v61  ;;  %1083 = vmatpush1.msra.mxu0 %v528_v62  ;;  %v640_v31 = vld [vmem:[%s7116_s1 + $0x380] sm:$0xff]  ;;  %v639_v33 = vld [vmem:[%s7116_s1 + $0x378] sm:$0xff]  ;;  %v574_v34 = vld [vmem:[%s7116_s1 + $0x170] sm:$0xff] }
  0x22   :  { %1340 = vmatpush1.msra.mxu1 %v592_v63  ;;  %1084 = vmatprep.subr.mxu0 %v591_v0  ;;  %v638_v35 = vld [vmem:[%s7116_s1 + $0x370] sm:$0xff]  ;;  %v573_v36 = vld [vmem:[%s7116_s1 + $0x168] sm:$0xff]  ;;  %v572_v38 = vld [vmem:[%s7116_s1 + $0x160] sm:$0xff] }
  0x23   :  { %1341 = vmatprep.subr.mxu1 %v655_v1  ;;  %1085 = vmatpush2.msra.mxu0 %v590_v2  ;;  %v637_v37 = vld [vmem:[%s7116_s1 + $0x368] sm:$0xff]  ;;  %v636_v39 = vld [vmem:[%s7116_s1 + $0x360] sm:$0xff]  ;;  %v571_v40 = vld [vmem:[%s7116_s1 + $0x158] sm:$0xff] }
  0x24   :  { %1342 = vmatpush2.msra.mxu1 %v654_v3  ;;  %1086 = vmatprep.subr.mxu0 %v589_v4  ;;  %v635_v41 = vld [vmem:[%s7116_s1 + $0x358] sm:$0xff]  ;;  %v570_v42 = vld [vmem:[%s7116_s1 + $0x150] sm:$0xff]  ;;  %v569_v44 = vld [vmem:[%s7116_s1 + $0x148] sm:$0xff] }
  0x25   :  { %1343 = vmatprep.subr.mxu1 %v653_v5  ;;  %1087 = vmatpush2.msra.mxu0 %v588_v6  ;;  %v634_v43 = vld [vmem:[%s7116_s1 + $0x350] sm:$0xff]  ;;  %v633_v45 = vld [vmem:[%s7116_s1 + $0x348] sm:$0xff]  ;;  %v568_v46 = vld [vmem:[%s7116_s1 + $0x140] sm:$0xff] }
  0x26   :  { %1344 = vmatpush2.msra.mxu1 %v652_v7  ;;  %1088 = vmatprep.subr.mxu0 %v587_v8  ;;  %v632_v47 = vld [vmem:[%s7116_s1 + $0x340] sm:$0xff]  ;;  %v567_v48 = vld [vmem:[%s7116_s1 + $0x138] sm:$0xff]  ;;  %v566_v50 = vld [vmem:[%s7116_s1 + $0x130] sm:$0xff] }
  0x27   :  { %1345 = vmatprep.subr.mxu1 %v651_v9  ;;  %1089 = vmatpush2.msra.mxu0 %v586_v10  ;;  %v631_v49 = vld [vmem:[%s7116_s1 + $0x338] sm:$0xff]  ;;  %v630_v51 = vld [vmem:[%s7116_s1 + $0x330] sm:$0xff]  ;;  %v565_v52 = vld [vmem:[%s7116_s1 + $0x128] sm:$0xff] }
  0x28   :  { %1346 = vmatpush2.msra.mxu1 %v650_v11  ;;  %1090 = vmatprep.subr.mxu0 %v585_v12  ;;  %v629_v53 = vld [vmem:[%s7116_s1 + $0x328] sm:$0xff]  ;;  %v564_v54 = vld [vmem:[%s7116_s1 + $0x120] sm:$0xff]  ;;  %v563_v56 = vld [vmem:[%s7116_s1 + $0x118] sm:$0xff] }
  0x29   :  { %1347 = vmatprep.subr.mxu1 %v649_v13  ;;  %1091 = vmatpush2.msra.mxu0 %v584_v14  ;;  %v628_v55 = vld [vmem:[%s7116_s1 + $0x320] sm:$0xff]  ;;  %v627_v57 = vld [vmem:[%s7116_s1 + $0x318] sm:$0xff]  ;;  %v562_v58 = vld [vmem:[%s7116_s1 + $0x110] sm:$0xff] }
  0x2a   :  { %1348 = vmatpush2.msra.mxu1 %v648_v15  ;;  %1092 = vmatprep.subr.mxu0 %v583_v16  ;;  %v626_v59 = vld [vmem:[%s7116_s1 + $0x310] sm:$0xff]  ;;  %v561_v60 = vld [vmem:[%s7116_s1 + $0x108] sm:$0xff]  ;;  %v560_v62 = vld [vmem:[%s7116_s1 + $0x100] sm:$0xff] }
  0x2b   :  { %1349 = vmatprep.subr.mxu1 %v647_v17  ;;  %1093 = vmatpush2.msra.mxu0 %v582_v18  ;;  %v17_v61 = vld [vmem:[%s7117_s0 + $0x8] sm:$0xff]  ;;  %v16_v0 = vld [vmem:[%s7117_s0] sm:$0xff]  ;;  %v19_v2 = vld [vmem:[%s7117_s0 + $0x18] sm:$0xff] }
  0x2c   :  { %1350 = vmatpush2.msra.mxu1 %v646_v19  ;;  %1094 = vmatprep.subr.mxu0 %v581_v20  ;;  %v625_v63 = vld [vmem:[%s7116_s1 + $0x308] sm:$0xff]  ;;  %v624_v1 = vld [vmem:[%s7116_s1 + $0x300] sm:$0xff]  ;;  %v687_v3 = vld [vmem:[%s7116_s1 + $0x4f8] sm:$0xff] }
  0x2d   :  { %1351 = vmatprep.subr.mxu1 %v645_v21  ;;  %1095 = vmatpush2.msra.mxu0 %v580_v22  ;;  %v18_v4 = vld [vmem:[%s7117_s0 + $0x10] sm:$0xff]  ;;  %v751_v6 = vld [vmem:[%s7116_s1 + $0x6f8] sm:$0xff]  ;;  %v33_v7 = vld [vmem:[%s7117_s0 + $0x88] sm:$0xff] }
  0x2e   :  { %1352 = vmatpush2.msra.mxu1 %v644_v23  ;;  %1096 = vmatprep.subr.mxu0 %v579_v24  ;;  %v686_v5 = vld [vmem:[%s7116_s1 + $0x4f0] sm:$0xff]  ;;  %v32_v9 = vld [vmem:[%s7117_s0 + $0x80] sm:$0xff]  ;;  %v35_v10 = vld [vmem:[%s7117_s0 + $0x98] sm:$0xff] }
  0x2f   :  { %1353 = vmatprep.subr.mxu1 %v643_v25  ;;  %1097 = vmatpush2.msra.mxu0 %v578_v26  ;;  %v750_v8 = vld [vmem:[%s7116_s1 + $0x6f0] sm:$0xff]  ;;  %v685_v11 = vld [vmem:[%s7116_s1 + $0x4e8] sm:$0xff]  ;;  %v684_v13 = vld [vmem:[%s7116_s1 + $0x4e0] sm:$0xff] }
  0x30   :  { %1354 = vmatpush2.msra.mxu1 %v642_v27  ;;  %1098 = vmatprep.subr.mxu0 %v577_v28  ;;  %v34_v12 = vld [vmem:[%s7117_s0 + $0x90] sm:$0xff]  ;;  %v749_v14 = vld [vmem:[%s7116_s1 + $0x6e8] sm:$0xff]  ;;  %v748_v16 = vld [vmem:[%s7116_s1 + $0x6e0] sm:$0xff] }
  0x31   :  { %1355 = vmatprep.subr.mxu1 %v641_v29  ;;  %1099 = vmatpush2.msra.mxu0 %v576_v30  ;;  %v49_v15 = vld [vmem:[%s7117_s0 + $0x108] sm:$0xff]  ;;  %v48_v17 = vld [vmem:[%s7117_s0 + $0x100] sm:$0xff]  ;;  %v51_v18 = vld [vmem:[%s7117_s0 + $0x118] sm:$0xff] }
  0x32   :  { %1356 = vmatpush2.msra.mxu1 %v640_v31  ;;  %1100 = vmatprep.subr.mxu0 %v575_v32  ;;  %v683_v19 = vld [vmem:[%s7116_s1 + $0x4d8] sm:$0xff]  ;;  %v50_v20 = vld [vmem:[%s7117_s0 + $0x110] sm:$0xff]  ;;  %v65_v23 = vld [vmem:[%s7117_s0 + $0x188] sm:$0xff] }
  0x33   :  { %1357 = vmatprep.subr.mxu1 %v639_v33  ;;  %1101 = vmatpush2.msra.mxu0 %v574_v34  ;;  %v682_v21 = vld [vmem:[%s7116_s1 + $0x4d0] sm:$0xff]  ;;  %v747_v22 = vld [vmem:[%s7116_s1 + $0x6d8] sm:$0xff]  ;;  %v64_v25 = vld [vmem:[%s7117_s0 + $0x180] sm:$0xff] }
  0x34   :  { %1358 = vmatpush2.msra.mxu1 %v638_v35  ;;  %1102 = vmatprep.subr.mxu0 %v573_v36  ;;  %v746_v24 = vld [vmem:[%s7116_s1 + $0x6d0] sm:$0xff]  ;;  %v67_v26 = vld [vmem:[%s7117_s0 + $0x198] sm:$0xff]  ;;  %v681_v27 = vld [vmem:[%s7116_s1 + $0x4c8] sm:$0xff] }
  0x35   :  { %1359 = vmatprep.subr.mxu1 %v637_v37  ;;  %1103 = vmatpush2.msra.mxu0 %v572_v38  ;;  %v66_v28 = vld [vmem:[%s7117_s0 + $0x190] sm:$0xff]  ;;  %v680_v29 = vld [vmem:[%s7116_s1 + $0x4c0] sm:$0xff]  ;;  %v745_v30 = vld [vmem:[%s7116_s1 + $0x6c8] sm:$0xff] }
  0x36   :  { %1360 = vmatpush2.msra.mxu1 %v636_v39  ;;  %1104 = vmatprep.subr.mxu0 %v571_v40  ;;  %v81_v31 = vld [vmem:[%s7117_s0 + $0x208] sm:$0xff]  ;;  %v744_v32 = vld [vmem:[%s7116_s1 + $0x6c0] sm:$0xff]  ;;  %v83_v34 = vld [vmem:[%s7117_s0 + $0x218] sm:$0xff] }
  0x37   :  { %1361 = vmatprep.subr.mxu1 %v635_v41  ;;  %1105 = vmatpush2.msra.mxu0 %v570_v42  ;;  %v80_v33 = vld [vmem:[%s7117_s0 + $0x200] sm:$0xff]  ;;  %v679_v35 = vld [vmem:[%s7116_s1 + $0x4b8] sm:$0xff]  ;;  %v82_v36 = vld [vmem:[%s7117_s0 + $0x210] sm:$0xff] }
  0x38   :  { %1362 = vmatpush2.msra.mxu1 %v634_v43  ;;  %1106 = vmatprep.subr.mxu0 %v569_v44  ;;  %v678_v37 = vld [vmem:[%s7116_s1 + $0x4b0] sm:$0xff]  ;;  %v743_v38 = vld [vmem:[%s7116_s1 + $0x6b8] sm:$0xff]  ;;  %v97_v39 = vld [vmem:[%s7117_s0 + $0x288] sm:$0xff] }
  0x39   :  { %1363 = vmatprep.subr.mxu1 %v633_v45  ;;  %1107 = vmatpush2.msra.mxu0 %v568_v46  ;;  %v742_v40 = vld [vmem:[%s7116_s1 + $0x6b0] sm:$0xff]  ;;  %v96_v41 = vld [vmem:[%s7117_s0 + $0x280] sm:$0xff]  ;;  %v99_v42 = vld [vmem:[%s7117_s0 + $0x298] sm:$0xff] }
  0x3a   :  { %1364 = vmatpush2.msra.mxu1 %v632_v47  ;;  %1108 = vmatprep.subr.mxu0 %v567_v48  ;;  %v677_v43 = vld [vmem:[%s7116_s1 + $0x4a8] sm:$0xff]  ;;  %v98_v44 = vld [vmem:[%s7117_s0 + $0x290] sm:$0xff]  ;;  %v676_v45 = vld [vmem:[%s7116_s1 + $0x4a0] sm:$0xff] }
  0x3b   :  { %1365 = vmatprep.subr.mxu1 %v631_v49  ;;  %1109 = vmatpush2.msra.mxu0 %v566_v50  ;;  %v741_v46 = vld [vmem:[%s7116_s1 + $0x6a8] sm:$0xff]  ;;  %v740_v48 = vld [vmem:[%s7116_s1 + $0x6a0] sm:$0xff]  ;;  %v115_v50 = vld [vmem:[%s7117_s0 + $0x318] sm:$0xff] }
  0x3c   :  { %1366 = vmatpush2.msra.mxu1 %v630_v51  ;;  %1110 = vmatprep.subr.mxu0 %v565_v52  ;;  %v113_v47 = vld [vmem:[%s7117_s0 + $0x308] sm:$0xff]  ;;  %v112_v49 = vld [vmem:[%s7117_s0 + $0x300] sm:$0xff]  ;;  %v675_v51 = vld [vmem:[%s7116_s1 + $0x498] sm:$0xff] }
  0x3d   :  { %1367 = vmatprep.subr.mxu1 %v629_v53  ;;  %1111 = vmatpush2.msra.mxu0 %v564_v54  ;;  %v114_v52 = vld [vmem:[%s7117_s0 + $0x310] sm:$0xff]  ;;  %v739_v54 = vld [vmem:[%s7116_s1 + $0x698] sm:$0xff] }
  0x3e   :  { %1368 = vmatpush2.msra.mxu1 %v628_v55  ;;  %1112 = vmatprep.subr.mxu0 %v563_v56  ;;  %v674_v53 = vld [vmem:[%s7116_s1 + $0x490] sm:$0xff]  ;;  %v129_v55 = vld [vmem:[%s7117_s0 + $0x388] sm:$0xff] }
  0x3f   :  { %1369 = vmatprep.subr.mxu1 %v627_v57  ;;  %1113 = vmatpush2.msra.mxu0 %v562_v58  ;;  %v738_v56 = vld [vmem:[%s7116_s1 + $0x690] sm:$0xff]  ;;  %v128_v57 = vld [vmem:[%s7117_s0 + $0x380] sm:$0xff]  ;;  %v131_v58 = vld [vmem:[%s7117_s0 + $0x398] sm:$0xff] }
  0x40   :  { %1370 = vmatpush2.msra.mxu1 %v626_v59  ;;  %1114 = vmatprep.subr.mxu0 %v561_v60  ;;  %v673_v59 = vld [vmem:[%s7116_s1 + $0x488] sm:$0xff]  ;;  %v130_v60 = vld [vmem:[%s7117_s0 + $0x390] sm:$0xff] }
  0x41   :  { %1116 = vmatprep.mubr.f32.mxu0 %v17_v61  ;;  %1115 = vmatpush2.msra.mxu0 %v560_v62  ;;  %v672_v61 = vld [vmem:[%s7116_s1 + $0x480] sm:$0xff]  ;;  %v737_v62 = vld [vmem:[%s7116_s1 + $0x688] sm:$0xff] }
  0x42   :  { %1371 = vmatprep.subr.mxu1 %v625_v63  ;;  %1117 = vmatmul.mubr.f32.vlgmr.msra.gmra.mxu0 %v16_v0  ;;  %v145_v63 = vld [vmem:[%s7117_s0 + $0x408] sm:$0xff]  ;;  %v736_v0 = vld [vmem:[%s7116_s1 + $0x680] sm:$0xff] }
  0x43   :  { %1372 = vmatpush2.msra.mxu1 %v624_v1  ;;  %1373 = vmatprep.mubr.f32.mxu1 %v19_v2  ;;  %v144_v1 = vld [vmem:[%s7117_s0 + $0x400] sm:$0xff]  ;;  %v147_v2 = vld [vmem:[%s7117_s0 + $0x418] sm:$0xff] }
  0x44   :  { %1566 = vmatprep.subr.mxu0 %v687_v3  ;;  %1374 = vmatmul.mubr.f32.vlgmr.msra.gmra.mxu1 %v18_v4  ;;  %v671_v3 = vld [vmem:[%s7116_s1 + $0x478] sm:$0xff]  ;;  %v146_v4 = vld [vmem:[%s7117_s0 + $0x410] sm:$0xff] }
  0x45   :  { %1567 = vmatpush1.msra.mxu0 %v686_v5  ;;  %1823 = vmatprep.subr.mxu1 %v751_v6  ;;  %v670_v5 = vld [vmem:[%s7116_s1 + $0x470] sm:$0xff]  ;;  %v735_v6 = vld [vmem:[%s7116_s1 + $0x678] sm:$0xff] }
  0x46   :  { %1122 = vmatprep.mubr.f32.mxu0 %v33_v7  ;;  %1824 = vmatpush1.msra.mxu1 %v750_v8  ;;  %v161_v7 = vld [vmem:[%s7117_s0 + $0x488] sm:$0xff]  ;;  %v734_v8 = vld [vmem:[%s7116_s1 + $0x670] sm:$0xff] }
  0x47   :  { %1123 = vmatmul.mubr.f32.gmra.mxu0 %v32_v9  ;;  %1379 = vmatprep.mubr.f32.mxu1 %v35_v10  ;;  %v160_v9 = vld [vmem:[%s7117_s0 + $0x480] sm:$0xff]  ;;  %v163_v10 = vld [vmem:[%s7117_s0 + $0x498] sm:$0xff] }
  0x48   :  { %1568 = vmatprep.subr.mxu0 %v685_v11  ;;  %1380 = vmatmul.mubr.f32.gmra.mxu1 %v34_v12  ;;  %v669_v11 = vld [vmem:[%s7116_s1 + $0x468] sm:$0xff]  ;;  %v162_v12 = vld [vmem:[%s7117_s0 + $0x490] sm:$0xff] }
  0x49   :  { %1569 = vmatpush1.msra.mxu0 %v684_v13  ;;  %1825 = vmatprep.subr.mxu1 %v749_v14  ;;  %v668_v13 = vld [vmem:[%s7116_s1 + $0x460] sm:$0xff]  ;;  %v733_v14 = vld [vmem:[%s7116_s1 + $0x668] sm:$0xff] }
  0x4a   :  { %1128 = vmatprep.mubr.f32.mxu0 %v49_v15  ;;  %1826 = vmatpush1.msra.mxu1 %v748_v16  ;;  %v177_v15 = vld [vmem:[%s7117_s0 + $0x508] sm:$0xff]  ;;  %v732_v16 = vld [vmem:[%s7116_s1 + $0x660] sm:$0xff] }
  0x4b   :  { %1129 = vmatmul.mubr.f32.gmra.mxu0 %v48_v17  ;;  %1385 = vmatprep.mubr.f32.mxu1 %v51_v18  ;;  %v176_v17 = vld [vmem:[%s7117_s0 + $0x500] sm:$0xff]  ;;  %v179_v18 = vld [vmem:[%s7117_s0 + $0x518] sm:$0xff] }
  0x4c   :  { %1570 = vmatprep.subr.mxu0 %v683_v19  ;;  %1386 = vmatmul.mubr.f32.gmra.mxu1 %v50_v20  ;;  %v667_v19 = vld [vmem:[%s7116_s1 + $0x458] sm:$0xff]  ;;  %v178_v20 = vld [vmem:[%s7117_s0 + $0x510] sm:$0xff] }
  0x4d   :  { %1571 = vmatpush1.msra.mxu0 %v682_v21  ;;  %1827 = vmatprep.subr.mxu1 %v747_v22  ;;  %v666_v21 = vld [vmem:[%s7116_s1 + $0x450] sm:$0xff]  ;;  %v731_v22 = vld [vmem:[%s7116_s1 + $0x658] sm:$0xff] }
  0x4e   :  { %1134 = vmatprep.mubr.f32.mxu0 %v65_v23  ;;  %1828 = vmatpush1.msra.mxu1 %v746_v24  ;;  %v193_v23 = vld [vmem:[%s7117_s0 + $0x588] sm:$0xff]  ;;  %v730_v24 = vld [vmem:[%s7116_s1 + $0x650] sm:$0xff] }
  0x4f   :  { %1135 = vmatmul.mubr.f32.gmra.mxu0 %v64_v25  ;;  %1391 = vmatprep.mubr.f32.mxu1 %v67_v26  ;;  %v192_v25 = vld [vmem:[%s7117_s0 + $0x580] sm:$0xff]  ;;  %v195_v26 = vld [vmem:[%s7117_s0 + $0x598] sm:$0xff] }
  0x50   :  { %1572 = vmatprep.subr.mxu0 %v681_v27  ;;  %1392 = vmatmul.mubr.f32.gmra.mxu1 %v66_v28  ;;  %v665_v27 = vld [vmem:[%s7116_s1 + $0x448] sm:$0xff]  ;;  %v194_v28 = vld [vmem:[%s7117_s0 + $0x590] sm:$0xff] }
  0x51   :  { %1573 = vmatpush1.msra.mxu0 %v680_v29  ;;  %1829 = vmatprep.subr.mxu1 %v745_v30  ;;  %v664_v29 = vld [vmem:[%s7116_s1 + $0x440] sm:$0xff]  ;;  %v729_v30 = vld [vmem:[%s7116_s1 + $0x648] sm:$0xff] }
  0x52   :  { %1140 = vmatprep.mubr.f32.mxu0 %v81_v31  ;;  %1830 = vmatpush1.msra.mxu1 %v744_v32  ;;  %v209_v31 = vld [vmem:[%s7117_s0 + $0x608] sm:$0xff]  ;;  %v728_v32 = vld [vmem:[%s7116_s1 + $0x640] sm:$0xff] }
  0x53   :  { %1141 = vmatmul.mubr.f32.gmra.mxu0 %v80_v33  ;;  %1397 = vmatprep.mubr.f32.mxu1 %v83_v34  ;;  %v208_v33 = vld [vmem:[%s7117_s0 + $0x600] sm:$0xff]  ;;  %v211_v34 = vld [vmem:[%s7117_s0 + $0x618] sm:$0xff] }
  0x54   :  { %1574 = vmatprep.subr.mxu0 %v679_v35  ;;  %1398 = vmatmul.mubr.f32.gmra.mxu1 %v82_v36  ;;  %v663_v35 = vld [vmem:[%s7116_s1 + $0x438] sm:$0xff]  ;;  %v210_v36 = vld [vmem:[%s7117_s0 + $0x610] sm:$0xff] }
  0x55   :  { %1575 = vmatpush1.msra.mxu0 %v678_v37  ;;  %1831 = vmatprep.subr.mxu1 %v743_v38  ;;  %v662_v37 = vld [vmem:[%s7116_s1 + $0x430] sm:$0xff]  ;;  %v727_v38 = vld [vmem:[%s7116_s1 + $0x638] sm:$0xff] }
  0x56   :  { %1146 = vmatprep.mubr.f32.mxu0 %v97_v39  ;;  %1832 = vmatpush1.msra.mxu1 %v742_v40  ;;  %v225_v39 = vld [vmem:[%s7117_s0 + $0x688] sm:$0xff]  ;;  %v726_v40 = vld [vmem:[%s7116_s1 + $0x630] sm:$0xff] }
  0x57   :  { %1147 = vmatmul.mubr.f32.gmra.mxu0 %v96_v41  ;;  %1403 = vmatprep.mubr.f32.mxu1 %v99_v42  ;;  %v224_v41 = vld [vmem:[%s7117_s0 + $0x680] sm:$0xff]  ;;  %v227_v42 = vld [vmem:[%s7117_s0 + $0x698] sm:$0xff] }
  0x58   :  { %1576 = vmatprep.subr.mxu0 %v677_v43  ;;  %1404 = vmatmul.mubr.f32.gmra.mxu1 %v98_v44  ;;  %v661_v43 = vld [vmem:[%s7116_s1 + $0x428] sm:$0xff]  ;;  %v226_v44 = vld [vmem:[%s7117_s0 + $0x690] sm:$0xff] }
  0x59   :  { %1577 = vmatpush1.msra.mxu0 %v676_v45  ;;  %1833 = vmatprep.subr.mxu1 %v741_v46  ;;  %v660_v45 = vld [vmem:[%s7116_s1 + $0x420] sm:$0xff]  ;;  %v725_v46 = vld [vmem:[%s7116_s1 + $0x628] sm:$0xff] }
  0x5a   :  { %1152 = vmatprep.mubr.f32.mxu0 %v113_v47  ;;  %1834 = vmatpush1.msra.mxu1 %v740_v48  ;;  %v241_v47 = vld [vmem:[%s7117_s0 + $0x708] sm:$0xff]  ;;  %v724_v48 = vld [vmem:[%s7116_s1 + $0x620] sm:$0xff] }
  0x5b   :  { %1153 = vmatmul.mubr.f32.gmra.mxu0 %v112_v49  ;;  %1409 = vmatprep.mubr.f32.mxu1 %v115_v50  ;;  %v240_v49 = vld [vmem:[%s7117_s0 + $0x700] sm:$0xff]  ;;  %v243_v50 = vld [vmem:[%s7117_s0 + $0x718] sm:$0xff] }
  0x5c   :  { %1578 = vmatprep.subr.mxu0 %v675_v51  ;;  %1410 = vmatmul.mubr.f32.gmra.mxu1 %v114_v52  ;;  %v659_v51 = vld [vmem:[%s7116_s1 + $0x418] sm:$0xff]  ;;  %v242_v52 = vld [vmem:[%s7117_s0 + $0x710] sm:$0xff] }
  0x5d   :  { %1579 = vmatpush1.msra.mxu0 %v674_v53  ;;  %1835 = vmatprep.subr.mxu1 %v739_v54  ;;  %v658_v53 = vld [vmem:[%s7116_s1 + $0x410] sm:$0xff]  ;;  %v723_v54 = vld [vmem:[%s7116_s1 + $0x618] sm:$0xff] }
  0x5e   :  { %1158 = vmatprep.mubr.f32.mxu0 %v129_v55  ;;  %1836 = vmatpush1.msra.mxu1 %v738_v56  ;;  %v257_v55 = vld [vmem:[%s7117_s0 + $0x788] sm:$0xff]  ;;  %v722_v56 = vld [vmem:[%s7116_s1 + $0x610] sm:$0xff] }
  0x5f   :  { %1159 = vmatmul.mubr.f32.gmra.mxu0 %v128_v57  ;;  %1415 = vmatprep.mubr.f32.mxu1 %v131_v58  ;;  %v256_v57 = vld [vmem:[%s7117_s0 + $0x780] sm:$0xff]  ;;  %v259_v58 = vld [vmem:[%s7117_s0 + $0x798] sm:$0xff] }
  0x60   :  { %1580 = vmatprep.subr.mxu0 %v673_v59  ;;  %1416 = vmatmul.mubr.f32.gmra.mxu1 %v130_v60  ;;  %v657_v59 = vld [vmem:[%s7116_s1 + $0x408] sm:$0xff]  ;;  %v258_v60 = vld [vmem:[%s7117_s0 + $0x790] sm:$0xff] }
  0x61   :  { %1581 = vmatpush1.msra.mxu0 %v672_v61  ;;  %1837 = vmatprep.subr.mxu1 %v737_v62  ;;  %v656_v61 = vld [vmem:[%s7116_s1 + $0x400] sm:$0xff]  ;;  %v721_v62 = vld [vmem:[%s7116_s1 + $0x608] sm:$0xff] }
  0x62   :  { %1164 = vmatprep.mubr.f32.mxu0 %v145_v63  ;;  %1838 = vmatpush1.msra.mxu1 %v736_v0  ;;  %v273_v63 = vld [vmem:[%s7117_s0 + $0x808] sm:$0xff]  ;;  %v720_v0 = vld [vmem:[%s7116_s1 + $0x600] sm:$0xff] }
  0x63   :  { %1165 = vmatmul.mubr.f32.gmra.mxu0 %v144_v1  ;;  %1421 = vmatprep.mubr.f32.mxu1 %v147_v2  ;;  %v272_v1 = vld [vmem:[%s7117_s0 + $0x800] sm:$0xff]  ;;  %v275_v2 = vld [vmem:[%s7117_s0 + $0x818] sm:$0xff] }
  0x64   :  { %1582 = vmatprep.subr.mxu0 %v671_v3  ;;  %1422 = vmatmul.mubr.f32.gmra.mxu1 %v146_v4  ;;  %v719_v3 = vld [vmem:[%s7116_s1 + $0x5f8] sm:$0xff]  ;;  %v274_v4 = vld [vmem:[%s7117_s0 + $0x810] sm:$0xff] }
  0x65   :  { %1583 = vmatpush1.msra.mxu0 %v670_v5  ;;  %1839 = vmatprep.subr.mxu1 %v735_v6  ;;  %v718_v5 = vld [vmem:[%s7116_s1 + $0x5f0] sm:$0xff]  ;;  %v783_v6 = vld [vmem:[%s7116_s1 + $0x7f8] sm:$0xff] }
  0x66   :  { %1170 = vmatprep.mubr.f32.mxu0 %v161_v7  ;;  %1840 = vmatpush1.msra.mxu1 %v734_v8  ;;  %v289_v7 = vld [vmem:[%s7117_s0 + $0x888] sm:$0xff]  ;;  %v782_v8 = vld [vmem:[%s7116_s1 + $0x7f0] sm:$0xff] }
  0x67   :  { %1171 = vmatmul.mubr.f32.gmra.mxu0 %v160_v9  ;;  %1427 = vmatprep.mubr.f32.mxu1 %v163_v10  ;;  %v288_v9 = vld [vmem:[%s7117_s0 + $0x880] sm:$0xff]  ;;  %v291_v10 = vld [vmem:[%s7117_s0 + $0x898] sm:$0xff] }
  0x68   :  { %1584 = vmatprep.subr.mxu0 %v669_v11  ;;  %1428 = vmatmul.mubr.f32.gmra.mxu1 %v162_v12  ;;  %v717_v11 = vld [vmem:[%s7116_s1 + $0x5e8] sm:$0xff]  ;;  %v290_v12 = vld [vmem:[%s7117_s0 + $0x890] sm:$0xff] }
  0x69   :  { %1585 = vmatpush1.msra.mxu0 %v668_v13  ;;  %1841 = vmatprep.subr.mxu1 %v733_v14  ;;  %v716_v13 = vld [vmem:[%s7116_s1 + $0x5e0] sm:$0xff]  ;;  %v781_v14 = vld [vmem:[%s7116_s1 + $0x7e8] sm:$0xff] }
  0x6a   :  { %1176 = vmatprep.mubr.f32.mxu0 %v177_v15  ;;  %1842 = vmatpush1.msra.mxu1 %v732_v16  ;;  %v305_v15 = vld [vmem:[%s7117_s0 + $0x908] sm:$0xff]  ;;  %v780_v16 = vld [vmem:[%s7116_s1 + $0x7e0] sm:$0xff] }
  0x6b   :  { %1177 = vmatmul.mubr.f32.gmra.mxu0 %v176_v17  ;;  %1433 = vmatprep.mubr.f32.mxu1 %v179_v18  ;;  %v304_v17 = vld [vmem:[%s7117_s0 + $0x900] sm:$0xff]  ;;  %v307_v18 = vld [vmem:[%s7117_s0 + $0x918] sm:$0xff] }
  0x6c   :  { %1586 = vmatprep.subr.mxu0 %v667_v19  ;;  %1434 = vmatmul.mubr.f32.gmra.mxu1 %v178_v20  ;;  %v715_v19 = vld [vmem:[%s7116_s1 + $0x5d8] sm:$0xff]  ;;  %v306_v20 = vld [vmem:[%s7117_s0 + $0x910] sm:$0xff] }
  0x6d   :  { %1587 = vmatpush1.msra.mxu0 %v666_v21  ;;  %1843 = vmatprep.subr.mxu1 %v731_v22  ;;  %v714_v21 = vld [vmem:[%s7116_s1 + $0x5d0] sm:$0xff]  ;;  %v779_v22 = vld [vmem:[%s7116_s1 + $0x7d8] sm:$0xff] }
  0x6e   :  { %1182 = vmatprep.mubr.f32.mxu0 %v193_v23  ;;  %1844 = vmatpush1.msra.mxu1 %v730_v24  ;;  %v321_v23 = vld [vmem:[%s7117_s0 + $0x988] sm:$0xff]  ;;  %v778_v24 = vld [vmem:[%s7116_s1 + $0x7d0] sm:$0xff] }
  0x6f   :  { %1183 = vmatmul.mubr.f32.gmra.mxu0 %v192_v25  ;;  %1439 = vmatprep.mubr.f32.mxu1 %v195_v26  ;;  %v320_v25 = vld [vmem:[%s7117_s0 + $0x980] sm:$0xff]  ;;  %v323_v26 = vld [vmem:[%s7117_s0 + $0x998] sm:$0xff] }
  0x70   :  { %1588 = vmatprep.subr.mxu0 %v665_v27  ;;  %1440 = vmatmul.mubr.f32.gmra.mxu1 %v194_v28  ;;  %v713_v27 = vld [vmem:[%s7116_s1 + $0x5c8] sm:$0xff]  ;;  %v322_v28 = vld [vmem:[%s7117_s0 + $0x990] sm:$0xff] }
  0x71   :  { %1589 = vmatpush1.msra.mxu0 %v664_v29  ;;  %1845 = vmatprep.subr.mxu1 %v729_v30  ;;  %v712_v29 = vld [vmem:[%s7116_s1 + $0x5c0] sm:$0xff]  ;;  %v777_v30 = vld [vmem:[%s7116_s1 + $0x7c8] sm:$0xff] }
  0x72   :  { %1188 = vmatprep.mubr.f32.mxu0 %v209_v31  ;;  %1846 = vmatpush1.msra.mxu1 %v728_v32  ;;  %v337_v31 = vld [vmem:[%s7117_s0 + $0xa08] sm:$0xff]  ;;  %v776_v32 = vld [vmem:[%s7116_s1 + $0x7c0] sm:$0xff] }
  0x73   :  { %1189 = vmatmul.mubr.f32.gmra.mxu0 %v208_v33  ;;  %1445 = vmatprep.mubr.f32.mxu1 %v211_v34  ;;  %v336_v33 = vld [vmem:[%s7117_s0 + $0xa00] sm:$0xff]  ;;  %v339_v34 = vld [vmem:[%s7117_s0 + $0xa18] sm:$0xff] }
  0x74   :  { %1590 = vmatprep.subr.mxu0 %v663_v35  ;;  %1446 = vmatmul.mubr.f32.gmra.mxu1 %v210_v36  ;;  %v711_v35 = vld [vmem:[%s7116_s1 + $0x5b8] sm:$0xff]  ;;  %v338_v36 = vld [vmem:[%s7117_s0 + $0xa10] sm:$0xff] }
  0x75   :  { %1591 = vmatpush1.msra.mxu0 %v662_v37  ;;  %1847 = vmatprep.subr.mxu1 %v727_v38  ;;  %v710_v37 = vld [vmem:[%s7116_s1 + $0x5b0] sm:$0xff]  ;;  %v775_v38 = vld [vmem:[%s7116_s1 + $0x7b8] sm:$0xff] }
  0x76   :  { %1194 = vmatprep.mubr.f32.mxu0 %v225_v39  ;;  %1848 = vmatpush1.msra.mxu1 %v726_v40  ;;  %v353_v39 = vld [vmem:[%s7117_s0 + $0xa88] sm:$0xff]  ;;  %v774_v40 = vld [vmem:[%s7116_s1 + $0x7b0] sm:$0xff] }
  0x77   :  { %1195 = vmatmul.mubr.f32.gmra.mxu0 %v224_v41  ;;  %1451 = vmatprep.mubr.f32.mxu1 %v227_v42  ;;  %v352_v41 = vld [vmem:[%s7117_s0 + $0xa80] sm:$0xff]  ;;  %v355_v42 = vld [vmem:[%s7117_s0 + $0xa98] sm:$0xff] }
  0x78   :  { %1592 = vmatprep.subr.mxu0 %v661_v43  ;;  %1452 = vmatmul.mubr.f32.gmra.mxu1 %v226_v44  ;;  %v709_v43 = vld [vmem:[%s7116_s1 + $0x5a8] sm:$0xff]  ;;  %v354_v44 = vld [vmem:[%s7117_s0 + $0xa90] sm:$0xff] }
  0x79   :  { %1593 = vmatpush1.msra.mxu0 %v660_v45  ;;  %1849 = vmatprep.subr.mxu1 %v725_v46  ;;  %v708_v45 = vld [vmem:[%s7116_s1 + $0x5a0] sm:$0xff]  ;;  %v773_v46 = vld [vmem:[%s7116_s1 + $0x7a8] sm:$0xff] }
  0x7a   :  { %1200 = vmatprep.mubr.f32.mxu0 %v241_v47  ;;  %1850 = vmatpush1.msra.mxu1 %v724_v48  ;;  %v369_v47 = vld [vmem:[%s7117_s0 + $0xb08] sm:$0xff]  ;;  %v772_v48 = vld [vmem:[%s7116_s1 + $0x7a0] sm:$0xff] }
  0x7b   :  { %1201 = vmatmul.mubr.f32.gmra.mxu0 %v240_v49  ;;  %1457 = vmatprep.mubr.f32.mxu1 %v243_v50  ;;  %v368_v49 = vld [vmem:[%s7117_s0 + $0xb00] sm:$0xff]  ;;  %v371_v50 = vld [vmem:[%s7117_s0 + $0xb18] sm:$0xff] }
  0x7c   :  { %1594 = vmatprep.subr.mxu0 %v659_v51  ;;  %1458 = vmatmul.mubr.f32.gmra.mxu1 %v242_v52  ;;  %v707_v51 = vld [vmem:[%s7116_s1 + $0x598] sm:$0xff]  ;;  %v370_v52 = vld [vmem:[%s7117_s0 + $0xb10] sm:$0xff] }
  0x7d   :  { %1595 = vmatpush1.msra.mxu0 %v658_v53  ;;  %1851 = vmatprep.subr.mxu1 %v723_v54  ;;  %v706_v53 = vld [vmem:[%s7116_s1 + $0x590] sm:$0xff]  ;;  %v771_v54 = vld [vmem:[%s7116_s1 + $0x798] sm:$0xff] }
  0x7e   :  { %1206 = vmatprep.mubr.f32.mxu0 %v257_v55  ;;  %1852 = vmatpush1.msra.mxu1 %v722_v56  ;;  %v385_v55 = vld [vmem:[%s7117_s0 + $0xb88] sm:$0xff]  ;;  %v770_v56 = vld [vmem:[%s7116_s1 + $0x790] sm:$0xff] }
  0x7f   :  { %1207 = vmatmul.mubr.f32.gmra.mxu0 %v256_v57  ;;  %1463 = vmatprep.mubr.f32.mxu1 %v259_v58  ;;  %v384_v57 = vld [vmem:[%s7117_s0 + $0xb80] sm:$0xff]  ;;  %v387_v58 = vld [vmem:[%s7117_s0 + $0xb98] sm:$0xff] }
  0x80   :  { %1596 = vmatprep.subr.mxu0 %v657_v59  ;;  %1464 = vmatmul.mubr.f32.gmra.mxu1 %v258_v60  ;;  %v705_v59 = vld [vmem:[%s7116_s1 + $0x588] sm:$0xff]  ;;  %v386_v60 = vld [vmem:[%s7117_s0 + $0xb90] sm:$0xff] }
  0x81   :  { %1597 = vmatpush1.msra.mxu0 %v656_v61  ;;  %1853 = vmatprep.subr.mxu1 %v721_v62  ;;  %v704_v61 = vld [vmem:[%s7116_s1 + $0x580] sm:$0xff]  ;;  %v769_v62 = vld [vmem:[%s7116_s1 + $0x788] sm:$0xff] }
  0x82   :  { %1212 = vmatprep.mubr.f32.mxu0 %v273_v63  ;;  %1854 = vmatpush1.msra.mxu1 %v720_v0  ;;  %v401_v63 = vld [vmem:[%s7117_s0 + $0xc08] sm:$0xff]  ;;  %v768_v0 = vld [vmem:[%s7116_s1 + $0x780] sm:$0xff] }
  0x83   :  { %1213 = vmatmul.mubr.f32.gmra.mxu0 %v272_v1  ;;  %1469 = vmatprep.mubr.f32.mxu1 %v275_v2  ;;  %v400_v1 = vld [vmem:[%s7117_s0 + $0xc00] sm:$0xff]  ;;  %v403_v2 = vld [vmem:[%s7117_s0 + $0xc18] sm:$0xff] }
  0x84   :  { %1598 = vmatprep.subr.mxu0 %v719_v3  ;;  %1470 = vmatmul.mubr.f32.gmra.mxu1 %v274_v4  ;;  %v703_v3 = vld [vmem:[%s7116_s1 + $0x578] sm:$0xff]  ;;  %v402_v4 = vld [vmem:[%s7117_s0 + $0xc10] sm:$0xff] }
  0x85   :  { %1599 = vmatpush2.msra.mxu0 %v718_v5  ;;  %1855 = vmatprep.subr.mxu1 %v783_v6  ;;  %v702_v5 = vld [vmem:[%s7116_s1 + $0x570] sm:$0xff]  ;;  %v767_v6 = vld [vmem:[%s7116_s1 + $0x778] sm:$0xff] }
  0x86   :  { %1218 = vmatprep.mubr.f32.mxu0 %v289_v7  ;;  %1856 = vmatpush2.msra.mxu1 %v782_v8  ;;  %v417_v7 = vld [vmem:[%s7117_s0 + $0xc88] sm:$0xff]  ;;  %v766_v8 = vld [vmem:[%s7116_s1 + $0x770] sm:$0xff] }
  0x87   :  { %1219 = vmatmul.mubr.f32.gmra.mxu0 %v288_v9  ;;  %1475 = vmatprep.mubr.f32.mxu1 %v291_v10  ;;  %v416_v9 = vld [vmem:[%s7117_s0 + $0xc80] sm:$0xff]  ;;  %v419_v10 = vld [vmem:[%s7117_s0 + $0xc98] sm:$0xff] }
  0x88   :  { %1600 = vmatprep.subr.mxu0 %v717_v11  ;;  %1476 = vmatmul.mubr.f32.gmra.mxu1 %v290_v12  ;;  %v701_v11 = vld [vmem:[%s7116_s1 + $0x568] sm:$0xff]  ;;  %v418_v12 = vld [vmem:[%s7117_s0 + $0xc90] sm:$0xff] }
  0x89   :  { %1601 = vmatpush2.msra.mxu0 %v716_v13  ;;  %1857 = vmatprep.subr.mxu1 %v781_v14  ;;  %v700_v13 = vld [vmem:[%s7116_s1 + $0x560] sm:$0xff]  ;;  %v765_v14 = vld [vmem:[%s7116_s1 + $0x768] sm:$0xff] }
  0x8a   :  { %1224 = vmatprep.mubr.f32.mxu0 %v305_v15  ;;  %1858 = vmatpush2.msra.mxu1 %v780_v16  ;;  %v433_v15 = vld [vmem:[%s7117_s0 + $0xd08] sm:$0xff]  ;;  %v764_v16 = vld [vmem:[%s7116_s1 + $0x760] sm:$0xff] }
  0x8b   :  { %1225 = vmatmul.mubr.f32.gmra.mxu0 %v304_v17  ;;  %1481 = vmatprep.mubr.f32.mxu1 %v307_v18  ;;  %v432_v17 = vld [vmem:[%s7117_s0 + $0xd00] sm:$0xff]  ;;  %v435_v18 = vld [vmem:[%s7117_s0 + $0xd18] sm:$0xff] }
  0x8c   :  { %1602 = vmatprep.subr.mxu0 %v715_v19  ;;  %1482 = vmatmul.mubr.f32.gmra.mxu1 %v306_v20  ;;  %v699_v19 = vld [vmem:[%s7116_s1 + $0x558] sm:$0xff]  ;;  %v434_v20 = vld [vmem:[%s7117_s0 + $0xd10] sm:$0xff] }
  0x8d   :  { %1603 = vmatpush2.msra.mxu0 %v714_v21  ;;  %1859 = vmatprep.subr.mxu1 %v779_v22  ;;  %v698_v21 = vld [vmem:[%s7116_s1 + $0x550] sm:$0xff]  ;;  %v763_v22 = vld [vmem:[%s7116_s1 + $0x758] sm:$0xff] }
  0x8e   :  { %1230 = vmatprep.mubr.f32.mxu0 %v321_v23  ;;  %1860 = vmatpush2.msra.mxu1 %v778_v24  ;;  %v449_v23 = vld [vmem:[%s7117_s0 + $0xd88] sm:$0xff]  ;;  %v762_v24 = vld [vmem:[%s7116_s1 + $0x750] sm:$0xff] }
  0x8f   :  { %1231 = vmatmul.mubr.f32.gmra.mxu0 %v320_v25  ;;  %1487 = vmatprep.mubr.f32.mxu1 %v323_v26  ;;  %v448_v25 = vld [vmem:[%s7117_s0 + $0xd80] sm:$0xff]  ;;  %v451_v26 = vld [vmem:[%s7117_s0 + $0xd98] sm:$0xff] }
  0x90   :  { %1604 = vmatprep.subr.mxu0 %v713_v27  ;;  %1488 = vmatmul.mubr.f32.gmra.mxu1 %v322_v28  ;;  %v697_v27 = vld [vmem:[%s7116_s1 + $0x548] sm:$0xff]  ;;  %v450_v28 = vld [vmem:[%s7117_s0 + $0xd90] sm:$0xff] }
  0x91   :  { %1605 = vmatpush2.msra.mxu0 %v712_v29  ;;  %1861 = vmatprep.subr.mxu1 %v777_v30  ;;  %v696_v29 = vld [vmem:[%s7116_s1 + $0x540] sm:$0xff]  ;;  %v761_v30 = vld [vmem:[%s7116_s1 + $0x748] sm:$0xff] }
  0x92   :  { %1236 = vmatprep.mubr.f32.mxu0 %v337_v31  ;;  %1862 = vmatpush2.msra.mxu1 %v776_v32  ;;  %v465_v31 = vld [vmem:[%s7117_s0 + $0xe08] sm:$0xff]  ;;  %v760_v32 = vld [vmem:[%s7116_s1 + $0x740] sm:$0xff] }
  0x93   :  { %1237 = vmatmul.mubr.f32.gmra.mxu0 %v336_v33  ;;  %1493 = vmatprep.mubr.f32.mxu1 %v339_v34  ;;  %v464_v33 = vld [vmem:[%s7117_s0 + $0xe00] sm:$0xff]  ;;  %v467_v34 = vld [vmem:[%s7117_s0 + $0xe18] sm:$0xff] }
  0x94   :  { %1606 = vmatprep.subr.mxu0 %v711_v35  ;;  %1494 = vmatmul.mubr.f32.gmra.mxu1 %v338_v36  ;;  %v695_v35 = vld [vmem:[%s7116_s1 + $0x538] sm:$0xff]  ;;  %v466_v36 = vld [vmem:[%s7117_s0 + $0xe10] sm:$0xff] }
  0x95   :  { %1607 = vmatpush2.msra.mxu0 %v710_v37  ;;  %1863 = vmatprep.subr.mxu1 %v775_v38  ;;  %v694_v37 = vld [vmem:[%s7116_s1 + $0x530] sm:$0xff]  ;;  %v759_v38 = vld [vmem:[%s7116_s1 + $0x738] sm:$0xff] }
  0x96   :  { %1242 = vmatprep.mubr.f32.mxu0 %v353_v39  ;;  %1864 = vmatpush2.msra.mxu1 %v774_v40  ;;  %v481_v39 = vld [vmem:[%s7117_s0 + $0xe88] sm:$0xff]  ;;  %v758_v40 = vld [vmem:[%s7116_s1 + $0x730] sm:$0xff] }
  0x97   :  { %1243 = vmatmul.mubr.f32.gmra.mxu0 %v352_v41  ;;  %1499 = vmatprep.mubr.f32.mxu1 %v355_v42  ;;  %v480_v41 = vld [vmem:[%s7117_s0 + $0xe80] sm:$0xff]  ;;  %v483_v42 = vld [vmem:[%s7117_s0 + $0xe98] sm:$0xff] }
  0x98   :  { %1608 = vmatprep.subr.mxu0 %v709_v43  ;;  %1500 = vmatmul.mubr.f32.gmra.mxu1 %v354_v44  ;;  %v693_v43 = vld [vmem:[%s7116_s1 + $0x528] sm:$0xff]  ;;  %v482_v44 = vld [vmem:[%s7117_s0 + $0xe90] sm:$0xff] }
  0x99   :  { %1609 = vmatpush2.msra.mxu0 %v708_v45  ;;  %1865 = vmatprep.subr.mxu1 %v773_v46  ;;  %v692_v45 = vld [vmem:[%s7116_s1 + $0x520] sm:$0xff]  ;;  %v757_v46 = vld [vmem:[%s7116_s1 + $0x728] sm:$0xff] }
  0x9a   :  { %1248 = vmatprep.mubr.f32.mxu0 %v369_v47  ;;  %1866 = vmatpush2.msra.mxu1 %v772_v48  ;;  %v497_v47 = vld [vmem:[%s7117_s0 + $0xf08] sm:$0xff]  ;;  %v756_v48 = vld [vmem:[%s7116_s1 + $0x720] sm:$0xff] }
  0x9b   :  { %1249 = vmatmul.mubr.f32.gmra.mxu0 %v368_v49  ;;  %1505 = vmatprep.mubr.f32.mxu1 %v371_v50  ;;  %v496_v49 = vld [vmem:[%s7117_s0 + $0xf00] sm:$0xff]  ;;  %v499_v50 = vld [vmem:[%s7117_s0 + $0xf18] sm:$0xff] }
  0x9c   :  { %1610 = vmatprep.subr.mxu0 %v707_v51  ;;  %1506 = vmatmul.mubr.f32.gmra.mxu1 %v370_v52  ;;  %v691_v51 = vld [vmem:[%s7116_s1 + $0x518] sm:$0xff]  ;;  %v498_v52 = vld [vmem:[%s7117_s0 + $0xf10] sm:$0xff] }
  0x9d   :  { %1611 = vmatpush2.msra.mxu0 %v706_v53  ;;  %1867 = vmatprep.subr.mxu1 %v771_v54  ;;  %v690_v53 = vld [vmem:[%s7116_s1 + $0x510] sm:$0xff]  ;;  %v755_v54 = vld [vmem:[%s7116_s1 + $0x718] sm:$0xff] }
  0x9e   :  { %1254 = vmatprep.mubr.f32.mxu0 %v385_v55  ;;  %1868 = vmatpush2.msra.mxu1 %v770_v56  ;;  %v513_v55 = vld [vmem:[%s7117_s0 + $0xf88] sm:$0xff]  ;;  %v754_v56 = vld [vmem:[%s7116_s1 + $0x710] sm:$0xff] }
  0x9f   :  { %1255 = vmatmul.mubr.f32.gmra.mxu0 %v384_v57  ;;  %1511 = vmatprep.mubr.f32.mxu1 %v387_v58  ;;  %v512_v57 = vld [vmem:[%s7117_s0 + $0xf80] sm:$0xff]  ;;  %v515_v58 = vld [vmem:[%s7117_s0 + $0xf98] sm:$0xff] }
  0xa0   :  { %1612 = vmatprep.subr.mxu0 %v705_v59  ;;  %1512 = vmatmul.mubr.f32.gmra.mxu1 %v386_v60  ;;  %v689_v59 = vld [vmem:[%s7116_s1 + $0x508] sm:$0xff]  ;;  %v514_v60 = vld [vmem:[%s7117_s0 + $0xf90] sm:$0xff] }
  0xa1   :  { %1613 = vmatpush2.msra.mxu0 %v704_v61  ;;  %1869 = vmatprep.subr.mxu1 %v769_v62  ;;  %v688_v61 = vld [vmem:[%s7116_s1 + $0x500] sm:$0xff]  ;;  %v753_v62 = vld [vmem:[%s7116_s1 + $0x708] sm:$0xff] }
  0xa2   :  { %1260 = vmatprep.mubr.f32.mxu0 %v401_v63  ;;  %1870 = vmatpush2.msra.mxu1 %v768_v0  ;;  %v21_v63 = vld [vmem:[%s7117_s0 + $0x28] sm:$0xff]  ;;  %v752_v0 = vld [vmem:[%s7116_s1 + $0x700] sm:$0xff] }
  0xa3   :  { %1261 = vmatmul.mubr.f32.gmra.mxu0 %v400_v1  ;;  %1517 = vmatprep.mubr.f32.mxu1 %v403_v2  ;;  %v20_v1 = vld [vmem:[%s7117_s0 + $0x20] sm:$0xff]  ;;  %v23_v2 = vld [vmem:[%s7117_s0 + $0x38] sm:$0xff] }
  0xa4   :  { %1614 = vmatprep.subr.mxu0 %v703_v3  ;;  %1518 = vmatmul.mubr.f32.gmra.mxu1 %v402_v4  ;;  %v815_v3 = vld [vmem:[%s7116_s1 + $0x8f8] sm:$0xff]  ;;  %v22_v4 = vld [vmem:[%s7117_s0 + $0x30] sm:$0xff] }
  0xa5   :  { %1615 = vmatpush2.msra.mxu0 %v702_v5  ;;  %1871 = vmatprep.subr.mxu1 %v767_v6  ;;  %v814_v5 = vld [vmem:[%s7116_s1 + $0x8f0] sm:$0xff]  ;;  %v879_v6 = vld [vmem:[%s7116_s1 + $0xaf8] sm:$0xff] }
  0xa6   :  { %1266 = vmatprep.mubr.f32.mxu0 %v417_v7  ;;  %1872 = vmatpush2.msra.mxu1 %v766_v8  ;;  %v37_v7 = vld [vmem:[%s7117_s0 + $0xa8] sm:$0xff]  ;;  %v878_v8 = vld [vmem:[%s7116_s1 + $0xaf0] sm:$0xff] }
  0xa7   :  { %1267 = vmatmul.mubr.f32.gmra.mxu0 %v416_v9  ;;  %1523 = vmatprep.mubr.f32.mxu1 %v419_v10  ;;  %v36_v9 = vld [vmem:[%s7117_s0 + $0xa0] sm:$0xff]  ;;  %v39_v10 = vld [vmem:[%s7117_s0 + $0xb8] sm:$0xff] }
  0xa8   :  { %1616 = vmatprep.subr.mxu0 %v701_v11  ;;  %1524 = vmatmul.mubr.f32.gmra.mxu1 %v418_v12  ;;  %v813_v11 = vld [vmem:[%s7116_s1 + $0x8e8] sm:$0xff]  ;;  %v38_v12 = vld [vmem:[%s7117_s0 + $0xb0] sm:$0xff] }
  0xa9   :  { %1617 = vmatpush2.msra.mxu0 %v700_v13  ;;  %1873 = vmatprep.subr.mxu1 %v765_v14  ;;  %v812_v13 = vld [vmem:[%s7116_s1 + $0x8e0] sm:$0xff]  ;;  %v877_v14 = vld [vmem:[%s7116_s1 + $0xae8] sm:$0xff] }
  0xaa   :  { %1272 = vmatprep.mubr.f32.mxu0 %v433_v15  ;;  %1874 = vmatpush2.msra.mxu1 %v764_v16  ;;  %v53_v15 = vld [vmem:[%s7117_s0 + $0x128] sm:$0xff]  ;;  %v876_v16 = vld [vmem:[%s7116_s1 + $0xae0] sm:$0xff] }
  0xab   :  { %1273 = vmatmul.mubr.f32.gmra.mxu0 %v432_v17  ;;  %1529 = vmatprep.mubr.f32.mxu1 %v435_v18  ;;  %v52_v17 = vld [vmem:[%s7117_s0 + $0x120] sm:$0xff]  ;;  %v55_v18 = vld [vmem:[%s7117_s0 + $0x138] sm:$0xff] }
  0xac   :  { %1618 = vmatprep.subr.mxu0 %v699_v19  ;;  %1530 = vmatmul.mubr.f32.gmra.mxu1 %v434_v20  ;;  %v811_v19 = vld [vmem:[%s7116_s1 + $0x8d8] sm:$0xff]  ;;  %v54_v20 = vld [vmem:[%s7117_s0 + $0x130] sm:$0xff] }
  0xad   :  { %1619 = vmatpush2.msra.mxu0 %v698_v21  ;;  %1875 = vmatprep.subr.mxu1 %v763_v22  ;;  %v810_v21 = vld [vmem:[%s7116_s1 + $0x8d0] sm:$0xff]  ;;  %v875_v22 = vld [vmem:[%s7116_s1 + $0xad8] sm:$0xff] }
  0xae   :  { %1278 = vmatprep.mubr.f32.mxu0 %v449_v23  ;;  %1876 = vmatpush2.msra.mxu1 %v762_v24  ;;  %v69_v23 = vld [vmem:[%s7117_s0 + $0x1a8] sm:$0xff]  ;;  %v874_v24 = vld [vmem:[%s7116_s1 + $0xad0] sm:$0xff] }
  0xaf   :  { %1279 = vmatmul.mubr.f32.gmra.mxu0 %v448_v25  ;;  %1535 = vmatprep.mubr.f32.mxu1 %v451_v26  ;;  %v68_v25 = vld [vmem:[%s7117_s0 + $0x1a0] sm:$0xff]  ;;  %v71_v26 = vld [vmem:[%s7117_s0 + $0x1b8] sm:$0xff] }
  0xb0   :  { %1620 = vmatprep.subr.mxu0 %v697_v27  ;;  %1536 = vmatmul.mubr.f32.gmra.mxu1 %v450_v28  ;;  %v809_v27 = vld [vmem:[%s7116_s1 + $0x8c8] sm:$0xff]  ;;  %v70_v28 = vld [vmem:[%s7117_s0 + $0x1b0] sm:$0xff] }
  0xb1   :  { %1621 = vmatpush2.msra.mxu0 %v696_v29  ;;  %1877 = vmatprep.subr.mxu1 %v761_v30  ;;  %v808_v29 = vld [vmem:[%s7116_s1 + $0x8c0] sm:$0xff]  ;;  %v873_v30 = vld [vmem:[%s7116_s1 + $0xac8] sm:$0xff] }
  0xb2   :  { %1284 = vmatprep.mubr.f32.mxu0 %v465_v31  ;;  %1878 = vmatpush2.msra.mxu1 %v760_v32  ;;  %v85_v31 = vld [vmem:[%s7117_s0 + $0x228] sm:$0xff]  ;;  %v872_v32 = vld [vmem:[%s7116_s1 + $0xac0] sm:$0xff] }
  0xb3   :  { %1285 = vmatmul.mubr.f32.gmra.mxu0 %v464_v33  ;;  %1541 = vmatprep.mubr.f32.mxu1 %v467_v34  ;;  %v84_v33 = vld [vmem:[%s7117_s0 + $0x220] sm:$0xff]  ;;  %v87_v34 = vld [vmem:[%s7117_s0 + $0x238] sm:$0xff] }
  0xb4   :  { %1622 = vmatprep.subr.mxu0 %v695_v35  ;;  %1542 = vmatmul.mubr.f32.gmra.mxu1 %v466_v36  ;;  %v807_v35 = vld [vmem:[%s7116_s1 + $0x8b8] sm:$0xff]  ;;  %v86_v36 = vld [vmem:[%s7117_s0 + $0x230] sm:$0xff] }
  0xb5   :  { %1623 = vmatpush2.msra.mxu0 %v694_v37  ;;  %1879 = vmatprep.subr.mxu1 %v759_v38  ;;  %v806_v37 = vld [vmem:[%s7116_s1 + $0x8b0] sm:$0xff]  ;;  %v871_v38 = vld [vmem:[%s7116_s1 + $0xab8] sm:$0xff] }
  0xb6   :  { %1290 = vmatprep.mubr.f32.mxu0 %v481_v39  ;;  %1880 = vmatpush2.msra.mxu1 %v758_v40  ;;  %v101_v39 = vld [vmem:[%s7117_s0 + $0x2a8] sm:$0xff]  ;;  %v870_v40 = vld [vmem:[%s7116_s1 + $0xab0] sm:$0xff] }
  0xb7   :  { %1291 = vmatmul.mubr.f32.gmra.mxu0 %v480_v41  ;;  %1547 = vmatprep.mubr.f32.mxu1 %v483_v42  ;;  %v100_v41 = vld [vmem:[%s7117_s0 + $0x2a0] sm:$0xff]  ;;  %v103_v42 = vld [vmem:[%s7117_s0 + $0x2b8] sm:$0xff] }
  0xb8   :  { %1624 = vmatprep.subr.mxu0 %v693_v43  ;;  %1548 = vmatmul.mubr.f32.gmra.mxu1 %v482_v44  ;;  %v805_v43 = vld [vmem:[%s7116_s1 + $0x8a8] sm:$0xff]  ;;  %v102_v44 = vld [vmem:[%s7117_s0 + $0x2b0] sm:$0xff] }
  0xb9   :  { %1625 = vmatpush2.msra.mxu0 %v692_v45  ;;  %1881 = vmatprep.subr.mxu1 %v757_v46  ;;  %v804_v45 = vld [vmem:[%s7116_s1 + $0x8a0] sm:$0xff]  ;;  %v869_v46 = vld [vmem:[%s7116_s1 + $0xaa8] sm:$0xff] }
  0xba   :  { %1296 = vmatprep.mubr.f32.mxu0 %v497_v47  ;;  %1882 = vmatpush2.msra.mxu1 %v756_v48  ;;  %v117_v47 = vld [vmem:[%s7117_s0 + $0x328] sm:$0xff]  ;;  %v868_v48 = vld [vmem:[%s7116_s1 + $0xaa0] sm:$0xff] }
  0xbb   :  { %1297 = vmatmul.mubr.f32.gmra.mxu0 %v496_v49  ;;  %1553 = vmatprep.mubr.f32.mxu1 %v499_v50  ;;  %v116_v49 = vld [vmem:[%s7117_s0 + $0x320] sm:$0xff]  ;;  %v119_v50 = vld [vmem:[%s7117_s0 + $0x338] sm:$0xff] }
  0xbc   :  { %1626 = vmatprep.subr.mxu0 %v691_v51  ;;  %1554 = vmatmul.mubr.f32.gmra.mxu1 %v498_v52  ;;  %v803_v51 = vld [vmem:[%s7116_s1 + $0x898] sm:$0xff]  ;;  %v118_v52 = vld [vmem:[%s7117_s0 + $0x330] sm:$0xff] }
  0xbd   :  { %1627 = vmatpush2.msra.mxu0 %v690_v53  ;;  %1883 = vmatprep.subr.mxu1 %v755_v54  ;;  %v802_v53 = vld [vmem:[%s7116_s1 + $0x890] sm:$0xff]  ;;  %v867_v54 = vld [vmem:[%s7116_s1 + $0xa98] sm:$0xff] }
  0xbe   :  { %1302 = vmatprep.mubr.f32.mxu0 %v513_v55  ;;  %1884 = vmatpush2.msra.mxu1 %v754_v56  ;;  %v133_v55 = vld [vmem:[%s7117_s0 + $0x3a8] sm:$0xff]  ;;  %v866_v56 = vld [vmem:[%s7116_s1 + $0xa90] sm:$0xff] }
  0xbf   :  { %1303 = vmatmul.mubr.f32.gmra.mxu0 %v512_v57  ;;  %1559 = vmatprep.mubr.f32.mxu1 %v515_v58  ;;  %v132_v57 = vld [vmem:[%s7117_s0 + $0x3a0] sm:$0xff]  ;;  %v135_v58 = vld [vmem:[%s7117_s0 + $0x3b8] sm:$0xff] }
  0xc0   :  { %1628 = vmatprep.subr.mxu0 %v689_v59  ;;  %1560 = vmatmul.mubr.f32.gmra.mxu1 %v514_v60  ;;  %v801_v59 = vld [vmem:[%s7116_s1 + $0x888] sm:$0xff]  ;;  %v134_v60 = vld [vmem:[%s7117_s0 + $0x3b0] sm:$0xff] }
  0xc1   :  { %1629 = vmatpush2.msra.mxu0 %v688_v61  ;;  %1885 = vmatprep.subr.mxu1 %v753_v62  ;;  %v800_v61 = vld [vmem:[%s7116_s1 + $0x880] sm:$0xff]  ;;  %v865_v62 = vld [vmem:[%s7116_s1 + $0xa88] sm:$0xff] }
  0xc2   :  { %1630 = vmatprep.mubr.f32.mxu0 %v21_v63  ;;  %1886 = vmatpush2.msra.mxu1 %v752_v0  ;;  %v149_v63 = vld [vmem:[%s7117_s0 + $0x428] sm:$0xff]  ;;  %v864_v0 = vld [vmem:[%s7116_s1 + $0xa80] sm:$0xff] }
  0xc3   :  { %1631 = vmatmul.mubr.f32.vlgmr.msra.gmra.mxu0 %v20_v1  ;;  %1887 = vmatprep.mubr.f32.mxu1 %v23_v2  ;;  %v148_v1 = vld [vmem:[%s7117_s0 + $0x420] sm:$0xff]  ;;  %v151_v2 = vld [vmem:[%s7117_s0 + $0x438] sm:$0xff] }
  0xc4   :  { %2080 = vmatprep.subr.mxu0 %v815_v3  ;;  %1888 = vmatmul.mubr.f32.vlgmr.msra.gmra.mxu1 %v22_v4  ;;  %v799_v3 = vld [vmem:[%s7116_s1 + $0x878] sm:$0xff]  ;;  %v150_v4 = vld [vmem:[%s7117_s0 + $0x430] sm:$0xff] }
  0xc5   :  { %2081 = vmatpush1.msra.mxu0 %v814_v5  ;;  %2337 = vmatprep.subr.mxu1 %v879_v6  ;;  %v798_v5 = vld [vmem:[%s7116_s1 + $0x870] sm:$0xff]  ;;  %v863_v6 = vld [vmem:[%s7116_s1 + $0xa78] sm:$0xff] }
  0xc6   :  { %1636 = vmatprep.mubr.f32.mxu0 %v37_v7  ;;  %2338 = vmatpush1.msra.mxu1 %v878_v8  ;;  %v165_v7 = vld [vmem:[%s7117_s0 + $0x4a8] sm:$0xff]  ;;  %v862_v8 = vld [vmem:[%s7116_s1 + $0xa70] sm:$0xff] }
  0xc7   :  { %1637 = vmatmul.mubr.f32.gmra.mxu0 %v36_v9  ;;  %1893 = vmatprep.mubr.f32.mxu1 %v39_v10  ;;  %v164_v9 = vld [vmem:[%s7117_s0 + $0x4a0] sm:$0xff]  ;;  %v167_v10 = vld [vmem:[%s7117_s0 + $0x4b8] sm:$0xff] }
  0xc8   :  { %2082 = vmatprep.subr.mxu0 %v813_v11  ;;  %1894 = vmatmul.mubr.f32.gmra.mxu1 %v38_v12  ;;  %v797_v11 = vld [vmem:[%s7116_s1 + $0x868] sm:$0xff]  ;;  %v166_v12 = vld [vmem:[%s7117_s0 + $0x4b0] sm:$0xff] }
  0xc9   :  { %2083 = vmatpush1.msra.mxu0 %v812_v13  ;;  %2339 = vmatprep.subr.mxu1 %v877_v14  ;;  %v796_v13 = vld [vmem:[%s7116_s1 + $0x860] sm:$0xff]  ;;  %v861_v14 = vld [vmem:[%s7116_s1 + $0xa68] sm:$0xff] }
  0xca   :  { %1642 = vmatprep.mubr.f32.mxu0 %v53_v15  ;;  %2340 = vmatpush1.msra.mxu1 %v876_v16  ;;  %v181_v15 = vld [vmem:[%s7117_s0 + $0x528] sm:$0xff]  ;;  %v860_v16 = vld [vmem:[%s7116_s1 + $0xa60] sm:$0xff] }
  0xcb   :  { %1643 = vmatmul.mubr.f32.gmra.mxu0 %v52_v17  ;;  %1899 = vmatprep.mubr.f32.mxu1 %v55_v18  ;;  %v180_v17 = vld [vmem:[%s7117_s0 + $0x520] sm:$0xff]  ;;  %v183_v18 = vld [vmem:[%s7117_s0 + $0x538] sm:$0xff] }
  0xcc   :  { %2084 = vmatprep.subr.mxu0 %v811_v19  ;;  %1900 = vmatmul.mubr.f32.gmra.mxu1 %v54_v20  ;;  %v795_v19 = vld [vmem:[%s7116_s1 + $0x858] sm:$0xff]  ;;  %v182_v20 = vld [vmem:[%s7117_s0 + $0x530] sm:$0xff] }
  0xcd   :  { %2085 = vmatpush1.msra.mxu0 %v810_v21  ;;  %2341 = vmatprep.subr.mxu1 %v875_v22  ;;  %v794_v21 = vld [vmem:[%s7116_s1 + $0x850] sm:$0xff]  ;;  %v859_v22 = vld [vmem:[%s7116_s1 + $0xa58] sm:$0xff] }
  0xce   :  { %1648 = vmatprep.mubr.f32.mxu0 %v69_v23  ;;  %2342 = vmatpush1.msra.mxu1 %v874_v24  ;;  %v197_v23 = vld [vmem:[%s7117_s0 + $0x5a8] sm:$0xff]  ;;  %v858_v24 = vld [vmem:[%s7116_s1 + $0xa50] sm:$0xff] }
  0xcf   :  { %1649 = vmatmul.mubr.f32.gmra.mxu0 %v68_v25  ;;  %1905 = vmatprep.mubr.f32.mxu1 %v71_v26  ;;  %v196_v25 = vld [vmem:[%s7117_s0 + $0x5a0] sm:$0xff]  ;;  %v199_v26 = vld [vmem:[%s7117_s0 + $0x5b8] sm:$0xff] }
  0xd0   :  { %2086 = vmatprep.subr.mxu0 %v809_v27  ;;  %1906 = vmatmul.mubr.f32.gmra.mxu1 %v70_v28  ;;  %v793_v27 = vld [vmem:[%s7116_s1 + $0x848] sm:$0xff]  ;;  %v198_v28 = vld [vmem:[%s7117_s0 + $0x5b0] sm:$0xff] }
  0xd1   :  { %2087 = vmatpush1.msra.mxu0 %v808_v29  ;;  %2343 = vmatprep.subr.mxu1 %v873_v30  ;;  %v792_v29 = vld [vmem:[%s7116_s1 + $0x840] sm:$0xff]  ;;  %v857_v30 = vld [vmem:[%s7116_s1 + $0xa48] sm:$0xff] }
  0xd2   :  { %1654 = vmatprep.mubr.f32.mxu0 %v85_v31  ;;  %2344 = vmatpush1.msra.mxu1 %v872_v32  ;;  %v213_v31 = vld [vmem:[%s7117_s0 + $0x628] sm:$0xff]  ;;  %v856_v32 = vld [vmem:[%s7116_s1 + $0xa40] sm:$0xff] }
  0xd3   :  { %1655 = vmatmul.mubr.f32.gmra.mxu0 %v84_v33  ;;  %1911 = vmatprep.mubr.f32.mxu1 %v87_v34  ;;  %v212_v33 = vld [vmem:[%s7117_s0 + $0x620] sm:$0xff]  ;;  %v215_v34 = vld [vmem:[%s7117_s0 + $0x638] sm:$0xff] }
  0xd4   :  { %2088 = vmatprep.subr.mxu0 %v807_v35  ;;  %1912 = vmatmul.mubr.f32.gmra.mxu1 %v86_v36  ;;  %v791_v35 = vld [vmem:[%s7116_s1 + $0x838] sm:$0xff]  ;;  %v214_v36 = vld [vmem:[%s7117_s0 + $0x630] sm:$0xff] }
  0xd5   :  { %2089 = vmatpush1.msra.mxu0 %v806_v37  ;;  %2345 = vmatprep.subr.mxu1 %v871_v38  ;;  %v790_v37 = vld [vmem:[%s7116_s1 + $0x830] sm:$0xff]  ;;  %v855_v38 = vld [vmem:[%s7116_s1 + $0xa38] sm:$0xff] }
  0xd6   :  { %1660 = vmatprep.mubr.f32.mxu0 %v101_v39  ;;  %2346 = vmatpush1.msra.mxu1 %v870_v40  ;;  %v229_v39 = vld [vmem:[%s7117_s0 + $0x6a8] sm:$0xff]  ;;  %v854_v40 = vld [vmem:[%s7116_s1 + $0xa30] sm:$0xff] }
  0xd7   :  { %1661 = vmatmul.mubr.f32.gmra.mxu0 %v100_v41  ;;  %1917 = vmatprep.mubr.f32.mxu1 %v103_v42  ;;  %v228_v41 = vld [vmem:[%s7117_s0 + $0x6a0] sm:$0xff]  ;;  %v1042_v42 = vlaneseq }
  0xd8   :  { %2090 = vmatprep.subr.mxu0 %v805_v43  ;;  %1918 = vmatmul.mubr.f32.gmra.mxu1 %v102_v44  ;;  %v231_v43 = vld [vmem:[%s7117_s0 + $0x6b8] sm:$0xff]  ;;  %v789_v44 = vld [vmem:[%s7116_s1 + $0x828] sm:$0xff] }
  0xd9   :  { %2091 = vmatpush1.msra.mxu0 %v804_v45  ;;  %2347 = vmatprep.subr.mxu1 %v869_v46  ;;  %v230_v45 = vld [vmem:[%s7117_s0 + $0x6b0] sm:$0xff]  ;;  %v788_v46 = vld [vmem:[%s7116_s1 + $0x820] sm:$0xff] }
  0xda   :  { %1666 = vmatprep.mubr.f32.mxu0 %v117_v47  ;;  %2348 = vmatpush1.msra.mxu1 %v868_v48  ;;  %v853_v47 = vld [vmem:[%s7116_s1 + $0xa28] sm:$0xff] }
  0xdb   :  { %1667 = vmatmul.mubr.f32.gmra.mxu0 %v116_v49  ;;  %1923 = vmatprep.mubr.f32.mxu1 %v119_v50  ;;  %v245_v48 = vld [vmem:[%s7117_s0 + $0x728] sm:$0xff]  ;;  %v852_v49 = vld [vmem:[%s7116_s1 + $0xa20] sm:$0xff] }
  0xdc   :  { %2092 = vmatprep.subr.mxu0 %v803_v51  ;;  %1924 = vmatmul.mubr.f32.gmra.mxu1 %v118_v52  ;;  %v244_v50 = vld [vmem:[%s7117_s0 + $0x720] sm:$0xff]  ;;  %v1043_v51 = vshrl.u32 %v1042_v42, 7  ;;  %v247_v52 = vld [vmem:[%s7117_s0 + $0x738] sm:$0xff]  ;;  %v842_v42 = vld [vmem:[%s7116_s1 + $0x9d0] sm:$0xff] }
  0xdd   :  { %2093 = vmatpush1.msra.mxu0 %v802_v53  ;;  %2349 = vmatprep.subr.mxu1 %v867_v54  ;;  %v787_v53 = vld [vmem:[%s7116_s1 + $0x818] sm:$0xff]  ;;  %v246_v54 = vld [vmem:[%s7117_s0 + $0x730] sm:$0xff] }
  0xde   :  { %1672 = vmatprep.mubr.f32.mxu0 %v133_v55  ;;  %2350 = vmatpush1.msra.mxu1 %v866_v56  ;;  %v786_v55 = vld [vmem:[%s7116_s1 + $0x810] sm:$0xff]  ;;  %v851_v56 = vld [vmem:[%s7116_s1 + $0xa18] sm:$0xff] }
  0xdf   :  { %1673 = vmatmul.mubr.f32.gmra.mxu0 %v132_v57  ;;  %1929 = vmatprep.mubr.f32.mxu1 %v135_v58  ;;  %v261_v57 = vld [vmem:[%s7117_s0 + $0x7a8] sm:$0xff]  ;;  %v850_v58 = vld [vmem:[%s7116_s1 + $0xa10] sm:$0xff] }
  0xe0   :  { %2094 = vmatprep.subr.mxu0 %v801_v59  ;;  %1930 = vmatmul.mubr.f32.gmra.mxu1 %v134_v60  ;;  %v260_v59 = vld [vmem:[%s7117_s0 + $0x7a0] sm:$0xff]  ;;  %v1044_v60 = vsub.s32 0, %v1043_v51 }
  0xe1   :  { %2095 = vmatpush1.msra.mxu0 %v800_v61  ;;  %2351 = vmatprep.subr.mxu1 %v865_v62  ;;  %v263_v61 = vld [vmem:[%s7117_s0 + $0x7b8] sm:$0xff]  ;;  %v785_v62 = vld [vmem:[%s7116_s1 + $0x808] sm:$0xff] }
  0xe2   :  { %1678 = vmatprep.mubr.f32.mxu0 %v149_v63  ;;  %2352 = vmatpush1.msra.mxu1 %v864_v0  ;;  %v1040_v63 = vld [vmem:[%s7118_s2] sm:$0x3]  ;;  %v262_v0 = vld [vmem:[%s7117_s0 + $0x7b0] sm:$0xff] }
  0xe3   :  { %1679 = vmatmul.mubr.f32.gmra.mxu0 %v148_v1  ;;  %1935 = vmatprep.mubr.f32.mxu1 %v151_v2  ;;  %v784_v1 = vld [vmem:[%s7116_s1 + $0x800] sm:$0xff]  ;;  %v1048_v2 = vsub.s32 1, %v1043_v51 }
  0xe4   :  { %2096 = vmatprep.subr.mxu0 %v799_v3  ;;  %1936 = vmatmul.mubr.f32.gmra.mxu1 %v150_v4  ;;  %v849_v3 = vld [vmem:[%s7116_s1 + $0xa08] sm:$0xff] }
  0xe5   :  { %2097 = vmatpush1.msra.mxu0 %v798_v5  ;;  %2353 = vmatprep.subr.mxu1 %v863_v6  ;;  %v277_v4 = vld [vmem:[%s7117_s0 + $0x828] sm:$0xff]  ;;  %v848_v5 = vld [vmem:[%s7116_s1 + $0xa00] sm:$0xff]  ;;  %v4747_v6 = vrot.slane %v1040_v63, %v1044_v60 }
  0xe6   :  { %1684 = vmatprep.mubr.f32.mxu0 %v165_v7  ;;  %2354 = vmatpush1.msra.mxu1 %v862_v8  ;;  %v276_v7 = vld [vmem:[%s7117_s0 + $0x820] sm:$0xff]  ;;  %v279_v8 = vld [vmem:[%s7117_s0 + $0x838] sm:$0xff] }
  0xe7   :  { %1685 = vmatmul.mubr.f32.gmra.mxu0 %v164_v9  ;;  %1941 = vmatprep.mubr.f32.mxu1 %v167_v10  ;;  %v847_v9 = vld [vmem:[%s7116_s1 + $0x9f8] sm:$0xff]  ;;  %v278_v10 = vld [vmem:[%s7117_s0 + $0x830] sm:$0xff] }
  0xe8   :  { %2098 = vmatprep.subr.mxu0 %v797_v11  ;;  %1942 = vmatmul.mubr.f32.gmra.mxu1 %v166_v12  ;;  %v846_v11 = vld [vmem:[%s7116_s1 + $0x9f0] sm:$0xff]  ;;  %v4764_v12 = vrot.slane %v1040_v63, %v1048_v2  ;;  %v340_v2 = vld [vmem:[%s7117_s0 + $0xa20] sm:$0xff] }
  0xe9   :  { %2099 = vmatpush1.msra.mxu0 %v796_v13  ;;  %2355 = vmatprep.subr.mxu1 %v861_v14  ;;  %v911_v14 = vld [vmem:[%s7116_s1 + $0xbf8] sm:$0xff] }
  0xea   :  { %1690 = vmatprep.mubr.f32.mxu0 %v181_v15  ;;  %2356 = vmatpush1.msra.mxu1 %v860_v16  ;;  %v293_v15 = vld [vmem:[%s7117_s0 + $0x8a8] sm:$0xff] }
  0xeb   :  { %1691 = vmatmul.mubr.f32.gmra.mxu0 %v180_v17  ;;  %1947 = vmatprep.mubr.f32.mxu1 %v183_v18  ;;  %v910_v17 = vld [vmem:[%s7116_s1 + $0xbf0] sm:$0xff]  ;;  %v292_v18 = vld [vmem:[%s7117_s0 + $0x8a0] sm:$0xff] }
  0xec   :  { %2100 = vmatprep.subr.mxu0 %v795_v19  ;;  %1948 = vmatmul.mubr.f32.gmra.mxu1 %v182_v20 }
  0xed   :  { %2101 = vmatpush1.msra.mxu0 %v794_v21  ;;  %2357 = vmatprep.subr.mxu1 %v859_v22  ;;  %v295_v21 = vld [vmem:[%s7117_s0 + $0x8b8] sm:$0xff]  ;;  %v845_v22 = vld [vmem:[%s7116_s1 + $0x9e8] sm:$0xff] }
  0xee   :  { %1696 = vmatprep.mubr.f32.mxu0 %v197_v23  ;;  %2358 = vmatpush1.msra.mxu1 %v858_v24 }
  0xef   :  { %1697 = vmatmul.mubr.f32.gmra.mxu0 %v196_v25  ;;  %1953 = vmatprep.mubr.f32.mxu1 %v199_v26  ;;  %v294_v25 = vld [vmem:[%s7117_s0 + $0x8b0] sm:$0xff]  ;;  %v844_v26 = vld [vmem:[%s7116_s1 + $0x9e0] sm:$0xff] }
  0xf0   :  { %2102 = vmatprep.subr.mxu0 %v793_v27  ;;  %1954 = vmatmul.mubr.f32.gmra.mxu1 %v198_v28 }
  0xf1   :  { %2103 = vmatpush1.msra.mxu0 %v792_v29  ;;  %2359 = vmatprep.subr.mxu1 %v857_v30  ;;  %v909_v29 = vld [vmem:[%s7116_s1 + $0xbe8] sm:$0xff] }
  0xf2   :  { %1702 = vmatprep.mubr.f32.mxu0 %v213_v31  ;;  %2360 = vmatpush1.msra.mxu1 %v856_v32  ;;  %v309_v30 = vld [vmem:[%s7117_s0 + $0x928] sm:$0xff] }
  0xf3   :  { %1703 = vmatmul.mubr.f32.gmra.mxu0 %v212_v33  ;;  %1959 = vmatprep.mubr.f32.mxu1 %v215_v34  ;;  %v908_v33 = vld [vmem:[%s7116_s1 + $0xbe0] sm:$0xff] }
  0xf4   :  { %2104 = vmatprep.subr.mxu0 %v791_v35  ;;  %1960 = vmatmul.mubr.f32.gmra.mxu1 %v214_v36  ;;  %v308_v34 = vld [vmem:[%s7117_s0 + $0x920] sm:$0xff] }
  0xf5   :  { %2105 = vmatpush1.msra.mxu0 %v790_v37  ;;  %2361 = vmatprep.subr.mxu1 %v855_v38  ;;  %v311_v37 = vld [vmem:[%s7117_s0 + $0x938] sm:$0xff] }
  0xf6   :  { %1708 = vmatprep.mubr.f32.mxu0 %v229_v39  ;;  %2362 = vmatpush1.msra.mxu1 %v854_v40  ;;  %v843_v38 = vld [vmem:[%s7116_s1 + $0x9d8] sm:$0xff] }
  0xf7   :  { %1709 = vmatmul.mubr.f32.gmra.mxu0 %v228_v41  ;;  %1965 = vmatprep.mubr.f32.mxu1 %v231_v43  ;;  %v310_v41 = vld [vmem:[%s7117_s0 + $0x930] sm:$0xff] }
  0xf8   :  { %2106 = vmatprep.subr.mxu0 %v789_v44  ;;  %1966 = vmatmul.mubr.f32.gmra.mxu1 %v230_v45  ;;  %v907_v45 = vld [vmem:[%s7116_s1 + $0xbd8] sm:$0xff] }
  0xf9   :  { %2107 = vmatpush1.msra.mxu0 %v788_v46  ;;  %2363 = vmatprep.subr.mxu1 %v853_v47  ;;  %v325_v46 = vld [vmem:[%s7117_s0 + $0x9a8] sm:$0xff] }
  0xfa   :  { %1714 = vmatprep.mubr.f32.mxu0 %v245_v48  ;;  %2364 = vmatpush1.msra.mxu1 %v852_v49  ;;  %v906_v49 = vld [vmem:[%s7116_s1 + $0xbd0] sm:$0xff] }
  0xfb   :  { %1715 = vmatmul.mubr.f32.gmra.mxu0 %v244_v50  ;;  %1971 = vmatprep.mubr.f32.mxu1 %v247_v52  ;;  %v324_v50 = vld [vmem:[%s7117_s0 + $0x9a0] sm:$0xff] }
  0xfc   :  { %2108 = vmatprep.subr.mxu0 %v787_v53  ;;  %1972 = vmatmul.mubr.f32.gmra.mxu1 %v246_v54  ;;  %v327_v53 = vld [vmem:[%s7117_s0 + $0x9b8] sm:$0xff]  ;;  %v841_v54 = vld [vmem:[%s7116_s1 + $0x9c8] sm:$0xff] }
  0xfd   :  { %2109 = vmatpush1.msra.mxu0 %v786_v55  ;;  %2365 = vmatprep.subr.mxu1 %v851_v56 }
  0xfe   :  { %1720 = vmatprep.mubr.f32.mxu0 %v261_v57  ;;  %2366 = vmatpush1.msra.mxu1 %v850_v58  ;;  %v326_v57 = vld [vmem:[%s7117_s0 + $0x9b0] sm:$0xff]  ;;  %v840_v58 = vld [vmem:[%s7116_s1 + $0x9c0] sm:$0xff] }
  0xff   :  { %1721 = vmatmul.mubr.f32.gmra.mxu0 %v260_v59  ;;  %1977 = vmatprep.mubr.f32.mxu1 %v263_v61  ;;  %v905_v61 = vld [vmem:[%s7116_s1 + $0xbc8] sm:$0xff] }
 0x100   :  { %2110 = vmatprep.subr.mxu0 %v785_v62  ;;  %1978 = vmatmul.mubr.f32.gmra.mxu1 %v262_v0  ;;  %v341_v62 = vld [vmem:[%s7117_s0 + $0xa28] sm:$0xff] }
 0x101   :  { %2111 = vmatpush1.msra.mxu0 %v784_v1  ;;  %2367 = vmatprep.subr.mxu1 %v849_v3  ;;  %v904_v1 = vld [vmem:[%s7116_s1 + $0xbc0] sm:$0xff] }
 0x102   :  { %1726 = vmatprep.mubr.f32.mxu0 %v277_v4  ;;  %2368 = vmatpush1.msra.mxu1 %v848_v5  ;;  %v1118_v13 = vpop.f32.mrf.mxu0  ;;  %v343_v5 = vld [vmem:[%s7117_s0 + $0xa38] sm:$0xff] }
 0x103   :  { %1727 = vmatmul.mubr.f32.gmra.mxu0 %v276_v7  ;;  %v1119_v16 = vadd.f32 %v1118_v13, %v4747_v6  ;;  %1983 = vmatprep.mubr.f32.mxu1 %v279_v8  ;;  %v839_v7 = vld [vmem:[%s7116_s1 + $0x9b8] sm:$0xff] }
 0x104   :  { %2112 = vmatprep.subr.mxu0 %v847_v9  ;;  %v1375_v19 = vpop.f32.mrf.mxu1  ;;  %1984 = vmatmul.mubr.f32.gmra.mxu1 %v278_v10  ;;  %v1120_v20 = vpop.f32.mrf.mxu0  ;;  %v342_v10 = vld [vmem:[%s7117_s0 + $0xa30] sm:$0xff] }
 0x105   :  { %2113 = vmatpush2.msra.mxu0 %v846_v11  ;;  %v4785_v23 = vadd.f32 %v1375_v19, %v1119_v16  ;;  %v1121_v24 = vadd.f32 %v1120_v20, %v4764_v12  ;;  %2369 = vmatprep.subr.mxu1 %v911_v14  ;;  %v838_v11 = vld [vmem:[%s7116_s1 + $0x9b0] sm:$0xff]  ;;  %v357_v16 = vld [vmem:[%s7117_s0 + $0xaa8] sm:$0xff]  ;;  %v356_v20 = vld [vmem:[%s7117_s0 + $0xaa0] sm:$0xff] }
 0x106   :  { %1732 = vmatprep.mubr.f32.mxu0 %v293_v15  ;;  %v1377_v27 = vpop.f32.mrf.mxu1  ;;  %2370 = vmatpush2.msra.mxu1 %v910_v17  ;;  %v903_v15 = vld [vmem:[%s7116_s1 + $0xbb8] sm:$0xff]  ;;  %v902_v19 = vld [vmem:[%s7116_s1 + $0xbb0] sm:$0xff] }
 0x107   :  { %v1124_v28 = vpop.f32.mrf.mxu0  ;;  %1733 = vmatmul.mubr.f32.gmra.mxu0 %v292_v18  ;;  %v4800_v31 = vadd.f32 %v1377_v27, %v1121_v24  ;;  %1989 = vmatprep.mubr.f32.mxu1 %v295_v21  ;;  %v359_v24 = vld [vmem:[%s7117_s0 + $0xab8] sm:$0xff] }
 0x108   :  { %v1125_v32 = vadd.f32 %v1124_v28, %v4747_v6  ;;  %2114 = vmatprep.subr.mxu0 %v845_v22  ;;  %v1381_v35 = vpop.f32.mrf.mxu1  ;;  %1990 = vmatmul.mubr.f32.gmra.mxu1 %v294_v25  ;;  %v837_v25 = vld [vmem:[%s7116_s1 + $0x9a8] sm:$0xff]  ;;  %v358_v28 = vld [vmem:[%s7117_s0 + $0xab0] sm:$0xff] }
 0x109   :  { %2115 = vmatpush2.msra.mxu0 %v844_v26  ;;  %v1126_v36 = vpop.f32.mrf.mxu0  ;;  %2371 = vmatprep.subr.mxu1 %v909_v29  ;;  %v836_v29 = vld [vmem:[%s7116_s1 + $0x9a0] sm:$0xff] }
 0x10a   :  { %v4815_v39 = vadd.f32 %v1381_v35, %v1125_v32  ;;  %v1127_v40 = vadd.f32 %v1126_v36, %v4764_v12  ;;  %1738 = vmatprep.mubr.f32.mxu0 %v309_v30  ;;  %v1383_v43 = vpop.f32.mrf.mxu1  ;;  %2372 = vmatpush2.msra.mxu1 %v908_v33  ;;  %v901_v33 = vld [vmem:[%s7116_s1 + $0xba8] sm:$0xff] }
 0x10b   :  { %v1130_v44 = vpop.f32.mrf.mxu0  ;;  %1739 = vmatmul.mubr.f32.gmra.mxu0 %v308_v34  ;;  %1995 = vmatprep.mubr.f32.mxu1 %v311_v37  ;;  %v373_v34 = vld [vmem:[%s7117_s0 + $0xb28] sm:$0xff]  ;;  %v900_v37 = vld [vmem:[%s7116_s1 + $0xba0] sm:$0xff] }
 0x10c   :  { %v4830_v47 = vadd.f32 %v1383_v43, %v1127_v40  ;;  %v1131_v48 = vadd.f32 %v1130_v44, %v4747_v6  ;;  %2116 = vmatprep.subr.mxu0 %v843_v38  ;;  %v1387_v51 = vpop.f32.mrf.mxu1  ;;  %1996 = vmatmul.mubr.f32.gmra.mxu1 %v310_v41  ;;  %v372_v38 = vld [vmem:[%s7117_s0 + $0xb20] sm:$0xff]  ;;  %v835_v43 = vld [vmem:[%s7116_s1 + $0x998] sm:$0xff] }
 0x10d   :  { %2117 = vmatpush2.msra.mxu0 %v842_v42  ;;  %v1132_v52 = vpop.f32.mrf.mxu0  ;;  %2373 = vmatprep.subr.mxu1 %v907_v45  ;;  %v375_v42 = vld [vmem:[%s7117_s0 + $0xb38] sm:$0xff] }
 0x10e   :  { %v4845_v55 = vadd.f32 %v1387_v51, %v1131_v48  ;;  %v1133_v56 = vadd.f32 %v1132_v52, %v4764_v12  ;;  %1744 = vmatprep.mubr.f32.mxu0 %v325_v46  ;;  %v1389_v59 = vpop.f32.mrf.mxu1  ;;  %2374 = vmatpush2.msra.mxu1 %v906_v49  ;;  %v374_v46 = vld [vmem:[%s7117_s0 + $0xb30] sm:$0xff]  ;;  %v899_v51 = vld [vmem:[%s7116_s1 + $0xb98] sm:$0xff]  ;;  %v389_v52 = vld [vmem:[%s7117_s0 + $0xba8] sm:$0xff] }
 0x10f   :  { %v1136_v60 = vpop.f32.mrf.mxu0  ;;  %1745 = vmatmul.mubr.f32.gmra.mxu0 %v324_v50  ;;  %2001 = vmatprep.mubr.f32.mxu1 %v327_v53  ;;  %v834_v48 = vld [vmem:[%s7116_s1 + $0x990] sm:$0xff] }
 0x110   :  { %v4860_v63 = vadd.f32 %v1389_v59, %v1133_v56  ;;  %v1137_v0 = vadd.f32 %v1136_v60, %v4747_v6  ;;  %2118 = vmatprep.subr.mxu0 %v841_v54  ;;  %v1393_v3 = vpop.f32.mrf.mxu1  ;;  %2002 = vmatmul.mubr.f32.gmra.mxu1 %v326_v57  ;;  %v898_v56 = vld [vmem:[%s7116_s1 + $0xb90] sm:$0xff]  ;;  %v388_v57 = vld [vmem:[%s7117_s0 + $0xba0] sm:$0xff]  ;;  %v391_v60 = vld [vmem:[%s7117_s0 + $0xbb8] sm:$0xff] }
 0x111   :  { %2119 = vmatpush2.msra.mxu0 %v840_v58  ;;  %v1138_v4 = vpop.f32.mrf.mxu0  ;;  %2375 = vmatprep.subr.mxu1 %v905_v61  ;;  %v833_v61 = vld [vmem:[%s7116_s1 + $0x988] sm:$0xff] }
 0x112   :  { %v4875_v8 = vadd.f32 %v1393_v3, %v1137_v0  ;;  %v1139_v9 = vadd.f32 %v1138_v4, %v4764_v12  ;;  %1750 = vmatprep.mubr.f32.mxu0 %v341_v62  ;;  %v1395_v13 = vpop.f32.mrf.mxu1  ;;  %2376 = vmatpush2.msra.mxu1 %v904_v1  ;;  %v390_v1 = vld [vmem:[%s7117_s0 + $0xbb0] sm:$0xff] }
 0x113   :  { %v1142_v14 = vpop.f32.mrf.mxu0  ;;  %1751 = vmatmul.mubr.f32.gmra.mxu0 %v340_v2  ;;  %2007 = vmatprep.mubr.f32.mxu1 %v343_v5  ;;  %v832_v2 = vld [vmem:[%s7116_s1 + $0x980] sm:$0xff]  ;;  %v897_v5 = vld [vmem:[%s7116_s1 + $0xb88] sm:$0xff] }
 0x114   :  { %v4890_v17 = vadd.f32 %v1395_v13, %v1139_v9  ;;  %v1143_v18 = vadd.f32 %v1142_v14, %v4747_v6  ;;  %2120 = vmatprep.subr.mxu0 %v839_v7  ;;  %v1399_v21 = vpop.f32.mrf.mxu1  ;;  %2008 = vmatmul.mubr.f32.gmra.mxu1 %v342_v10  ;;  %v405_v7 = vld [vmem:[%s7117_s0 + $0xc28] sm:$0xff]  ;;  %v404_v13 = vld [vmem:[%s7117_s0 + $0xc20] sm:$0xff] }
 0x115   :  { %2121 = vmatpush2.msra.mxu0 %v838_v11  ;;  %v1144_v22 = vpop.f32.mrf.mxu0  ;;  %2377 = vmatprep.subr.mxu1 %v903_v15  ;;  %v896_v11 = vld [vmem:[%s7116_s1 + $0xb80] sm:$0xff] }
 0x116   :  { %v4905_v26 = vadd.f32 %v1399_v21, %v1143_v18  ;;  %v1145_v27 = vadd.f32 %v1144_v22, %v4764_v12  ;;  %1756 = vmatprep.mubr.f32.mxu0 %v357_v16  ;;  %v1401_v30 = vpop.f32.mrf.mxu1  ;;  %2378 = vmatpush2.msra.mxu1 %v902_v19  ;;  %v407_v16 = vld [vmem:[%s7117_s0 + $0xc38] sm:$0xff]  ;;  %v406_v21 = vld [vmem:[%s7117_s0 + $0xc30] sm:$0xff] }
 0x117   :  { %v1148_v32 = vpop.f32.mrf.mxu0  ;;  %1757 = vmatmul.mubr.f32.gmra.mxu0 %v356_v20  ;;  %2013 = vmatprep.mubr.f32.mxu1 %v359_v24  ;;  %v831_v18 = vld [vmem:[%s7116_s1 + $0x978] sm:$0xff]  ;;  %v830_v22 = vld [vmem:[%s7116_s1 + $0x970] sm:$0xff] }
 0x118   :  { %v4920_v35 = vadd.f32 %v1401_v30, %v1145_v27  ;;  %v1149_v36 = vadd.f32 %v1148_v32, %v4747_v6  ;;  %2122 = vmatprep.subr.mxu0 %v837_v25  ;;  %v1405_v40 = vpop.f32.mrf.mxu1  ;;  %2014 = vmatmul.mubr.f32.gmra.mxu1 %v358_v28  ;;  %v895_v27 = vld [vmem:[%s7116_s1 + $0xb78] sm:$0xff]  ;;  %v421_v28 = vld [vmem:[%s7117_s0 + $0xca8] sm:$0xff]  ;;  %v894_v32 = vld [vmem:[%s7116_s1 + $0xb70] sm:$0xff] }
 0x119   :  { %2123 = vmatpush2.msra.mxu0 %v836_v29  ;;  %v1150_v41 = vpop.f32.mrf.mxu0  ;;  %2379 = vmatprep.subr.mxu1 %v901_v33  ;;  %v420_v33 = vld [vmem:[%s7117_s0 + $0xca0] sm:$0xff] }
 0x11a   :  { %v4935_v44 = vadd.f32 %v1405_v40, %v1149_v36  ;;  %v1151_v45 = vadd.f32 %v1150_v41, %v4764_v12  ;;  %1762 = vmatprep.mubr.f32.mxu0 %v373_v34  ;;  %v1407_v49 = vpop.f32.mrf.mxu1  ;;  %2380 = vmatpush2.msra.mxu1 %v900_v37  ;;  %v423_v37 = vld [vmem:[%s7117_s0 + $0xcb8] sm:$0xff] }
 0x11b   :  { %v1154_v50 = vpop.f32.mrf.mxu0  ;;  %1763 = vmatmul.mubr.f32.gmra.mxu0 %v372_v38  ;;  %2019 = vmatprep.mubr.f32.mxu1 %v375_v42  ;;  %v829_v38 = vld [vmem:[%s7116_s1 + $0x968] sm:$0xff]  ;;  %v422_v42 = vld [vmem:[%s7117_s0 + $0xcb0] sm:$0xff] }
 0x11c   :  { %v4950_v53 = vadd.f32 %v1407_v49, %v1151_v45  ;;  %v1155_v54 = vadd.f32 %v1154_v50, %v4747_v6  ;;  %2124 = vmatprep.subr.mxu0 %v835_v43  ;;  %v1411_v58 = vpop.f32.mrf.mxu1  ;;  %2020 = vmatmul.mubr.f32.gmra.mxu1 %v374_v46  ;;  %v828_v43 = vld [vmem:[%s7116_s1 + $0x960] sm:$0xff]  ;;  %v437_v49 = vld [vmem:[%s7117_s0 + $0xd28] sm:$0xff] }
 0x11d   :  { %2125 = vmatpush2.msra.mxu0 %v834_v48  ;;  %v1156_v59 = vpop.f32.mrf.mxu0  ;;  %2381 = vmatprep.subr.mxu1 %v899_v51  ;;  %v893_v48 = vld [vmem:[%s7116_s1 + $0xb68] sm:$0xff] }
 0x11e   :  { %v4965_v62 = vadd.f32 %v1411_v58, %v1155_v54  ;;  %v1157_v0 = vadd.f32 %v1156_v59, %v4764_v12  ;;  %1768 = vmatprep.mubr.f32.mxu0 %v389_v52  ;;  %v1413_v3 = vpop.f32.mrf.mxu1  ;;  %2382 = vmatpush2.msra.mxu1 %v898_v56  ;;  %v892_v52 = vld [vmem:[%s7116_s1 + $0xb60] sm:$0xff]  ;;  %v439_v58 = vld [vmem:[%s7117_s0 + $0xd38] sm:$0xff] }
 0x11f   :  { %v1160_v4 = vpop.f32.mrf.mxu0  ;;  %1769 = vmatmul.mubr.f32.gmra.mxu0 %v388_v57  ;;  %2025 = vmatprep.mubr.f32.mxu1 %v391_v60  ;;  %v436_v54 = vld [vmem:[%s7117_s0 + $0xd20] sm:$0xff]  ;;  %v827_v59 = vld [vmem:[%s7116_s1 + $0x958] sm:$0xff] }
 0x120   :  { %v4980_v9 = vadd.f32 %v1413_v3, %v1157_v0  ;;  %v1161_v10 = vadd.f32 %v1160_v4, %v4747_v6  ;;  %2126 = vmatprep.subr.mxu0 %v833_v61  ;;  %v1417_v14 = vpop.f32.mrf.mxu1  ;;  %2026 = vmatmul.mubr.f32.gmra.mxu1 %v390_v1  ;;  %v438_v0 = vld [vmem:[%s7117_s0 + $0xd30] sm:$0xff]  ;;  %v891_v4 = vld [vmem:[%s7116_s1 + $0xb58] sm:$0xff] }
 0x121   :  { %2127 = vmatpush2.msra.mxu0 %v832_v2  ;;  %v1162_v15 = vpop.f32.mrf.mxu0  ;;  %2383 = vmatprep.subr.mxu1 %v897_v5  ;;  %v826_v1 = vld [vmem:[%s7116_s1 + $0x950] sm:$0xff]  ;;  %v453_v5 = vld [vmem:[%s7117_s0 + $0xda8] sm:$0xff] }
 0x122   :  { %v4995_v19 = vadd.f32 %v1417_v14, %v1161_v10  ;;  %v1163_v20 = vadd.f32 %v1162_v15, %v4764_v12  ;;  %1774 = vmatprep.mubr.f32.mxu0 %v405_v7  ;;  %v1419_v24 = vpop.f32.mrf.mxu1  ;;  %2384 = vmatpush2.msra.mxu1 %v896_v11  ;;  %v890_v11 = vld [vmem:[%s7116_s1 + $0xb50] sm:$0xff] }
 0x123   :  { %v1166_v25 = vpop.f32.mrf.mxu0  ;;  %1775 = vmatmul.mubr.f32.gmra.mxu0 %v404_v13  ;;  %2031 = vmatprep.mubr.f32.mxu1 %v407_v16  ;;  %v452_v13 = vld [vmem:[%s7117_s0 + $0xda0] sm:$0xff]  ;;  %v455_v16 = vld [vmem:[%s7117_s0 + $0xdb8] sm:$0xff] }
 0x124   :  { %v5010_v29 = vadd.f32 %v1419_v24, %v1163_v20  ;;  %v1167_v30 = vadd.f32 %v1166_v25, %v4747_v6  ;;  %2128 = vmatprep.subr.mxu0 %v831_v18  ;;  %v1423_v34 = vpop.f32.mrf.mxu1  ;;  %2032 = vmatmul.mubr.f32.gmra.mxu1 %v406_v21  ;;  %v825_v18 = vld [vmem:[%s7116_s1 + $0x948] sm:$0xff]  ;;  %v824_v24 = vld [vmem:[%s7116_s1 + $0x940] sm:$0xff] }
 0x125   :  { %2129 = vmatpush2.msra.mxu0 %v830_v22  ;;  %v1168_v36 = vpop.f32.mrf.mxu0  ;;  %2385 = vmatprep.subr.mxu1 %v895_v27  ;;  %v454_v22 = vld [vmem:[%s7117_s0 + $0xdb0] sm:$0xff] }
 0x126   :  { %v5025_v40 = vadd.f32 %v1423_v34, %v1167_v30  ;;  %v1169_v41 = vadd.f32 %v1168_v36, %v4764_v12  ;;  %1780 = vmatprep.mubr.f32.mxu0 %v421_v28  ;;  %v1425_v45 = vpop.f32.mrf.mxu1  ;;  %2386 = vmatpush2.msra.mxu1 %v894_v32  ;;  %v889_v28 = vld [vmem:[%s7116_s1 + $0xb48] sm:$0xff]  ;;  %v888_v34 = vld [vmem:[%s7116_s1 + $0xb40] sm:$0xff] }
 0x127   :  { %v1172_v46 = vpop.f32.mrf.mxu0  ;;  %1781 = vmatmul.mubr.f32.gmra.mxu0 %v420_v33  ;;  %2037 = vmatprep.mubr.f32.mxu1 %v423_v37  ;;  %v469_v30 = vld [vmem:[%s7117_s0 + $0xe28] sm:$0xff]  ;;  %v468_v36 = vld [vmem:[%s7117_s0 + $0xe20] sm:$0xff] }
 0x128   :  { %v5040_v50 = vadd.f32 %v1425_v45, %v1169_v41  ;;  %v1173_v51 = vadd.f32 %v1172_v46, %v4747_v6  ;;  %2130 = vmatprep.subr.mxu0 %v829_v38  ;;  %v1429_v56 = vpop.f32.mrf.mxu1  ;;  %2038 = vmatmul.mubr.f32.gmra.mxu1 %v422_v42  ;;  %v471_v41 = vld [vmem:[%s7117_s0 + $0xe38] sm:$0xff]  ;;  %v470_v46 = vld [vmem:[%s7117_s0 + $0xe30] sm:$0xff] }
 0x129   :  { %2131 = vmatpush2.msra.mxu0 %v828_v43  ;;  %v1174_v57 = vpop.f32.mrf.mxu0  ;;  %2387 = vmatprep.subr.mxu1 %v893_v48  ;;  %v823_v42 = vld [vmem:[%s7116_s1 + $0x938] sm:$0xff]  ;;  %v822_v48 = vld [vmem:[%s7116_s1 + $0x930] sm:$0xff] }
 0x12a   :  { %v5055_v60 = vadd.f32 %v1429_v56, %v1173_v51  ;;  %v1175_v61 = vadd.f32 %v1174_v57, %v4764_v12  ;;  %1786 = vmatprep.mubr.f32.mxu0 %v437_v49  ;;  %v1431_v2 = vpop.f32.mrf.mxu1  ;;  %2388 = vmatpush2.msra.mxu1 %v892_v52  ;;  %v887_v52 = vld [vmem:[%s7116_s1 + $0xb38] sm:$0xff] }
 0x12b   :  { %v1178_v3 = vpop.f32.mrf.mxu0  ;;  %1787 = vmatmul.mubr.f32.gmra.mxu0 %v436_v54  ;;  %2043 = vmatprep.mubr.f32.mxu1 %v439_v58  ;;  %v485_v54 = vld [vmem:[%s7117_s0 + $0xea8] sm:$0xff]  ;;  %v886_v58 = vld [vmem:[%s7116_s1 + $0xb30] sm:$0xff] }
 0x12c   :  { %v5070_v7 = vadd.f32 %v1431_v2, %v1175_v61  ;;  %v1179_v10 = vadd.f32 %v1178_v3, %v4747_v6  ;;  %2132 = vmatprep.subr.mxu0 %v827_v59  ;;  %v1435_v14 = vpop.f32.mrf.mxu1  ;;  %2044 = vmatmul.mubr.f32.gmra.mxu1 %v438_v0  ;;  %v484_v59 = vld [vmem:[%s7117_s0 + $0xea0] sm:$0xff]  ;;  %v821_v2 = vld [vmem:[%s7116_s1 + $0x928] sm:$0xff] }
 0x12d   :  { %2133 = vmatpush2.msra.mxu0 %v826_v1  ;;  %v1180_v15 = vpop.f32.mrf.mxu0  ;;  %2389 = vmatprep.subr.mxu1 %v891_v4  ;;  %v487_v1 = vld [vmem:[%s7117_s0 + $0xeb8] sm:$0xff] }
 0x12e   :  { %v5085_v20 = vadd.f32 %v1435_v14, %v1179_v10  ;;  %v1181_v21 = vadd.f32 %v1180_v15, %v4764_v12  ;;  %1792 = vmatprep.mubr.f32.mxu0 %v453_v5  ;;  %v1437_v25 = vpop.f32.mrf.mxu1  ;;  %2390 = vmatpush2.msra.mxu1 %v890_v11  ;;  %v486_v5 = vld [vmem:[%s7117_s0 + $0xeb0] sm:$0xff]  ;;  %v820_v10 = vld [vmem:[%s7116_s1 + $0x920] sm:$0xff]  ;;  %v885_v14 = vld [vmem:[%s7116_s1 + $0xb28] sm:$0xff] }
 0x12f   :  { %v1184_v27 = vpop.f32.mrf.mxu0  ;;  %1793 = vmatmul.mubr.f32.gmra.mxu0 %v452_v13  ;;  %2049 = vmatprep.mubr.f32.mxu1 %v455_v16  ;;  %v501_v15 = vld [vmem:[%s7117_s0 + $0xf28] sm:$0xff] }
 0x130   :  { %v5100_v32 = vadd.f32 %v1437_v25, %v1181_v21  ;;  %v1185_v33 = vadd.f32 %v1184_v27, %v4747_v6  ;;  %2134 = vmatprep.subr.mxu0 %v825_v18  ;;  %v1441_v37 = vpop.f32.mrf.mxu1  ;;  %2050 = vmatmul.mubr.f32.gmra.mxu1 %v454_v22  ;;  %v884_v21 = vld [vmem:[%s7116_s1 + $0xb20] sm:$0xff]  ;;  %v503_v27 = vld [vmem:[%s7117_s0 + $0xf38] sm:$0xff] }
 0x131   :  { %2135 = vmatpush2.msra.mxu0 %v824_v24  ;;  %v1186_v38 = vpop.f32.mrf.mxu0  ;;  %2391 = vmatprep.subr.mxu1 %v889_v28  ;;  %v500_v22 = vld [vmem:[%s7117_s0 + $0xf20] sm:$0xff]  ;;  %v819_v28 = vld [vmem:[%s7116_s1 + $0x918] sm:$0xff] }
 0x132   :  { %v5115_v43 = vadd.f32 %v1441_v37, %v1185_v33  ;;  %v1187_v45 = vadd.f32 %v1186_v38, %v4764_v12  ;;  %1798 = vmatprep.mubr.f32.mxu0 %v469_v30  ;;  %v1443_v49 = vpop.f32.mrf.mxu1  ;;  %2392 = vmatpush2.msra.mxu1 %v888_v34  ;;  %v502_v34 = vld [vmem:[%s7117_s0 + $0xf30] sm:$0xff] }
 0x133   :  { %v1190_v51 = vpop.f32.mrf.mxu0  ;;  %1799 = vmatmul.mubr.f32.gmra.mxu0 %v468_v36  ;;  %2055 = vmatprep.mubr.f32.mxu1 %v471_v41  ;;  %v818_v36 = vld [vmem:[%s7116_s1 + $0x910] sm:$0xff]  ;;  %v883_v41 = vld [vmem:[%s7116_s1 + $0xb18] sm:$0xff] }
 0x134   :  { %v5130_v56 = vadd.f32 %v1443_v49, %v1187_v45  ;;  %v1191_v57 = vadd.f32 %v1190_v51, %v4747_v6  ;;  %2136 = vmatprep.subr.mxu0 %v823_v42  ;;  %v1447_v61 = vpop.f32.mrf.mxu1  ;;  %2056 = vmatmul.mubr.f32.gmra.mxu1 %v470_v46  ;;  %v517_v42 = vld [vmem:[%s7117_s0 + $0xfa8] sm:$0xff]  ;;  %v516_v49 = vld [vmem:[%s7117_s0 + $0xfa0] sm:$0xff] }
 0x135   :  { %2137 = vmatpush2.msra.mxu0 %v822_v48  ;;  %v1192_v0 = vpop.f32.mrf.mxu0  ;;  %2393 = vmatprep.subr.mxu1 %v887_v52  ;;  %v882_v48 = vld [vmem:[%s7116_s1 + $0xb10] sm:$0xff] }
 0x136   :  { %v5145_v3 = vadd.f32 %v1447_v61, %v1191_v57  ;;  %v1193_v4 = vadd.f32 %v1192_v0, %v4764_v12  ;;  %1804 = vmatprep.mubr.f32.mxu0 %v485_v54  ;;  %v1449_v11 = vpop.f32.mrf.mxu1  ;;  %2394 = vmatpush2.msra.mxu1 %v886_v58  ;;  %v519_v54 = vld [vmem:[%s7117_s0 + $0xfb8] sm:$0xff]  ;;  %v817_v57 = vld [vmem:[%s7116_s1 + $0x908] sm:$0xff]  ;;  %v518_v61 = vld [vmem:[%s7117_s0 + $0xfb0] sm:$0xff] }
 0x137   :  { %v1196_v13 = vpop.f32.mrf.mxu0  ;;  %1805 = vmatmul.mubr.f32.gmra.mxu0 %v484_v59  ;;  %2061 = vmatprep.mubr.f32.mxu1 %v487_v1  ;;  %v816_v0 = vld [vmem:[%s7116_s1 + $0x900] sm:$0xff] }
 0x138   :  { %v5160_v16 = vadd.f32 %v1449_v11, %v1193_v4  ;;  %v1197_v18 = vadd.f32 %v1196_v13, %v4747_v6  ;;  %2138 = vmatprep.subr.mxu0 %v821_v2  ;;  %v1453_v24 = vpop.f32.mrf.mxu1  ;;  %2062 = vmatmul.mubr.f32.gmra.mxu1 %v486_v5  ;;  %v881_v4 = vld [vmem:[%s7116_s1 + $0xb08] sm:$0xff]  ;;  %v880_v13 = vld [vmem:[%s7116_s1 + $0xb00] sm:$0xff] }
 0x139   :  { %2139 = vmatpush2.msra.mxu0 %v820_v10  ;;  %v1198_v25 = vpop.f32.mrf.mxu0  ;;  %2395 = vmatprep.subr.mxu1 %v885_v14  ;;  %v25_v5 = vld [vmem:[%s7117_s0 + $0x48] sm:$0xff]  ;;  %v24_v14 = vld [vmem:[%s7117_s0 + $0x40] sm:$0xff] }
 0x13a   :  { %v5175_v30 = vadd.f32 %v1453_v24, %v1197_v18  ;;  %v1199_v33 = vadd.f32 %v1198_v25, %v4764_v12  ;;  %1810 = vmatprep.mubr.f32.mxu0 %v501_v15  ;;  %v1455_v37 = vpop.f32.mrf.mxu1  ;;  %2396 = vmatpush2.msra.mxu1 %v884_v21  ;;  %v27_v21 = vld [vmem:[%s7117_s0 + $0x58] sm:$0xff] }
 0x13b   :  { %v1202_v38 = vpop.f32.mrf.mxu0  ;;  %1811 = vmatmul.mubr.f32.gmra.mxu0 %v500_v22  ;;  %2067 = vmatprep.mubr.f32.mxu1 %v503_v27  ;;  %v943_v22 = vld [vmem:[%s7116_s1 + $0xcf8] sm:$0xff]  ;;  %v26_v27 = vld [vmem:[%s7117_s0 + $0x50] sm:$0xff] }
 0x13c   :  { %v5190_v45 = vadd.f32 %v1455_v37, %v1199_v33  ;;  %v1203_v46 = vadd.f32 %v1202_v38, %v4747_v6  ;;  %2140 = vmatprep.subr.mxu0 %v819_v28  ;;  %v1459_v51 = vpop.f32.mrf.mxu1  ;;  %2068 = vmatmul.mubr.f32.gmra.mxu1 %v502_v34  ;;  %v942_v28 = vld [vmem:[%s7116_s1 + $0xcf0] sm:$0xff]  ;;  %v41_v37 = vld [vmem:[%s7117_s0 + $0xc8] sm:$0xff] }
 0x13d   :  { %2141 = vmatpush2.msra.mxu0 %v818_v36  ;;  %v1204_v52 = vpop.f32.mrf.mxu0  ;;  %2397 = vmatprep.subr.mxu1 %v883_v41  ;;  %v1007_v36 = vld [vmem:[%s7116_s1 + $0xef8] sm:$0xff] }
 0x13e   :  { %v5205_v58 = vadd.f32 %v1459_v51, %v1203_v46  ;;  %v1205_v59 = vadd.f32 %v1204_v52, %v4764_v12  ;;  %1816 = vmatprep.mubr.f32.mxu0 %v517_v42  ;;  %v1461_v1 = vpop.f32.mrf.mxu1  ;;  %2398 = vmatpush2.msra.mxu1 %v882_v48  ;;  %v1006_v42 = vld [vmem:[%s7116_s1 + $0xef0] sm:$0xff]  ;;  %v40_v46 = vld [vmem:[%s7117_s0 + $0xc0] sm:$0xff]  ;;  %v43_v51 = vld [vmem:[%s7117_s0 + $0xd8] sm:$0xff] }
 0x13f   :  { %v1208_v2 = vpop.f32.mrf.mxu0  ;;  %1817 = vmatmul.mubr.f32.gmra.mxu0 %v516_v49  ;;  %2073 = vmatprep.mubr.f32.mxu1 %v519_v54  ;;  %v941_v52 = vld [vmem:[%s7116_s1 + $0xce8] sm:$0xff] }
 0x140   :  { %v5220_v10 = vadd.f32 %v1461_v1, %v1205_v59  ;;  %v1209_v11 = vadd.f32 %v1208_v2, %v4747_v6  ;;  %2142 = vmatprep.subr.mxu0 %v817_v57  ;;  %v1465_v15 = vpop.f32.mrf.mxu1  ;;  %2074 = vmatmul.mubr.f32.gmra.mxu1 %v518_v61  ;;  %v42_v59 = vld [vmem:[%s7117_s0 + $0xd0] sm:$0xff]  ;;  %v940_v61 = vld [vmem:[%s7116_s1 + $0xce0] sm:$0xff]  ;;  %v1005_v2 = vld [vmem:[%s7116_s1 + $0xee8] sm:$0xff] }
 0x141   :  { %2143 = vmatpush2.msra.mxu0 %v816_v0  ;;  %v1210_v18 = vpop.f32.mrf.mxu0  ;;  %2399 = vmatprep.subr.mxu1 %v881_v4  ;;  %v57_v4 = vld [vmem:[%s7117_s0 + $0x148] sm:$0xff] }
 0x142   :  { %v5235_v24 = vadd.f32 %v1465_v15, %v1209_v11  ;;  %v1211_v25 = vadd.f32 %v1210_v18, %v4764_v12  ;;  %2144 = vmatprep.mubr.f32.mxu0 %v25_v5  ;;  %v1467_v33 = vpop.f32.mrf.mxu1  ;;  %2400 = vmatpush2.msra.mxu1 %v880_v13  ;;  %v1004_v13 = vld [vmem:[%s7116_s1 + $0xee0] sm:$0xff] }
 0x143   :  { %v1214_v34 = vpop.f32.mrf.mxu0  ;;  %2145 = vmatmul.mubr.f32.vlgmr.msra.gmra.mxu0 %v24_v14  ;;  %2401 = vmatprep.mubr.f32.mxu1 %v27_v21  ;;  %v56_v14 = vld [vmem:[%s7117_s0 + $0x140] sm:$0xff]  ;;  %v59_v21 = vld [vmem:[%s7117_s0 + $0x158] sm:$0xff] }
 0x144   :  { %v5250_v38 = vadd.f32 %v1467_v33, %v1211_v25  ;;  %v1215_v41 = vadd.f32 %v1214_v34, %v4747_v6  ;;  %2594 = vmatprep.subr.mxu0 %v943_v22  ;;  %v1471_v48 = vpop.f32.mrf.mxu1  ;;  %2402 = vmatmul.mubr.f32.vlgmr.msra.gmra.mxu1 %v26_v27  ;;  %v939_v22 = vld [vmem:[%s7116_s1 + $0xcd8] sm:$0xff]  ;;  %v938_v33 = vld [vmem:[%s7116_s1 + $0xcd0] sm:$0xff] }
 0x145   :  { %2595 = vmatpush1.msra.mxu0 %v942_v28  ;;  %v1216_v49 = vpop.f32.mrf.mxu0  ;;  %2851 = vmatprep.subr.mxu1 %v1007_v36  ;;  %v58_v28 = vld [vmem:[%s7117_s0 + $0x150] sm:$0xff] }
 0x146   :  { %v5265_v54 = vadd.f32 %v1471_v48, %v1215_v41  ;;  %v1217_v57 = vadd.f32 %v1216_v49, %v4764_v12  ;;  %2150 = vmatprep.mubr.f32.mxu0 %v41_v37  ;;  %v1473_v0 = vpop.f32.mrf.mxu1  ;;  %2852 = vmatpush1.msra.mxu1 %v1006_v42  ;;  %v1003_v37 = vld [vmem:[%s7116_s1 + $0xed8] sm:$0xff]  ;;  %v73_v41 = vld [vmem:[%s7117_s0 + $0x1c8] sm:$0xff]  ;;  %v1002_v48 = vld [vmem:[%s7116_s1 + $0xed0] sm:$0xff] }
 0x147   :  { %v1220_v1 = vpop.f32.mrf.mxu0  ;;  %2151 = vmatmul.mubr.f32.gmra.mxu0 %v40_v46  ;;  %2407 = vmatprep.mubr.f32.mxu1 %v43_v51  ;;  %v72_v49 = vld [vmem:[%s7117_s0 + $0x1c0] sm:$0xff] }
 0x148   :  { %v5280_v5 = vadd.f32 %v1473_v0, %v1217_v57  ;;  %v1221_v11 = vadd.f32 %v1220_v1, %v4747_v6  ;;  %2596 = vmatprep.subr.mxu0 %v941_v52  ;;  %v1477_v15 = vpop.f32.mrf.mxu1  ;;  %2408 = vmatmul.mubr.f32.gmra.mxu1 %v42_v59  ;;  %v75_v57 = vld [vmem:[%s7117_s0 + $0x1d8] sm:$0xff]  ;;  %v937_v59 = vld [vmem:[%s7116_s1 + $0xcc8] sm:$0xff]  ;;  %v74_v1 = vld [vmem:[%s7117_s0 + $0x1d0] sm:$0xff] }
 0x149   :  { %2597 = vmatpush1.msra.mxu0 %v940_v61  ;;  %v1222_v18 = vpop.f32.mrf.mxu0  ;;  %2853 = vmatprep.subr.mxu1 %v1005_v2  ;;  %v936_v2 = vld [vmem:[%s7116_s1 + $0xcc0] sm:$0xff] }
 0x14a   :  { %v5295_v25 = vadd.f32 %v1477_v15, %v1221_v11  ;;  %v1223_v27 = vadd.f32 %v1222_v18, %v4764_v12  ;;  %2156 = vmatprep.mubr.f32.mxu0 %v57_v4  ;;  %v1479_v34 = vpop.f32.mrf.mxu1  ;;  %2854 = vmatpush1.msra.mxu1 %v1004_v13  ;;  %v1001_v13 = vld [vmem:[%s7116_s1 + $0xec8] sm:$0xff] }
 0x14b   :  { %v1226_v36 = vpop.f32.mrf.mxu0  ;;  %2157 = vmatmul.mubr.f32.gmra.mxu0 %v56_v14  ;;  %2413 = vmatprep.mubr.f32.mxu1 %v59_v21  ;;  %v89_v14 = vld [vmem:[%s7117_s0 + $0x248] sm:$0xff]  ;;  %v1000_v21 = vld [vmem:[%s7116_s1 + $0xec0] sm:$0xff] }
 0x14c   :  { %v5310_v42 = vadd.f32 %v1479_v34, %v1223_v27  ;;  %v1227_v46 = vadd.f32 %v1226_v36, %v4747_v6  ;;  %2598 = vmatprep.subr.mxu0 %v939_v22  ;;  %v1483_v51 = vpop.f32.mrf.mxu1  ;;  %2414 = vmatmul.mubr.f32.gmra.mxu1 %v58_v28  ;;  %v88_v22 = vld [vmem:[%s7117_s0 + $0x240] sm:$0xff]  ;;  %v935_v34 = vld [vmem:[%s7116_s1 + $0xcb8] sm:$0xff] }
 0x14d   :  { %2599 = vmatpush1.msra.mxu0 %v938_v33  ;;  %v1228_v52 = vpop.f32.mrf.mxu0  ;;  %2855 = vmatprep.subr.mxu1 %v1003_v37  ;;  %v91_v33 = vld [vmem:[%s7117_s0 + $0x258] sm:$0xff] }
 0x14e   :  { %v5325_v61 = vadd.f32 %v1483_v51, %v1227_v46  ;;  %v1229_v0 = vadd.f32 %v1228_v52, %v4764_v12  ;;  %2162 = vmatprep.mubr.f32.mxu0 %v73_v41  ;;  %v1485_v4 = vpop.f32.mrf.mxu1  ;;  %2856 = vmatpush1.msra.mxu1 %v1002_v48  ;;  %v90_v41 = vld [vmem:[%s7117_s0 + $0x250] sm:$0xff]  ;;  %v999_v51 = vld [vmem:[%s7116_s1 + $0xeb8] sm:$0xff]  ;;  %v105_v52 = vld [vmem:[%s7117_s0 + $0x2c8] sm:$0xff] }
 0x14f   :  { %v1232_v11 = vpop.f32.mrf.mxu0  ;;  %2163 = vmatmul.mubr.f32.gmra.mxu0 %v72_v49  ;;  %2419 = vmatprep.mubr.f32.mxu1 %v75_v57  ;;  %v934_v46 = vld [vmem:[%s7116_s1 + $0xcb0] sm:$0xff] }
 0x150   :  { %v5340_v15 = vadd.f32 %v1485_v4, %v1229_v0  ;;  %v1233_v18 = vadd.f32 %v1232_v11, %v4747_v6  ;;  %2600 = vmatprep.subr.mxu0 %v937_v59  ;;  %v1489_v27 = vpop.f32.mrf.mxu1  ;;  %2420 = vmatmul.mubr.f32.gmra.mxu1 %v74_v1  ;;  %v998_v0 = vld [vmem:[%s7116_s1 + $0xeb0] sm:$0xff]  ;;  %v104_v1 = vld [vmem:[%s7117_s0 + $0x2c0] sm:$0xff]  ;;  %v107_v11 = vld [vmem:[%s7117_s0 + $0x2d8] sm:$0xff] }
 0x151   :  { %2601 = vmatpush1.msra.mxu0 %v936_v2  ;;  %v1234_v28 = vpop.f32.mrf.mxu0  ;;  %2857 = vmatprep.subr.mxu1 %v1001_v13  ;;  %v933_v13 = vld [vmem:[%s7116_s1 + $0xca8] sm:$0xff] }
 0x152   :  { %v5355_v36 = vadd.f32 %v1489_v27, %v1233_v18  ;;  %v1235_v37 = vadd.f32 %v1234_v28, %v4764_v12  ;;  %2168 = vmatprep.mubr.f32.mxu0 %v89_v14  ;;  %v1491_v48 = vpop.f32.mrf.mxu1  ;;  %2858 = vmatpush1.msra.mxu1 %v1000_v21  ;;  %v106_v21 = vld [vmem:[%s7117_s0 + $0x2d0] sm:$0xff] }
 0x153   :  { %v1238_v49 = vpop.f32.mrf.mxu0  ;;  %2169 = vmatmul.mubr.f32.gmra.mxu0 %v88_v22  ;;  %2425 = vmatprep.mubr.f32.mxu1 %v91_v33  ;;  %v932_v22 = vld [vmem:[%s7116_s1 + $0xca0] sm:$0xff]  ;;  %v997_v33 = vld [vmem:[%s7116_s1 + $0xea8] sm:$0xff] }
 0x154   :  { %v5370_v57 = vadd.f32 %v1491_v48, %v1235_v37  ;;  %v1239_v59 = vadd.f32 %v1238_v49, %v4747_v6  ;;  %2602 = vmatprep.subr.mxu0 %v935_v34  ;;  %v1495_v2 = vpop.f32.mrf.mxu1  ;;  %2426 = vmatmul.mubr.f32.gmra.mxu1 %v90_v41  ;;  %v121_v34 = vld [vmem:[%s7117_s0 + $0x348] sm:$0xff]  ;;  %v120_v48 = vld [vmem:[%s7117_s0 + $0x340] sm:$0xff] }
 0x155   :  { %2603 = vmatpush1.msra.mxu0 %v934_v46  ;;  %v1240_v4 = vpop.f32.mrf.mxu0  ;;  %2859 = vmatprep.subr.mxu1 %v999_v51  ;;  %v996_v46 = vld [vmem:[%s7116_s1 + $0xea0] sm:$0xff] }
 0x156   :  { %v5385_v14 = vadd.f32 %v1495_v2, %v1239_v59  ;;  %v1241_v18 = vadd.f32 %v1240_v4, %v4764_v12  ;;  %2174 = vmatprep.mubr.f32.mxu0 %v105_v52  ;;  %v1497_v27 = vpop.f32.mrf.mxu1  ;;  %2860 = vmatpush1.msra.mxu1 %v998_v0  ;;  %v123_v52 = vld [vmem:[%s7117_s0 + $0x358] sm:$0xff]  ;;  %v122_v2 = vld [vmem:[%s7117_s0 + $0x350] sm:$0xff] }
 0x157   :  { %v1244_v28 = vpop.f32.mrf.mxu0  ;;  %2175 = vmatmul.mubr.f32.gmra.mxu0 %v104_v1  ;;  %2431 = vmatprep.mubr.f32.mxu1 %v107_v11  ;;  %v931_v59 = vld [vmem:[%s7116_s1 + $0xc98] sm:$0xff]  ;;  %v930_v4 = vld [vmem:[%s7116_s1 + $0xc90] sm:$0xff] }
 0x158   :  { %v5400_v37 = vadd.f32 %v1497_v27, %v1241_v18  ;;  %v1245_v41 = vadd.f32 %v1244_v28, %v4747_v6  ;;  %2604 = vmatprep.subr.mxu0 %v933_v13  ;;  %v1501_v49 = vpop.f32.mrf.mxu1  ;;  %2432 = vmatmul.mubr.f32.gmra.mxu1 %v106_v21  ;;  %v995_v18 = vld [vmem:[%s7116_s1 + $0xe98] sm:$0xff]  ;;  %v137_v21 = vld [vmem:[%s7117_s0 + $0x3c8] sm:$0xff]  ;;  %v994_v28 = vld [vmem:[%s7116_s1 + $0xe90] sm:$0xff] }
 0x159   :  { %2605 = vmatpush1.msra.mxu0 %v932_v22  ;;  %v1246_v51 = vpop.f32.mrf.mxu0  ;;  %2861 = vmatprep.subr.mxu1 %v997_v33  ;;  %v136_v33 = vld [vmem:[%s7117_s0 + $0x3c0] sm:$0xff] }
 0x15a   :  { %v5415_v0 = vadd.f32 %v1501_v49, %v1245_v41  ;;  %v1247_v1 = vadd.f32 %v1246_v51, %v4764_v12  ;;  %2180 = vmatprep.mubr.f32.mxu0 %v121_v34  ;;  %v1503_v11 = vpop.f32.mrf.mxu1  ;;  %2862 = vmatpush1.msra.mxu1 %v996_v46  ;;  %v139_v46 = vld [vmem:[%s7117_s0 + $0x3d8] sm:$0xff] }
 0x15b   :  { %v1250_v13 = vpop.f32.mrf.mxu0  ;;  %2181 = vmatmul.mubr.f32.gmra.mxu0 %v120_v48  ;;  %2437 = vmatprep.mubr.f32.mxu1 %v123_v52  ;;  %v929_v48 = vld [vmem:[%s7116_s1 + $0xc88] sm:$0xff]  ;;  %v138_v52 = vld [vmem:[%s7117_s0 + $0x3d0] sm:$0xff] }
 0x15c   :  { %v5430_v22 = vadd.f32 %v1503_v11, %v1247_v1  ;;  %v1251_v27 = vadd.f32 %v1250_v13, %v4747_v6  ;;  %2606 = vmatprep.subr.mxu0 %v931_v59  ;;  %v1507_v34 = vpop.f32.mrf.mxu1  ;;  %2438 = vmatmul.mubr.f32.gmra.mxu1 %v122_v2  ;;  %v928_v59 = vld [vmem:[%s7116_s1 + $0xc80] sm:$0xff]  ;;  %v153_v11 = vld [vmem:[%s7117_s0 + $0x448] sm:$0xff] }
 0x15d   :  { %2607 = vmatpush1.msra.mxu0 %v930_v4  ;;  %v1252_v41 = vpop.f32.mrf.mxu0  ;;  %2863 = vmatprep.subr.mxu1 %v995_v18  ;;  %v993_v4 = vld [vmem:[%s7116_s1 + $0xe88] sm:$0xff] }
 0x15e   :  { %v5445_v49 = vadd.f32 %v1507_v34, %v1251_v27  ;;  %v1253_v51 = vadd.f32 %v1252_v41, %v4764_v12  ;;  %2186 = vmatprep.mubr.f32.mxu0 %v137_v21  ;;  %v1509_v1 = vpop.f32.mrf.mxu1  ;;  %2864 = vmatpush1.msra.mxu1 %v994_v28  ;;  %v992_v21 = vld [vmem:[%s7116_s1 + $0xe80] sm:$0xff]  ;;  %v155_v34 = vld [vmem:[%s7117_s0 + $0x458] sm:$0xff] }
 0x15f   :  { %v1256_v2 = vpop.f32.mrf.mxu0  ;;  %2187 = vmatmul.mubr.f32.gmra.mxu0 %v136_v33  ;;  %2443 = vmatprep.mubr.f32.mxu1 %v139_v46  ;;  %v152_v27 = vld [vmem:[%s7117_s0 + $0x440] sm:$0xff]  ;;  %v927_v41 = vld [vmem:[%s7116_s1 + $0xc78] sm:$0xff] }
 0x160   :  { %v5460_v13 = vadd.f32 %v1509_v1, %v1253_v51  ;;  %v1257_v18 = vadd.f32 %v1256_v2, %v4747_v6  ;;  %2608 = vmatprep.subr.mxu0 %v929_v48  ;;  %v1513_v28 = vpop.f32.mrf.mxu1  ;;  %2444 = vmatmul.mubr.f32.gmra.mxu1 %v138_v52  ;;  %v154_v51 = vld [vmem:[%s7117_s0 + $0x450] sm:$0xff]  ;;  %v991_v2 = vld [vmem:[%s7116_s1 + $0xe78] sm:$0xff] }
 0x161   :  { %2609 = vmatpush1.msra.mxu0 %v928_v59  ;;  %v1258_v33 = vpop.f32.mrf.mxu0  ;;  %2865 = vmatprep.subr.mxu1 %v993_v4  ;;  %v926_v52 = vld [vmem:[%s7116_s1 + $0xc70] sm:$0xff]  ;;  %v169_v4 = vld [vmem:[%s7117_s0 + $0x4c8] sm:$0xff] }
 0x162   :  { %v5475_v46 = vadd.f32 %v1513_v28, %v1257_v18  ;;  %v1259_v48 = vadd.f32 %v1258_v33, %v4764_v12  ;;  %2192 = vmatprep.mubr.f32.mxu0 %v153_v11  ;;  %v1515_v59 = vpop.f32.mrf.mxu1  ;;  %2866 = vmatpush1.msra.mxu1 %v992_v21  ;;  %v990_v21 = vld [vmem:[%s7116_s1 + $0xe70] sm:$0xff] }
 0x163   :  { %v1262_v1 = vpop.f32.mrf.mxu0  ;;  %2193 = vmatmul.mubr.f32.gmra.mxu0 %v152_v27  ;;  %2449 = vmatprep.mubr.f32.mxu1 %v155_v34  ;;  %v168_v27 = vld [vmem:[%s7117_s0 + $0x4c0] sm:$0xff]  ;;  %v925_v34 = vld [vmem:[%s7116_s1 + $0xc68] sm:$0xff] }
 0x164   :  { %v5490_v11 = vadd.f32 %v1515_v59, %v1259_v48  ;;  %v1263_v18 = vadd.f32 %v1262_v1, %v4747_v6  ;;  %2610 = vmatprep.subr.mxu0 %v927_v41  ;;  %v1519_v28 = vpop.f32.mrf.mxu1  ;;  %2450 = vmatmul.mubr.f32.gmra.mxu1 %v154_v51  ;;  %v171_v48 = vld [vmem:[%s7117_s0 + $0x4d8] sm:$0xff]  ;;  %v170_v51 = vld [vmem:[%s7117_s0 + $0x4d0] sm:$0xff] }
 0x165   :  { %2611 = vmatpush1.msra.mxu0 %v926_v52  ;;  %v1264_v33 = vpop.f32.mrf.mxu0  ;;  %2867 = vmatprep.subr.mxu1 %v991_v2  ;;  %v924_v52 = vld [vmem:[%s7116_s1 + $0xc60] sm:$0xff]  ;;  %v185_v2 = vld [vmem:[%s7117_s0 + $0x548] sm:$0xff] }
 0x166   :  { %7121 = vst [vmem:[#allocation2_spill] sm:$0xff] %v5490_v11  ;;  %v5505_v41 = vadd.f32 %v1519_v28, %v1263_v18  ;;  %v1265_v59 = vadd.f32 %v1264_v33, %v4764_v12  ;;  %2198 = vmatprep.mubr.f32.mxu0 %v169_v4  ;;  %v1521_v1 = vpop.f32.mrf.mxu1  ;;  %2868 = vmatpush1.msra.mxu1 %v990_v21  ;;  %v989_v18 = vld [vmem:[%s7116_s1 + $0xe68] sm:$0xff]  ;;  %v988_v21 = vld [vmem:[%s7116_s1 + $0xe60] sm:$0xff] }
 0x167   :  { %v1268_v11 = vpop.f32.mrf.mxu0  ;;  %2199 = vmatmul.mubr.f32.gmra.mxu0 %v168_v27  ;;  %2455 = vmatprep.mubr.f32.mxu1 %v171_v48  ;;  %v184_v27 = vld [vmem:[%s7117_s0 + $0x540] sm:$0xff] }
 0x168   :  { %7122 = vst [vmem:[#allocation3_spill] sm:$0xff] %v5505_v41  ;;  %v5520_v4 = vadd.f32 %v1521_v1, %v1265_v59  ;;  %v1269_v28 = vadd.f32 %v1268_v11, %v4747_v6  ;;  %2612 = vmatprep.subr.mxu0 %v925_v34  ;;  %v1525_v33 = vpop.f32.mrf.mxu1  ;;  %2456 = vmatmul.mubr.f32.gmra.mxu1 %v170_v51  ;;  %v187_v59 = vld [vmem:[%s7117_s0 + $0x558] sm:$0xff]  ;;  %v186_v51 = vld [vmem:[%s7117_s0 + $0x550] sm:$0xff] }
 0x169   :  { %2613 = vmatpush1.msra.mxu0 %v924_v52  ;;  %v1270_v41 = vpop.f32.mrf.mxu0  ;;  %v923_v11 = vld [vmem:[%s7116_s1 + $0xc58] sm:$0xff]  ;;  %2869 = vmatprep.subr.mxu1 %v989_v18  ;;  %v922_v52 = vld [vmem:[%s7116_s1 + $0xc50] sm:$0xff] }
 0x16a   :  { %7123 = vst [vmem:[#allocation4_spill] sm:$0xff] %v5520_v4  ;;  %v5535_v48 = vadd.f32 %v1525_v33, %v1269_v28  ;;  %v1271_v34 = vadd.f32 %v1270_v41, %v4764_v12  ;;  %2204 = vmatprep.mubr.f32.mxu0 %v185_v2  ;;  %v1527_v1 = vpop.f32.mrf.mxu1  ;;  %2870 = vmatpush1.msra.mxu1 %v988_v21  ;;  %v987_v28 = vld [vmem:[%s7116_s1 + $0xe58] sm:$0xff]  ;;  %v201_v41 = vld [vmem:[%s7117_s0 + $0x5c8] sm:$0xff]  ;;  %v986_v21 = vld [vmem:[%s7116_s1 + $0xe50] sm:$0xff] }
 0x16b   :  { %v1274_v4 = vpop.f32.mrf.mxu0  ;;  %2205 = vmatmul.mubr.f32.gmra.mxu0 %v184_v27  ;;  %2461 = vmatprep.mubr.f32.mxu1 %v187_v59  ;;  %v200_v27 = vld [vmem:[%s7117_s0 + $0x5c0] sm:$0xff] }
 0x16c   :  { %7124 = vst [vmem:[#allocation5_spill] sm:$0xff] %v5535_v48  ;;  %v5550_v18 = vadd.f32 %v1527_v1, %v1271_v34  ;;  %v1275_v2 = vadd.f32 %v1274_v4, %v4747_v6  ;;  %2614 = vmatprep.subr.mxu0 %v923_v11  ;;  %v1531_v33 = vpop.f32.mrf.mxu1  ;;  %2462 = vmatmul.mubr.f32.gmra.mxu1 %v186_v51  ;;  %v203_v34 = vld [vmem:[%s7117_s0 + $0x5d8] sm:$0xff]  ;;  %v921_v4 = vld [vmem:[%s7116_s1 + $0xc48] sm:$0xff]  ;;  %v202_v51 = vld [vmem:[%s7117_s0 + $0x5d0] sm:$0xff] }
 0x16d   :  { %2615 = vmatpush1.msra.mxu0 %v922_v52  ;;  %v1276_v48 = vpop.f32.mrf.mxu0  ;;  %2871 = vmatprep.subr.mxu1 %v987_v28  ;;  %v920_v52 = vld [vmem:[%s7116_s1 + $0xc40] sm:$0xff] }
 0x16e   :  { %7125 = vst [vmem:[#allocation6_spill] sm:$0xff] %v5550_v18  ;;  %v5565_v59 = vadd.f32 %v1531_v33, %v1275_v2  ;;  %v1277_v11 = vadd.f32 %v1276_v48, %v4764_v12  ;;  %2210 = vmatprep.mubr.f32.mxu0 %v201_v41  ;;  %v1533_v1 = vpop.f32.mrf.mxu1  ;;  %2872 = vmatpush1.msra.mxu1 %v986_v21  ;;  %v985_v2 = vld [vmem:[%s7116_s1 + $0xe48] sm:$0xff]  ;;  %v984_v21 = vld [vmem:[%s7116_s1 + $0xe40] sm:$0xff] }
 0x16f   :  { %v1280_v18 = vpop.f32.mrf.mxu0  ;;  %2211 = vmatmul.mubr.f32.gmra.mxu0 %v200_v27  ;;  %v217_v48 = vld [vmem:[%s7117_s0 + $0x648] sm:$0xff]  ;;  %2467 = vmatprep.mubr.f32.mxu1 %v203_v34  ;;  %v216_v27 = vld [vmem:[%s7117_s0 + $0x640] sm:$0xff] }
 0x170   :  { %7126 = vst [vmem:[#allocation7_spill] sm:$0xff] %v5565_v59  ;;  %v5580_v28 = vadd.f32 %v1533_v1, %v1277_v11  ;;  %v1281_v41 = vadd.f32 %v1280_v18, %v4747_v6  ;;  %2616 = vmatprep.subr.mxu0 %v921_v4  ;;  %v1537_v33 = vpop.f32.mrf.mxu1  ;;  %2468 = vmatmul.mubr.f32.gmra.mxu1 %v202_v51  ;;  %v219_v11 = vld [vmem:[%s7117_s0 + $0x658] sm:$0xff]  ;;  %v218_v51 = vld [vmem:[%s7117_s0 + $0x650] sm:$0xff] }
 0x171   :  { %2617 = vmatpush1.msra.mxu0 %v920_v52  ;;  %v1282_v59 = vpop.f32.mrf.mxu0  ;;  %v919_v18 = vld [vmem:[%s7116_s1 + $0xc38] sm:$0xff]  ;;  %2873 = vmatprep.subr.mxu1 %v985_v2  ;;  %v918_v52 = vld [vmem:[%s7116_s1 + $0xc30] sm:$0xff] }
 0x172   :  { %7127 = vst [vmem:[#allocation8_spill] sm:$0xff] %v5580_v28  ;;  %v5595_v34 = vadd.f32 %v1537_v33, %v1281_v41  ;;  %v1283_v4 = vadd.f32 %v1282_v59, %v4764_v12  ;;  %2216 = vmatprep.mubr.f32.mxu0 %v217_v48  ;;  %v1539_v1 = vpop.f32.mrf.mxu1  ;;  %2874 = vmatpush1.msra.mxu1 %v984_v21  ;;  %v983_v41 = vld [vmem:[%s7116_s1 + $0xe38] sm:$0xff]  ;;  %v233_v59 = vld [vmem:[%s7117_s0 + $0x6c8] sm:$0xff]  ;;  %v982_v21 = vld [vmem:[%s7116_s1 + $0xe30] sm:$0xff] }
 0x173   :  { %v1286_v28 = vpop.f32.mrf.mxu0  ;;  %2217 = vmatmul.mubr.f32.gmra.mxu0 %v216_v27  ;;  %2473 = vmatprep.mubr.f32.mxu1 %v219_v11  ;;  %v232_v27 = vld [vmem:[%s7117_s0 + $0x6c0] sm:$0xff] }
 0x174   :  { %7128 = vst [vmem:[#allocation9_spill] sm:$0xff] %v5595_v34  ;;  %v5610_v2 = vadd.f32 %v1539_v1, %v1283_v4  ;;  %v1287_v48 = vadd.f32 %v1286_v28, %v4747_v6  ;;  %2618 = vmatprep.subr.mxu0 %v919_v18  ;;  %v1543_v33 = vpop.f32.mrf.mxu1  ;;  %2474 = vmatmul.mubr.f32.gmra.mxu1 %v218_v51  ;;  %v235_v4 = vld [vmem:[%s7117_s0 + $0x6d8] sm:$0xff]  ;;  %v917_v28 = vld [vmem:[%s7116_s1 + $0xc28] sm:$0xff]  ;;  %v234_v51 = vld [vmem:[%s7117_s0 + $0x6d0] sm:$0xff] }
 0x175   :  { %2619 = vmatpush1.msra.mxu0 %v918_v52  ;;  %v1288_v34 = vpop.f32.mrf.mxu0  ;;  %2875 = vmatprep.subr.mxu1 %v983_v41  ;;  %v916_v52 = vld [vmem:[%s7116_s1 + $0xc20] sm:$0xff] }
 0x176   :  { %7129 = vst [vmem:[#allocation10_spill] sm:$0xff] %v5610_v2  ;;  %v5625_v11 = vadd.f32 %v1543_v33, %v1287_v48  ;;  %v1289_v18 = vadd.f32 %v1288_v34, %v4764_v12  ;;  %2222 = vmatprep.mubr.f32.mxu0 %v233_v59  ;;  %v1545_v1 = vpop.f32.mrf.mxu1  ;;  %2876 = vmatpush1.msra.mxu1 %v982_v21  ;;  %v981_v48 = vld [vmem:[%s7116_s1 + $0xe28] sm:$0xff]  ;;  %v980_v21 = vld [vmem:[%s7116_s1 + $0xe20] sm:$0xff] }
 0x177   :  { %v1292_v2 = vpop.f32.mrf.mxu0  ;;  %2223 = vmatmul.mubr.f32.gmra.mxu0 %v232_v27  ;;  %v249_v34 = vld [vmem:[%s7117_s0 + $0x748] sm:$0xff]  ;;  %2479 = vmatprep.mubr.f32.mxu1 %v235_v4  ;;  %v248_v27 = vld [vmem:[%s7117_s0 + $0x740] sm:$0xff] }
 0x178   :  { %7130 = vst [vmem:[#allocation11_spill] sm:$0xff] %v5625_v11  ;;  %v5640_v41 = vadd.f32 %v1545_v1, %v1289_v18  ;;  %v1293_v59 = vadd.f32 %v1292_v2, %v4747_v6  ;;  %2620 = vmatprep.subr.mxu0 %v917_v28  ;;  %v1549_v33 = vpop.f32.mrf.mxu1  ;;  %2480 = vmatmul.mubr.f32.gmra.mxu1 %v234_v51  ;;  %v251_v18 = vld [vmem:[%s7117_s0 + $0x758] sm:$0xff]  ;;  %v250_v51 = vld [vmem:[%s7117_s0 + $0x750] sm:$0xff] }
 0x179   :  { %2621 = vmatpush1.msra.mxu0 %v916_v52  ;;  %v1294_v11 = vpop.f32.mrf.mxu0  ;;  %v915_v2 = vld [vmem:[%s7116_s1 + $0xc18] sm:$0xff]  ;;  %2877 = vmatprep.subr.mxu1 %v981_v48  ;;  %v914_v52 = vld [vmem:[%s7116_s1 + $0xc10] sm:$0xff] }
 0x17a   :  { %7131 = vst [vmem:[#allocation12_spill] sm:$0xff] %v5640_v41  ;;  %v5655_v4 = vadd.f32 %v1549_v33, %v1293_v59  ;;  %v1295_v28 = vadd.f32 %v1294_v11, %v4764_v12  ;;  %2228 = vmatprep.mubr.f32.mxu0 %v249_v34  ;;  %v1551_v1 = vpop.f32.mrf.mxu1  ;;  %2878 = vmatpush1.msra.mxu1 %v980_v21  ;;  %v979_v59 = vld [vmem:[%s7116_s1 + $0xe18] sm:$0xff]  ;;  %v265_v11 = vld [vmem:[%s7117_s0 + $0x7c8] sm:$0xff]  ;;  %v978_v21 = vld [vmem:[%s7116_s1 + $0xe10] sm:$0xff] }
 0x17b   :  { %v1298_v41 = vpop.f32.mrf.mxu0  ;;  %2229 = vmatmul.mubr.f32.gmra.mxu0 %v248_v27  ;;  %2485 = vmatprep.mubr.f32.mxu1 %v251_v18  ;;  %v264_v27 = vld [vmem:[%s7117_s0 + $0x7c0] sm:$0xff] }
 0x17c   :  { %7132 = vst [vmem:[#allocation13_spill] sm:$0xff] %v5655_v4  ;;  %v5670_v48 = vadd.f32 %v1551_v1, %v1295_v28  ;;  %v1299_v34 = vadd.f32 %v1298_v41, %v4747_v6  ;;  %2622 = vmatprep.subr.mxu0 %v915_v2  ;;  %v1555_v33 = vpop.f32.mrf.mxu1  ;;  %2486 = vmatmul.mubr.f32.gmra.mxu1 %v250_v51  ;;  %v267_v28 = vld [vmem:[%s7117_s0 + $0x7d8] sm:$0xff]  ;;  %v913_v41 = vld [vmem:[%s7116_s1 + $0xc08] sm:$0xff]  ;;  %v266_v51 = vld [vmem:[%s7117_s0 + $0x7d0] sm:$0xff] }
 0x17d   :  { %2623 = vmatpush1.msra.mxu0 %v914_v52  ;;  %v1300_v4 = vpop.f32.mrf.mxu0  ;;  %2879 = vmatprep.subr.mxu1 %v979_v59  ;;  %v912_v52 = vld [vmem:[%s7116_s1 + $0xc00] sm:$0xff] }
 0x17e   :  { %7133 = vst [vmem:[#allocation14_spill] sm:$0xff] %v5670_v48  ;;  %v5685_v18 = vadd.f32 %v1555_v33, %v1299_v34  ;;  %v1301_v2 = vadd.f32 %v1300_v4, %v4764_v12  ;;  %2234 = vmatprep.mubr.f32.mxu0 %v265_v11  ;;  %v1557_v1 = vpop.f32.mrf.mxu1  ;;  %2880 = vmatpush1.msra.mxu1 %v978_v21  ;;  %v977_v34 = vld [vmem:[%s7116_s1 + $0xe08] sm:$0xff]  ;;  %v976_v21 = vld [vmem:[%s7116_s1 + $0xe00] sm:$0xff] }
 0x17f   :  { %v1304_v48 = vpop.f32.mrf.mxu0  ;;  %2235 = vmatmul.mubr.f32.gmra.mxu0 %v264_v27  ;;  %v281_v4 = vld [vmem:[%s7117_s0 + $0x848] sm:$0xff]  ;;  %2491 = vmatprep.mubr.f32.mxu1 %v267_v28  ;;  %v280_v27 = vld [vmem:[%s7117_s0 + $0x840] sm:$0xff] }
 0x180   :  { %7134 = vst [vmem:[#allocation15_spill] sm:$0xff] %v5685_v18  ;;  %v5700_v59 = vadd.f32 %v1557_v1, %v1301_v2  ;;  %v1305_v11 = vadd.f32 %v1304_v48, %v4747_v6  ;;  %2624 = vmatprep.subr.mxu0 %v913_v41  ;;  %v1561_v33 = vpop.f32.mrf.mxu1  ;;  %2492 = vmatmul.mubr.f32.gmra.mxu1 %v266_v51  ;;  %v283_v2 = vld [vmem:[%s7117_s0 + $0x858] sm:$0xff]  ;;  %v282_v41 = vld [vmem:[%s7117_s0 + $0x850] sm:$0xff] }
 0x181   :  { %2625 = vmatpush1.msra.mxu0 %v912_v52  ;;  %v1306_v18 = vpop.f32.mrf.mxu0  ;;  %v975_v6 = vld [vmem:[%s7116_s1 + $0xdf8] sm:$0xff]  ;;  %2881 = vmatprep.subr.mxu1 %v977_v34  ;;  %v974_v51 = vld [vmem:[%s7116_s1 + $0xdf0] sm:$0xff] }
 0x182   :  { %v5715_v48 = vadd.f32 %v1561_v33, %v1305_v11  ;;  %v1307_v28 = vadd.f32 %v1306_v18, %v4764_v12  ;;  %2240 = vmatprep.mubr.f32.mxu0 %v281_v4  ;;  %v1563_v52 = vpop.f32.mrf.mxu1  ;;  %2882 = vmatpush1.msra.mxu1 %v976_v21  ;;  %v1039_v11 = vld [vmem:[%s7116_s1 + $0xff8] sm:$0xff]  ;;  %v297_v12 = vld [vmem:[%s7117_s0 + $0x8c8] sm:$0xff]  ;;  %v1038_v4 = vld [vmem:[%s7116_s1 + $0xff0] sm:$0xff] }
 0x183   :  { %v1632_v1 = vpop.f32.mrf.mxu0  ;;  %2241 = vmatmul.mubr.f32.gmra.mxu0 %v280_v27  ;;  %2497 = vmatprep.mubr.f32.mxu1 %v283_v2  ;;  %v296_v21 = vld [vmem:[%s7117_s0 + $0x8c0] sm:$0xff] }
 0x184   :  { %v5730_v18 = vadd.f32 %v1563_v52, %v1307_v28  ;;  %v1633_v34 = vadd.f32 %v1632_v1, %v4785_v23  ;;  %2626 = vmatprep.subr.mxu0 %v975_v6  ;;  %v1889_v27 = vpop.f32.mrf.mxu1  ;;  %2498 = vmatmul.mubr.f32.gmra.mxu1 %v282_v41  ;;  %v299_v28 = vld [vmem:[%s7117_s0 + $0x8d8] sm:$0xff]  ;;  %v973_v23 = vld [vmem:[%s7116_s1 + $0xde8] sm:$0xff]  ;;  %v298_v41 = vld [vmem:[%s7117_s0 + $0x8d0] sm:$0xff] }
 0x185   :  { %2627 = vmatpush2.msra.mxu0 %v974_v51  ;;  %v1634_v33 = vpop.f32.mrf.mxu0  ;;  %2883 = vmatprep.subr.mxu1 %v1039_v11  ;;  %v972_v51 = vld [vmem:[%s7116_s1 + $0xde0] sm:$0xff] }
 0x186   :  { %v5745_v2 = vadd.f32 %v1889_v27, %v1633_v34  ;;  %v1635_v6 = vadd.f32 %v1634_v33, %v4800_v31  ;;  %2246 = vmatprep.mubr.f32.mxu0 %v297_v12  ;;  %v1891_v52 = vpop.f32.mrf.mxu1  ;;  %2884 = vmatpush2.msra.mxu1 %v1038_v4  ;;  %v1037_v34 = vld [vmem:[%s7116_s1 + $0xfe8] sm:$0xff]  ;;  %v1036_v4 = vld [vmem:[%s7116_s1 + $0xfe0] sm:$0xff] }
 0x187   :  { %v1638_v1 = vpop.f32.mrf.mxu0  ;;  %2247 = vmatmul.mubr.f32.gmra.mxu0 %v296_v21  ;;  %v313_v31 = vld [vmem:[%s7117_s0 + $0x948] sm:$0xff]  ;;  %2503 = vmatprep.mubr.f32.mxu1 %v299_v28  ;;  %v312_v21 = vld [vmem:[%s7117_s0 + $0x940] sm:$0xff] }
 0x188   :  { %v5760_v11 = vadd.f32 %v1891_v52, %v1635_v6  ;;  %v1639_v12 = vadd.f32 %v1638_v1, %v4815_v39  ;;  %2628 = vmatprep.subr.mxu0 %v973_v23  ;;  %v1895_v27 = vpop.f32.mrf.mxu1  ;;  %2504 = vmatmul.mubr.f32.gmra.mxu1 %v298_v41  ;;  %v315_v6 = vld [vmem:[%s7117_s0 + $0x958] sm:$0xff]  ;;  %v314_v41 = vld [vmem:[%s7117_s0 + $0x950] sm:$0xff] }
 0x189   :  { %2629 = vmatpush2.msra.mxu0 %v972_v51  ;;  %v1640_v33 = vpop.f32.mrf.mxu0  ;;  %v971_v39 = vld [vmem:[%s7116_s1 + $0xdd8] sm:$0xff]  ;;  %2885 = vmatprep.subr.mxu1 %v1037_v34  ;;  %v970_v51 = vld [vmem:[%s7116_s1 + $0xdd0] sm:$0xff] }
 0x18a   :  { %v5775_v28 = vadd.f32 %v1895_v27, %v1639_v12  ;;  %v1641_v23 = vadd.f32 %v1640_v33, %v4830_v47  ;;  %2252 = vmatprep.mubr.f32.mxu0 %v313_v31  ;;  %v1897_v52 = vpop.f32.mrf.mxu1  ;;  %2886 = vmatpush2.msra.mxu1 %v1036_v4  ;;  %v1035_v12 = vld [vmem:[%s7116_s1 + $0xfd8] sm:$0xff]  ;;  %v329_v47 = vld [vmem:[%s7117_s0 + $0x9c8] sm:$0xff]  ;;  %v1034_v4 = vld [vmem:[%s7116_s1 + $0xfd0] sm:$0xff] }
 0x18b   :  { %v1644_v1 = vpop.f32.mrf.mxu0  ;;  %2253 = vmatmul.mubr.f32.gmra.mxu0 %v312_v21  ;;  %2509 = vmatprep.mubr.f32.mxu1 %v315_v6  ;;  %v328_v21 = vld [vmem:[%s7117_s0 + $0x9c0] sm:$0xff] }
 0x18c   :  { %v5790_v34 = vadd.f32 %v1897_v52, %v1641_v23  ;;  %v1645_v31 = vadd.f32 %v1644_v1, %v4845_v55  ;;  %2630 = vmatprep.subr.mxu0 %v971_v39  ;;  %v1901_v27 = vpop.f32.mrf.mxu1  ;;  %2510 = vmatmul.mubr.f32.gmra.mxu1 %v314_v41  ;;  %v331_v23 = vld [vmem:[%s7117_s0 + $0x9d8] sm:$0xff]  ;;  %v969_v55 = vld [vmem:[%s7116_s1 + $0xdc8] sm:$0xff]  ;;  %v330_v41 = vld [vmem:[%s7117_s0 + $0x9d0] sm:$0xff] }
 0x18d   :  { %2631 = vmatpush2.msra.mxu0 %v970_v51  ;;  %v1646_v33 = vpop.f32.mrf.mxu0  ;;  %2887 = vmatprep.subr.mxu1 %v1035_v12  ;;  %v968_v51 = vld [vmem:[%s7116_s1 + $0xdc0] sm:$0xff] }
 0x18e   :  { %v5805_v6 = vadd.f32 %v1901_v27, %v1645_v31  ;;  %v1647_v39 = vadd.f32 %v1646_v33, %v4860_v63  ;;  %2258 = vmatprep.mubr.f32.mxu0 %v329_v47  ;;  %v1903_v52 = vpop.f32.mrf.mxu1  ;;  %2888 = vmatpush2.msra.mxu1 %v1034_v4  ;;  %v1033_v31 = vld [vmem:[%s7116_s1 + $0xfc8] sm:$0xff]  ;;  %v1032_v4 = vld [vmem:[%s7116_s1 + $0xfc0] sm:$0xff] }
 0x18f   :  { %v1650_v1 = vpop.f32.mrf.mxu0  ;;  %2259 = vmatmul.mubr.f32.gmra.mxu0 %v328_v21  ;;  %v345_v63 = vld [vmem:[%s7117_s0 + $0xa48] sm:$0xff]  ;;  %2515 = vmatprep.mubr.f32.mxu1 %v331_v23  ;;  %v344_v21 = vld [vmem:[%s7117_s0 + $0xa40] sm:$0xff] }
 0x190   :  { %v5820_v12 = vadd.f32 %v1903_v52, %v1647_v39  ;;  %v1651_v47 = vadd.f32 %v1650_v1, %v4875_v8  ;;  %2632 = vmatprep.subr.mxu0 %v969_v55  ;;  %v1907_v27 = vpop.f32.mrf.mxu1  ;;  %2516 = vmatmul.mubr.f32.gmra.mxu1 %v330_v41  ;;  %v347_v39 = vld [vmem:[%s7117_s0 + $0xa58] sm:$0xff]  ;;  %v346_v41 = vld [vmem:[%s7117_s0 + $0xa50] sm:$0xff] }
 0x191   :  { %2633 = vmatpush2.msra.mxu0 %v968_v51  ;;  %v1652_v33 = vpop.f32.mrf.mxu0  ;;  %v967_v8 = vld [vmem:[%s7116_s1 + $0xdb8] sm:$0xff]  ;;  %2889 = vmatprep.subr.mxu1 %v1033_v31  ;;  %v966_v51 = vld [vmem:[%s7116_s1 + $0xdb0] sm:$0xff] }
 0x192   :  { %v5835_v23 = vadd.f32 %v1907_v27, %v1651_v47  ;;  %v1653_v55 = vadd.f32 %v1652_v33, %v4890_v17  ;;  %2264 = vmatprep.mubr.f32.mxu0 %v345_v63  ;;  %v1909_v52 = vpop.f32.mrf.mxu1  ;;  %2890 = vmatpush2.msra.mxu1 %v1032_v4  ;;  %v1031_v47 = vld [vmem:[%s7116_s1 + $0xfb8] sm:$0xff]  ;;  %v361_v17 = vld [vmem:[%s7117_s0 + $0xac8] sm:$0xff]  ;;  %v1030_v4 = vld [vmem:[%s7116_s1 + $0xfb0] sm:$0xff] }
 0x193   :  { %v1656_v1 = vpop.f32.mrf.mxu0  ;;  %2265 = vmatmul.mubr.f32.gmra.mxu0 %v344_v21  ;;  %2521 = vmatprep.mubr.f32.mxu1 %v347_v39  ;;  %v360_v21 = vld [vmem:[%s7117_s0 + $0xac0] sm:$0xff] }
 0x194   :  { %v5850_v31 = vadd.f32 %v1909_v52, %v1653_v55  ;;  %v1657_v63 = vadd.f32 %v1656_v1, %v4905_v26  ;;  %2634 = vmatprep.subr.mxu0 %v967_v8  ;;  %v1913_v27 = vpop.f32.mrf.mxu1  ;;  %2522 = vmatmul.mubr.f32.gmra.mxu1 %v346_v41  ;;  %v363_v55 = vld [vmem:[%s7117_s0 + $0xad8] sm:$0xff]  ;;  %v965_v26 = vld [vmem:[%s7116_s1 + $0xda8] sm:$0xff]  ;;  %v362_v41 = vld [vmem:[%s7117_s0 + $0xad0] sm:$0xff] }
 0x195   :  { %2635 = vmatpush2.msra.mxu0 %v966_v51  ;;  %v1658_v33 = vpop.f32.mrf.mxu0  ;;  %2891 = vmatprep.subr.mxu1 %v1031_v47  ;;  %v964_v51 = vld [vmem:[%s7116_s1 + $0xda0] sm:$0xff] }
 0x196   :  { %v5865_v39 = vadd.f32 %v1913_v27, %v1657_v63  ;;  %v1659_v8 = vadd.f32 %v1658_v33, %v4920_v35  ;;  %2270 = vmatprep.mubr.f32.mxu0 %v361_v17  ;;  %v1915_v52 = vpop.f32.mrf.mxu1  ;;  %2892 = vmatpush2.msra.mxu1 %v1030_v4  ;;  %v1029_v63 = vld [vmem:[%s7116_s1 + $0xfa8] sm:$0xff]  ;;  %v1028_v4 = vld [vmem:[%s7116_s1 + $0xfa0] sm:$0xff] }
 0x197   :  { %v1662_v1 = vpop.f32.mrf.mxu0  ;;  %2271 = vmatmul.mubr.f32.gmra.mxu0 %v360_v21  ;;  %v377_v35 = vld [vmem:[%s7117_s0 + $0xb48] sm:$0xff]  ;;  %2527 = vmatprep.mubr.f32.mxu1 %v363_v55  ;;  %v376_v21 = vld [vmem:[%s7117_s0 + $0xb40] sm:$0xff] }
 0x198   :  { %v5880_v47 = vadd.f32 %v1915_v52, %v1659_v8  ;;  %v1663_v17 = vadd.f32 %v1662_v1, %v4935_v44  ;;  %2636 = vmatprep.subr.mxu0 %v965_v26  ;;  %v1919_v27 = vpop.f32.mrf.mxu1  ;;  %2528 = vmatmul.mubr.f32.gmra.mxu1 %v362_v41  ;;  %v379_v8 = vld [vmem:[%s7117_s0 + $0xb58] sm:$0xff]  ;;  %v378_v41 = vld [vmem:[%s7117_s0 + $0xb50] sm:$0xff] }
 0x199   :  { %2637 = vmatpush2.msra.mxu0 %v964_v51  ;;  %v1664_v33 = vpop.f32.mrf.mxu0  ;;  %v963_v44 = vld [vmem:[%s7116_s1 + $0xd98] sm:$0xff]  ;;  %2893 = vmatprep.subr.mxu1 %v1029_v63  ;;  %v962_v51 = vld [vmem:[%s7116_s1 + $0xd90] sm:$0xff] }
 0x19a   :  { %v5895_v55 = vadd.f32 %v1919_v27, %v1663_v17  ;;  %v1665_v26 = vadd.f32 %v1664_v33, %v4950_v53  ;;  %2276 = vmatprep.mubr.f32.mxu0 %v377_v35  ;;  %v1921_v52 = vpop.f32.mrf.mxu1  ;;  %2894 = vmatpush2.msra.mxu1 %v1028_v4  ;;  %v1027_v17 = vld [vmem:[%s7116_s1 + $0xf98] sm:$0xff]  ;;  %v393_v53 = vld [vmem:[%s7117_s0 + $0xbc8] sm:$0xff]  ;;  %v1026_v4 = vld [vmem:[%s7116_s1 + $0xf90] sm:$0xff] }
 0x19b   :  { %v1668_v1 = vpop.f32.mrf.mxu0  ;;  %2277 = vmatmul.mubr.f32.gmra.mxu0 %v376_v21  ;;  %2533 = vmatprep.mubr.f32.mxu1 %v379_v8  ;;  %v392_v21 = vld [vmem:[%s7117_s0 + $0xbc0] sm:$0xff] }
 0x19c   :  { %v5910_v63 = vadd.f32 %v1921_v52, %v1665_v26  ;;  %v1669_v35 = vadd.f32 %v1668_v1, %v4965_v62  ;;  %2638 = vmatprep.subr.mxu0 %v963_v44  ;;  %v1925_v27 = vpop.f32.mrf.mxu1  ;;  %2534 = vmatmul.mubr.f32.gmra.mxu1 %v378_v41  ;;  %v395_v26 = vld [vmem:[%s7117_s0 + $0xbd8] sm:$0xff]  ;;  %v961_v62 = vld [vmem:[%s7116_s1 + $0xd88] sm:$0xff]  ;;  %v394_v41 = vld [vmem:[%s7117_s0 + $0xbd0] sm:$0xff] }
 0x19d   :  { %2639 = vmatpush2.msra.mxu0 %v962_v51  ;;  %v1670_v33 = vpop.f32.mrf.mxu0  ;;  %2895 = vmatprep.subr.mxu1 %v1027_v17  ;;  %v960_v51 = vld [vmem:[%s7116_s1 + $0xd80] sm:$0xff] }
 0x19e   :  { %v5925_v8 = vadd.f32 %v1925_v27, %v1669_v35  ;;  %v1671_v44 = vadd.f32 %v1670_v33, %v4980_v9  ;;  %2282 = vmatprep.mubr.f32.mxu0 %v393_v53  ;;  %v1927_v52 = vpop.f32.mrf.mxu1  ;;  %2896 = vmatpush2.msra.mxu1 %v1026_v4  ;;  %v1025_v35 = vld [vmem:[%s7116_s1 + $0xf88] sm:$0xff]  ;;  %v1024_v4 = vld [vmem:[%s7116_s1 + $0xf80] sm:$0xff] }
 0x19f   :  { %v1674_v1 = vpop.f32.mrf.mxu0  ;;  %2283 = vmatmul.mubr.f32.gmra.mxu0 %v392_v21  ;;  %v409_v9 = vld [vmem:[%s7117_s0 + $0xc48] sm:$0xff]  ;;  %2539 = vmatprep.mubr.f32.mxu1 %v395_v26  ;;  %v408_v21 = vld [vmem:[%s7117_s0 + $0xc40] sm:$0xff] }
 0x1a0   :  { %v5940_v17 = vadd.f32 %v1927_v52, %v1671_v44  ;;  %v1675_v53 = vadd.f32 %v1674_v1, %v4995_v19  ;;  %2640 = vmatprep.subr.mxu0 %v961_v62  ;;  %v1931_v27 = vpop.f32.mrf.mxu1  ;;  %2540 = vmatmul.mubr.f32.gmra.mxu1 %v394_v41  ;;  %v411_v44 = vld [vmem:[%s7117_s0 + $0xc58] sm:$0xff]  ;;  %v410_v41 = vld [vmem:[%s7117_s0 + $0xc50] sm:$0xff] }
 0x1a1   :  { %2641 = vmatpush2.msra.mxu0 %v960_v51  ;;  %v1676_v33 = vpop.f32.mrf.mxu0  ;;  %v959_v19 = vld [vmem:[%s7116_s1 + $0xd78] sm:$0xff]  ;;  %2897 = vmatprep.subr.mxu1 %v1025_v35  ;;  %v958_v51 = vld [vmem:[%s7116_s1 + $0xd70] sm:$0xff] }
 0x1a2   :  { %v5955_v26 = vadd.f32 %v1931_v27, %v1675_v53  ;;  %v1677_v62 = vadd.f32 %v1676_v33, %v5010_v29  ;;  %2288 = vmatprep.mubr.f32.mxu0 %v409_v9  ;;  %v1933_v52 = vpop.f32.mrf.mxu1  ;;  %2898 = vmatpush2.msra.mxu1 %v1024_v4  ;;  %v1023_v53 = vld [vmem:[%s7116_s1 + $0xf78] sm:$0xff]  ;;  %v425_v29 = vld [vmem:[%s7117_s0 + $0xcc8] sm:$0xff]  ;;  %v1022_v4 = vld [vmem:[%s7116_s1 + $0xf70] sm:$0xff] }
 0x1a3   :  { %v1680_v1 = vpop.f32.mrf.mxu0  ;;  %2289 = vmatmul.mubr.f32.gmra.mxu0 %v408_v21  ;;  %2545 = vmatprep.mubr.f32.mxu1 %v411_v44  ;;  %v424_v21 = vld [vmem:[%s7117_s0 + $0xcc0] sm:$0xff] }
 0x1a4   :  { %v5970_v35 = vadd.f32 %v1933_v52, %v1677_v62  ;;  %v1681_v9 = vadd.f32 %v1680_v1, %v5025_v40  ;;  %2642 = vmatprep.subr.mxu0 %v959_v19  ;;  %v1937_v27 = vpop.f32.mrf.mxu1  ;;  %2546 = vmatmul.mubr.f32.gmra.mxu1 %v410_v41  ;;  %v427_v62 = vld [vmem:[%s7117_s0 + $0xcd8] sm:$0xff]  ;;  %v957_v40 = vld [vmem:[%s7116_s1 + $0xd68] sm:$0xff]  ;;  %v426_v41 = vld [vmem:[%s7117_s0 + $0xcd0] sm:$0xff] }
 0x1a5   :  { %2643 = vmatpush2.msra.mxu0 %v958_v51  ;;  %v1682_v33 = vpop.f32.mrf.mxu0  ;;  %2899 = vmatprep.subr.mxu1 %v1023_v53  ;;  %v956_v51 = vld [vmem:[%s7116_s1 + $0xd60] sm:$0xff] }
 0x1a6   :  { %v5985_v44 = vadd.f32 %v1937_v27, %v1681_v9  ;;  %v1683_v19 = vadd.f32 %v1682_v33, %v5040_v50  ;;  %2294 = vmatprep.mubr.f32.mxu0 %v425_v29  ;;  %v1939_v52 = vpop.f32.mrf.mxu1  ;;  %2900 = vmatpush2.msra.mxu1 %v1022_v4  ;;  %v1021_v9 = vld [vmem:[%s7116_s1 + $0xf68] sm:$0xff]  ;;  %v1020_v4 = vld [vmem:[%s7116_s1 + $0xf60] sm:$0xff] }
 0x1a7   :  { %v1686_v1 = vpop.f32.mrf.mxu0  ;;  %2295 = vmatmul.mubr.f32.gmra.mxu0 %v424_v21  ;;  %v441_v50 = vld [vmem:[%s7117_s0 + $0xd48] sm:$0xff]  ;;  %2551 = vmatprep.mubr.f32.mxu1 %v427_v62  ;;  %v440_v21 = vld [vmem:[%s7117_s0 + $0xd40] sm:$0xff] }
 0x1a8   :  { %v6000_v53 = vadd.f32 %v1939_v52, %v1683_v19  ;;  %v1687_v29 = vadd.f32 %v1686_v1, %v5055_v60  ;;  %2644 = vmatprep.subr.mxu0 %v957_v40  ;;  %v1943_v27 = vpop.f32.mrf.mxu1  ;;  %2552 = vmatmul.mubr.f32.gmra.mxu1 %v426_v41  ;;  %v443_v19 = vld [vmem:[%s7117_s0 + $0xd58] sm:$0xff]  ;;  %v442_v41 = vld [vmem:[%s7117_s0 + $0xd50] sm:$0xff] }
 0x1a9   :  { %2645 = vmatpush2.msra.mxu0 %v956_v51  ;;  %v1688_v33 = vpop.f32.mrf.mxu0  ;;  %v955_v60 = vld [vmem:[%s7116_s1 + $0xd58] sm:$0xff]  ;;  %2901 = vmatprep.subr.mxu1 %v1021_v9  ;;  %v954_v51 = vld [vmem:[%s7116_s1 + $0xd50] sm:$0xff] }
 0x1aa   :  { %v6015_v62 = vadd.f32 %v1943_v27, %v1687_v29  ;;  %v1689_v40 = vadd.f32 %v1688_v33, %v5070_v7  ;;  %2300 = vmatprep.mubr.f32.mxu0 %v441_v50  ;;  %v1945_v52 = vpop.f32.mrf.mxu1  ;;  %2902 = vmatpush2.msra.mxu1 %v1020_v4  ;;  %v1019_v29 = vld [vmem:[%s7116_s1 + $0xf58] sm:$0xff]  ;;  %v457_v7 = vld [vmem:[%s7117_s0 + $0xdc8] sm:$0xff]  ;;  %v1018_v4 = vld [vmem:[%s7116_s1 + $0xf50] sm:$0xff] }
 0x1ab   :  { %v1692_v1 = vpop.f32.mrf.mxu0  ;;  %2301 = vmatmul.mubr.f32.gmra.mxu0 %v440_v21  ;;  %2557 = vmatprep.mubr.f32.mxu1 %v443_v19  ;;  %v456_v21 = vld [vmem:[%s7117_s0 + $0xdc0] sm:$0xff] }
 0x1ac   :  { %v6030_v9 = vadd.f32 %v1945_v52, %v1689_v40  ;;  %v1693_v50 = vadd.f32 %v1692_v1, %v5085_v20  ;;  %2646 = vmatprep.subr.mxu0 %v955_v60  ;;  %v1949_v27 = vpop.f32.mrf.mxu1  ;;  %2558 = vmatmul.mubr.f32.gmra.mxu1 %v442_v41  ;;  %v459_v40 = vld [vmem:[%s7117_s0 + $0xdd8] sm:$0xff]  ;;  %v953_v20 = vld [vmem:[%s7116_s1 + $0xd48] sm:$0xff]  ;;  %v458_v41 = vld [vmem:[%s7117_s0 + $0xdd0] sm:$0xff] }
 0x1ad   :  { %2647 = vmatpush2.msra.mxu0 %v954_v51  ;;  %v1694_v33 = vpop.f32.mrf.mxu0  ;;  %2903 = vmatprep.subr.mxu1 %v1019_v29  ;;  %v952_v51 = vld [vmem:[%s7116_s1 + $0xd40] sm:$0xff] }
 0x1ae   :  { %v6045_v19 = vadd.f32 %v1949_v27, %v1693_v50  ;;  %v1695_v60 = vadd.f32 %v1694_v33, %v5100_v32  ;;  %2306 = vmatprep.mubr.f32.mxu0 %v457_v7  ;;  %v1951_v52 = vpop.f32.mrf.mxu1  ;;  %2904 = vmatpush2.msra.mxu1 %v1018_v4  ;;  %v1017_v50 = vld [vmem:[%s7116_s1 + $0xf48] sm:$0xff]  ;;  %v1016_v4 = vld [vmem:[%s7116_s1 + $0xf40] sm:$0xff] }
 0x1af   :  { %v1698_v1 = vpop.f32.mrf.mxu0  ;;  %2307 = vmatmul.mubr.f32.gmra.mxu0 %v456_v21  ;;  %v473_v32 = vld [vmem:[%s7117_s0 + $0xe48] sm:$0xff]  ;;  %2563 = vmatprep.mubr.f32.mxu1 %v459_v40  ;;  %v472_v21 = vld [vmem:[%s7117_s0 + $0xe40] sm:$0xff] }
 0x1b0   :  { %v6060_v29 = vadd.f32 %v1951_v52, %v1695_v60  ;;  %v1699_v7 = vadd.f32 %v1698_v1, %v5115_v43  ;;  %2648 = vmatprep.subr.mxu0 %v953_v20  ;;  %v1955_v27 = vpop.f32.mrf.mxu1  ;;  %2564 = vmatmul.mubr.f32.gmra.mxu1 %v458_v41  ;;  %v475_v60 = vld [vmem:[%s7117_s0 + $0xe58] sm:$0xff]  ;;  %v474_v41 = vld [vmem:[%s7117_s0 + $0xe50] sm:$0xff] }
 0x1b1   :  { %2649 = vmatpush2.msra.mxu0 %v952_v51  ;;  %v1700_v33 = vpop.f32.mrf.mxu0  ;;  %v951_v43 = vld [vmem:[%s7116_s1 + $0xd38] sm:$0xff]  ;;  %2905 = vmatprep.subr.mxu1 %v1017_v50  ;;  %v950_v51 = vld [vmem:[%s7116_s1 + $0xd30] sm:$0xff] }
 0x1b2   :  { %v6075_v40 = vadd.f32 %v1955_v27, %v1699_v7  ;;  %v1701_v20 = vadd.f32 %v1700_v33, %v5130_v56  ;;  %2312 = vmatprep.mubr.f32.mxu0 %v473_v32  ;;  %v1957_v52 = vpop.f32.mrf.mxu1  ;;  %2906 = vmatpush2.msra.mxu1 %v1016_v4  ;;  %v1015_v7 = vld [vmem:[%s7116_s1 + $0xf38] sm:$0xff]  ;;  %v489_v56 = vld [vmem:[%s7117_s0 + $0xec8] sm:$0xff]  ;;  %v1014_v4 = vld [vmem:[%s7116_s1 + $0xf30] sm:$0xff] }
 0x1b3   :  { %v1704_v1 = vpop.f32.mrf.mxu0  ;;  %2313 = vmatmul.mubr.f32.gmra.mxu0 %v472_v21  ;;  %2569 = vmatprep.mubr.f32.mxu1 %v475_v60  ;;  %v488_v21 = vld [vmem:[%s7117_s0 + $0xec0] sm:$0xff] }
 0x1b4   :  { %v6090_v50 = vadd.f32 %v1957_v52, %v1701_v20  ;;  %v1705_v32 = vadd.f32 %v1704_v1, %v5145_v3  ;;  %2650 = vmatprep.subr.mxu0 %v951_v43  ;;  %v1961_v27 = vpop.f32.mrf.mxu1  ;;  %2570 = vmatmul.mubr.f32.gmra.mxu1 %v474_v41  ;;  %v491_v20 = vld [vmem:[%s7117_s0 + $0xed8] sm:$0xff]  ;;  %v949_v3 = vld [vmem:[%s7116_s1 + $0xd28] sm:$0xff]  ;;  %v490_v41 = vld [vmem:[%s7117_s0 + $0xed0] sm:$0xff] }
 0x1b5   :  { %2651 = vmatpush2.msra.mxu0 %v950_v51  ;;  %v1706_v33 = vpop.f32.mrf.mxu0  ;;  %2907 = vmatprep.subr.mxu1 %v1015_v7  ;;  %v948_v51 = vld [vmem:[%s7116_s1 + $0xd20] sm:$0xff] }
 0x1b6   :  { %v6105_v60 = vadd.f32 %v1961_v27, %v1705_v32  ;;  %v1707_v43 = vadd.f32 %v1706_v33, %v5160_v16  ;;  %2318 = vmatprep.mubr.f32.mxu0 %v489_v56  ;;  %v1963_v52 = vpop.f32.mrf.mxu1  ;;  %2908 = vmatpush2.msra.mxu1 %v1014_v4  ;;  %v1013_v32 = vld [vmem:[%s7116_s1 + $0xf28] sm:$0xff]  ;;  %v1012_v4 = vld [vmem:[%s7116_s1 + $0xf20] sm:$0xff] }
 0x1b7   :  { %v1710_v1 = vpop.f32.mrf.mxu0  ;;  %2319 = vmatmul.mubr.f32.gmra.mxu0 %v488_v21  ;;  %v505_v16 = vld [vmem:[%s7117_s0 + $0xf48] sm:$0xff]  ;;  %2575 = vmatprep.mubr.f32.mxu1 %v491_v20  ;;  %v504_v21 = vld [vmem:[%s7117_s0 + $0xf40] sm:$0xff] }
 0x1b8   :  { %v6120_v7 = vadd.f32 %v1963_v52, %v1707_v43  ;;  %v1711_v56 = vadd.f32 %v1710_v1, %v5175_v30  ;;  %2652 = vmatprep.subr.mxu0 %v949_v3  ;;  %v1967_v27 = vpop.f32.mrf.mxu1  ;;  %2576 = vmatmul.mubr.f32.gmra.mxu1 %v490_v41  ;;  %v507_v43 = vld [vmem:[%s7117_s0 + $0xf58] sm:$0xff]  ;;  %v506_v41 = vld [vmem:[%s7117_s0 + $0xf50] sm:$0xff] }
 0x1b9   :  { %2653 = vmatpush2.msra.mxu0 %v948_v51  ;;  %v1712_v33 = vpop.f32.mrf.mxu0  ;;  %v947_v30 = vld [vmem:[%s7116_s1 + $0xd18] sm:$0xff]  ;;  %2909 = vmatprep.subr.mxu1 %v1013_v32  ;;  %v946_v51 = vld [vmem:[%s7116_s1 + $0xd10] sm:$0xff] }
 0x1ba   :  { %v6135_v20 = vadd.f32 %v1967_v27, %v1711_v56  ;;  %v1713_v3 = vadd.f32 %v1712_v33, %v5190_v45  ;;  %2324 = vmatprep.mubr.f32.mxu0 %v505_v16  ;;  %v1969_v52 = vpop.f32.mrf.mxu1  ;;  %2910 = vmatpush2.msra.mxu1 %v1012_v4  ;;  %v1011_v56 = vld [vmem:[%s7116_s1 + $0xf18] sm:$0xff]  ;;  %v521_v45 = vld [vmem:[%s7117_s0 + $0xfc8] sm:$0xff]  ;;  %v1010_v4 = vld [vmem:[%s7116_s1 + $0xf10] sm:$0xff] }
 0x1bb   :  { %v1716_v1 = vpop.f32.mrf.mxu0  ;;  %2325 = vmatmul.mubr.f32.gmra.mxu0 %v504_v21  ;;  %2581 = vmatprep.mubr.f32.mxu1 %v507_v43  ;;  %v520_v21 = vld [vmem:[%s7117_s0 + $0xfc0] sm:$0xff] }
 0x1bc   :  { %v6150_v32 = vadd.f32 %v1969_v52, %v1713_v3  ;;  %v1717_v16 = vadd.f32 %v1716_v1, %v5205_v58  ;;  %2654 = vmatprep.subr.mxu0 %v947_v30  ;;  %v1973_v27 = vpop.f32.mrf.mxu1  ;;  %2582 = vmatmul.mubr.f32.gmra.mxu1 %v506_v41  ;;  %v523_v3 = vld [vmem:[%s7117_s0 + $0xfd8] sm:$0xff]  ;;  %v945_v58 = vld [vmem:[%s7116_s1 + $0xd08] sm:$0xff]  ;;  %v522_v41 = vld [vmem:[%s7117_s0 + $0xfd0] sm:$0xff] }
 0x1bd   :  { %2655 = vmatpush2.msra.mxu0 %v946_v51  ;;  %v1718_v33 = vpop.f32.mrf.mxu0  ;;  %2911 = vmatprep.subr.mxu1 %v1011_v56  ;;  %v944_v51 = vld [vmem:[%s7116_s1 + $0xd00] sm:$0xff] }
 0x1be   :  { %v6165_v43 = vadd.f32 %v1973_v27, %v1717_v16  ;;  %v1719_v30 = vadd.f32 %v1718_v33, %v5220_v10  ;;  %2330 = vmatprep.mubr.f32.mxu0 %v521_v45  ;;  %v1975_v52 = vpop.f32.mrf.mxu1  ;;  %2912 = vmatpush2.msra.mxu1 %v1010_v4  ;;  %v1009_v16 = vld [vmem:[%s7116_s1 + $0xf08] sm:$0xff]  ;;  %v1008_v4 = vld [vmem:[%s7116_s1 + $0xf00] sm:$0xff] }
 0x1bf   :  { %v1722_v1 = vpop.f32.mrf.mxu0  ;;  %2331 = vmatmul.mubr.f32.gmra.mxu0 %v520_v21  ;;  %v29_v10 = vld [vmem:[%s7117_s0 + $0x68] sm:$0xff]  ;;  %2587 = vmatprep.mubr.f32.mxu1 %v523_v3  ;;  %v28_v21 = vld [vmem:[%s7117_s0 + $0x60] sm:$0xff] }
 0x1c0   :  { %v6180_v56 = vadd.f32 %v1975_v52, %v1719_v30  ;;  %v1723_v45 = vadd.f32 %v1722_v1, %v5235_v24  ;;  %2656 = vmatprep.subr.mxu0 %v945_v58  ;;  %v1979_v27 = vpop.f32.mrf.mxu1  ;;  %2588 = vmatmul.mubr.f32.gmra.mxu1 %v522_v41  ;;  %v31_v30 = vld [vmem:[%s7117_s0 + $0x78] sm:$0xff]  ;;  %v45_v24 = vld [vmem:[%s7117_s0 + $0xe8] sm:$0xff]  ;;  %v30_v41 = vld [vmem:[%s7117_s0 + $0x70] sm:$0xff] }
 0x1c1   :  { %2657 = vmatpush2.msra.mxu0 %v944_v51  ;;  %v1724_v33 = vpop.f32.mrf.mxu0  ;;  %2913 = vmatprep.subr.mxu1 %v1009_v16  ;;  %v47_v1 = vld [vmem:[%s7117_s0 + $0xf8] sm:$0xff] }
 0x1c2   :  { %7135 = vst [vmem:[#allocation16_spill] sm:$0xff] %v6180_v56  ;;  %v6195_v3 = vadd.f32 %v1979_v27, %v1723_v45  ;;  %v1725_v58 = vadd.f32 %v1724_v33, %v5250_v38  ;;  %2658 = vmatprep.mubr.f32.mxu0 %v29_v10  ;;  %v1981_v51 = vpop.f32.mrf.mxu1  ;;  %2914 = vmatpush2.msra.mxu1 %v1008_v4  ;;  %v44_v38 = vld [vmem:[%s7117_s0 + $0xe0] sm:$0xff]  ;;  %v61_v4 = vld [vmem:[%s7117_s0 + $0x168] sm:$0xff] }
 0x1c3   :  { %v1728_v52 = vpop.f32.mrf.mxu0  ;;  %2659 = vmatmul.mubr.f32.vlgmr.msra.gmra.mxu0 %v28_v21  ;;  %2915 = vmatprep.mubr.f32.mxu1 %v31_v30 }
 0x1c4   :  { %v6204_v56 = vadd.f32 %v1981_v51, %v1725_v58  ;;  %v1729_v45 = vadd.f32 %v1728_v52, %v5265_v54  ;;  %2664 = vmatprep.mubr.f32.mxu0 %v45_v24  ;;  %v1985_v16 = vpop.f32.mrf.mxu1  ;;  %2916 = vmatmul.mubr.f32.vlgmr.msra.gmra.mxu1 %v30_v41  ;;  %v46_v54 = vld [vmem:[%s7117_s0 + $0xf0] sm:$0xff]  ;;  %v63_v24 = vld [vmem:[%s7117_s0 + $0x178] sm:$0xff] }
 0x1c5   :  { %v1730_v10 = vpop.f32.mrf.mxu0  ;;  %2921 = vmatprep.mubr.f32.mxu1 %v47_v1  ;;  %v77_v1 = vld [vmem:[%s7117_s0 + $0x1e8] sm:$0xff] }
 0x1c6   :  { %v6213_v21 = vadd.f32 %v1985_v16, %v1729_v45  ;;  %v1731_v27 = vadd.f32 %v1730_v10, %v5280_v5  ;;  %v1987_v33 = vpop.f32.mrf.mxu1  ;;  %v60_v5 = vld [vmem:[%s7117_s0 + $0x160] sm:$0xff] }
 0x1c7   :  { %v1734_v30 = vpop.f32.mrf.mxu0  ;;  %2665 = vmatmul.mubr.f32.gmra.mxu0 %v44_v38 }
 0x1c8   :  { %v6222_v58 = vadd.f32 %v1987_v33, %v1731_v27  ;;  %v1735_v41 = vadd.f32 %v1734_v30, %v5295_v25  ;;  %2670 = vmatprep.mubr.f32.mxu0 %v61_v4  ;;  %v1991_v51 = vpop.f32.mrf.mxu1  ;;  %2922 = vmatmul.mubr.f32.gmra.mxu1 %v46_v54  ;;  %v62_v25 = vld [vmem:[%s7117_s0 + $0x170] sm:$0xff]  ;;  %v79_v4 = vld [vmem:[%s7117_s0 + $0x1f8] sm:$0xff] }
 0x1c9   :  { %v1736_v52 = vpop.f32.mrf.mxu0  ;;  %2927 = vmatprep.mubr.f32.mxu1 %v63_v24  ;;  %v93_v24 = vld [vmem:[%s7117_s0 + $0x268] sm:$0xff] }
 0x1ca   :  { %v6231_v45 = vadd.f32 %v1991_v51, %v1735_v41  ;;  %v1737_v38 = vadd.f32 %v1736_v52, %v5310_v42  ;;  %v1993_v16 = vpop.f32.mrf.mxu1  ;;  %v76_v42 = vld [vmem:[%s7117_s0 + $0x1e0] sm:$0xff] }
 0x1cb   :  { %v1740_v10 = vpop.f32.mrf.mxu0  ;;  %2671 = vmatmul.mubr.f32.gmra.mxu0 %v60_v5 }
 0x1cc   :  { %v6240_v27 = vadd.f32 %v1993_v16, %v1737_v38  ;;  %v1741_v54 = vadd.f32 %v1740_v10, %v5325_v61  ;;  %2676 = vmatprep.mubr.f32.mxu0 %v77_v1  ;;  %v1997_v33 = vpop.f32.mrf.mxu1  ;;  %2928 = vmatmul.mubr.f32.gmra.mxu1 %v62_v25  ;;  %v78_v61 = vld [vmem:[%s7117_s0 + $0x1f0] sm:$0xff]  ;;  %v95_v1 = vld [vmem:[%s7117_s0 + $0x278] sm:$0xff] }
 0x1cd   :  { %v1742_v30 = vpop.f32.mrf.mxu0  ;;  %2933 = vmatprep.mubr.f32.mxu1 %v79_v4  ;;  %v109_v4 = vld [vmem:[%s7117_s0 + $0x2e8] sm:$0xff] }
 0x1ce   :  { %v6249_v41 = vadd.f32 %v1997_v33, %v1741_v54  ;;  %v1743_v5 = vadd.f32 %v1742_v30, %v5340_v15  ;;  %v1999_v51 = vpop.f32.mrf.mxu1  ;;  %v92_v15 = vld [vmem:[%s7117_s0 + $0x260] sm:$0xff] }
 0x1cf   :  { %v1746_v52 = vpop.f32.mrf.mxu0  ;;  %2677 = vmatmul.mubr.f32.gmra.mxu0 %v76_v42 }
 0x1d0   :  { %v6258_v38 = vadd.f32 %v1999_v51, %v1743_v5  ;;  %v1747_v25 = vadd.f32 %v1746_v52, %v5355_v36  ;;  %2682 = vmatprep.mubr.f32.mxu0 %v93_v24  ;;  %v2003_v16 = vpop.f32.mrf.mxu1  ;;  %2934 = vmatmul.mubr.f32.gmra.mxu1 %v78_v61  ;;  %v94_v36 = vld [vmem:[%s7117_s0 + $0x270] sm:$0xff]  ;;  %v111_v24 = vld [vmem:[%s7117_s0 + $0x2f8] sm:$0xff] }
 0x1d1   :  { %v1748_v10 = vpop.f32.mrf.mxu0  ;;  %2939 = vmatprep.mubr.f32.mxu1 %v95_v1  ;;  %v125_v1 = vld [vmem:[%s7117_s0 + $0x368] sm:$0xff] }
 0x1d2   :  { %v6267_v54 = vadd.f32 %v2003_v16, %v1747_v25  ;;  %v1749_v42 = vadd.f32 %v1748_v10, %v5370_v57  ;;  %v2005_v33 = vpop.f32.mrf.mxu1  ;;  %v108_v57 = vld [vmem:[%s7117_s0 + $0x2e0] sm:$0xff] }
 0x1d3   :  { %v1752_v30 = vpop.f32.mrf.mxu0  ;;  %2683 = vmatmul.mubr.f32.gmra.mxu0 %v92_v15 }
 0x1d4   :  { %v6276_v5 = vadd.f32 %v2005_v33, %v1749_v42  ;;  %v1753_v61 = vadd.f32 %v1752_v30, %v5385_v14  ;;  %2688 = vmatprep.mubr.f32.mxu0 %v109_v4  ;;  %v2009_v51 = vpop.f32.mrf.mxu1  ;;  %2940 = vmatmul.mubr.f32.gmra.mxu1 %v94_v36  ;;  %v110_v14 = vld [vmem:[%s7117_s0 + $0x2f0] sm:$0xff]  ;;  %v127_v4 = vld [vmem:[%s7117_s0 + $0x378] sm:$0xff] }
 0x1d5   :  { %v1754_v52 = vpop.f32.mrf.mxu0  ;;  %2945 = vmatprep.mubr.f32.mxu1 %v111_v24  ;;  %v141_v24 = vld [vmem:[%s7117_s0 + $0x3e8] sm:$0xff] }
 0x1d6   :  { %v6285_v25 = vadd.f32 %v2009_v51, %v1753_v61  ;;  %v1755_v15 = vadd.f32 %v1754_v52, %v5400_v37  ;;  %v2011_v16 = vpop.f32.mrf.mxu1  ;;  %v124_v37 = vld [vmem:[%s7117_s0 + $0x360] sm:$0xff] }
 0x1d7   :  { %v1758_v10 = vpop.f32.mrf.mxu0  ;;  %2689 = vmatmul.mubr.f32.gmra.mxu0 %v108_v57 }
 0x1d8   :  { %v6294_v42 = vadd.f32 %v2011_v16, %v1755_v15  ;;  %v1759_v36 = vadd.f32 %v1758_v10, %v5415_v0  ;;  %2694 = vmatprep.mubr.f32.mxu0 %v125_v1  ;;  %v2015_v33 = vpop.f32.mrf.mxu1  ;;  %2946 = vmatmul.mubr.f32.gmra.mxu1 %v110_v14  ;;  %v126_v0 = vld [vmem:[%s7117_s0 + $0x370] sm:$0xff]  ;;  %v143_v1 = vld [vmem:[%s7117_s0 + $0x3f8] sm:$0xff] }
 0x1d9   :  { %v1760_v30 = vpop.f32.mrf.mxu0  ;;  %2951 = vmatprep.mubr.f32.mxu1 %v127_v4  ;;  %v157_v4 = vld [vmem:[%s7117_s0 + $0x468] sm:$0xff] }
 0x1da   :  { %v6303_v61 = vadd.f32 %v2015_v33, %v1759_v36  ;;  %v1761_v57 = vadd.f32 %v1760_v30, %v5430_v22  ;;  %v2017_v51 = vpop.f32.mrf.mxu1  ;;  %v140_v22 = vld [vmem:[%s7117_s0 + $0x3e0] sm:$0xff] }
 0x1db   :  { %v1764_v52 = vpop.f32.mrf.mxu0  ;;  %2695 = vmatmul.mubr.f32.gmra.mxu0 %v124_v37 }
 0x1dc   :  { %v6312_v15 = vadd.f32 %v2017_v51, %v1761_v57  ;;  %v1765_v14 = vadd.f32 %v1764_v52, %v5445_v49  ;;  %2700 = vmatprep.mubr.f32.mxu0 %v141_v24  ;;  %v2021_v16 = vpop.f32.mrf.mxu1  ;;  %2952 = vmatmul.mubr.f32.gmra.mxu1 %v126_v0  ;;  %v142_v49 = vld [vmem:[%s7117_s0 + $0x3f0] sm:$0xff]  ;;  %v159_v24 = vld [vmem:[%s7117_s0 + $0x478] sm:$0xff] }
 0x1dd   :  { %v1766_v10 = vpop.f32.mrf.mxu0  ;;  %2957 = vmatprep.mubr.f32.mxu1 %v143_v1  ;;  %v173_v1 = vld [vmem:[%s7117_s0 + $0x4e8] sm:$0xff] }
 0x1de   :  { %v6321_v36 = vadd.f32 %v2021_v16, %v1765_v14  ;;  %v1767_v37 = vadd.f32 %v1766_v10, %v5460_v13  ;;  %v2023_v33 = vpop.f32.mrf.mxu1  ;;  %v156_v13 = vld [vmem:[%s7117_s0 + $0x460] sm:$0xff] }
 0x1df   :  { %v1770_v30 = vpop.f32.mrf.mxu0  ;;  %2701 = vmatmul.mubr.f32.gmra.mxu0 %v140_v22  ;;  %v7137_v22 = vld [vmem:[#allocation2_spill] sm:$0xff] }
 0x1e0   :  { %v6330_v57 = vadd.f32 %v2023_v33, %v1767_v37  ;;  %v1771_v0 = vadd.f32 %v1770_v30, %v5475_v46  ;;  %2706 = vmatprep.mubr.f32.mxu0 %v157_v4  ;;  %v2027_v51 = vpop.f32.mrf.mxu1  ;;  %2958 = vmatmul.mubr.f32.gmra.mxu1 %v142_v49  ;;  %v158_v46 = vld [vmem:[%s7117_s0 + $0x470] sm:$0xff]  ;;  %v175_v37 = vld [vmem:[%s7117_s0 + $0x4f8] sm:$0xff]  ;;  %v7139_v33 = vld [vmem:[#allocation3_spill] sm:$0xff] }
 0x1e1   :  { %v1772_v52 = vpop.f32.mrf.mxu0  ;;  %2963 = vmatprep.mubr.f32.mxu1 %v159_v24  ;;  %v172_v24 = vld [vmem:[%s7117_s0 + $0x4e0] sm:$0xff] }
 0x1e2   :  { %v6339_v14 = vadd.f32 %v2027_v51, %v1771_v0  ;;  %v1773_v16 = vadd.f32 %v1772_v52, %v7137_v22  ;;  %v2029_v10 = vpop.f32.mrf.mxu1  ;;  %v7141_v22 = vld [vmem:[#allocation4_spill] sm:$0xff] }
 0x1e3   :  { %v1776_v4 = vpop.f32.mrf.mxu0  ;;  %2707 = vmatmul.mubr.f32.gmra.mxu0 %v156_v13  ;;  %v189_v13 = vld [vmem:[%s7117_s0 + $0x568] sm:$0xff] }
 0x1e4   :  { %7136 = vst [vmem:[#allocation17_spill] sm:$0xff] %v6339_v14  ;;  %v6348_v49 = vadd.f32 %v2029_v10, %v1773_v16  ;;  %v1777_v30 = vadd.f32 %v1776_v4, %v7139_v33  ;;  %2712 = vmatprep.mubr.f32.mxu0 %v173_v1  ;;  %v2033_v0 = vpop.f32.mrf.mxu1  ;;  %2964 = vmatmul.mubr.f32.gmra.mxu1 %v158_v46  ;;  %v174_v1 = vld [vmem:[%s7117_s0 + $0x4f0] sm:$0xff]  ;;  %v191_v46 = vld [vmem:[%s7117_s0 + $0x578] sm:$0xff] }
 0x1e5   :  { %v1778_v51 = vpop.f32.mrf.mxu0  ;;  %2969 = vmatprep.mubr.f32.mxu1 %v175_v37  ;;  %v7143_v33 = vld [vmem:[#allocation5_spill] sm:$0xff]  ;;  %v188_v37 = vld [vmem:[%s7117_s0 + $0x560] sm:$0xff] }
 0x1e6   :  { %7138 = vst [vmem:[#allocation2_spill] sm:$0xff] %v6348_v49  ;;  %v6357_v52 = vadd.f32 %v2033_v0, %v1777_v30  ;;  %v1779_v14 = vadd.f32 %v1778_v51, %v7141_v22  ;;  %v2035_v16 = vpop.f32.mrf.mxu1  ;;  %v7145_v22 = vld [vmem:[#allocation6_spill] sm:$0xff] }
 0x1e7   :  { %v1782_v10 = vpop.f32.mrf.mxu0  ;;  %2713 = vmatmul.mubr.f32.gmra.mxu0 %v172_v24  ;;  %v205_v24 = vld [vmem:[%s7117_s0 + $0x5e8] sm:$0xff] }
 0x1e8   :  { %7140 = vst [vmem:[#allocation3_spill] sm:$0xff] %v6357_v52  ;;  %v6366_v4 = vadd.f32 %v2035_v16, %v1779_v14  ;;  %v1783_v49 = vadd.f32 %v1782_v10, %v7143_v33  ;;  %2718 = vmatprep.mubr.f32.mxu0 %v189_v13  ;;  %v2039_v30 = vpop.f32.mrf.mxu1  ;;  %2970 = vmatmul.mubr.f32.gmra.mxu1 %v174_v1  ;;  %v190_v14 = vld [vmem:[%s7117_s0 + $0x570] sm:$0xff]  ;;  %v207_v1 = vld [vmem:[%s7117_s0 + $0x5f8] sm:$0xff]  ;;  %v7147_v33 = vld [vmem:[#allocation7_spill] sm:$0xff] }
 0x1e9   :  { %v1784_v0 = vpop.f32.mrf.mxu0  ;;  %2975 = vmatprep.mubr.f32.mxu1 %v191_v46 }
 0x1ea   :  { %7142 = vst [vmem:[#allocation4_spill] sm:$0xff] %v6366_v4  ;;  %v6375_v51 = vadd.f32 %v2039_v30, %v1783_v49  ;;  %v1785_v52 = vadd.f32 %v1784_v0, %v7145_v22  ;;  %v2041_v13 = vpop.f32.mrf.mxu1  ;;  %v204_v49 = vld [vmem:[%s7117_s0 + $0x5e0] sm:$0xff]  ;;  %v7149_v22 = vld [vmem:[#allocation8_spill] sm:$0xff] }
 0x1eb   :  { %v1788_v16 = vpop.f32.mrf.mxu0  ;;  %2719 = vmatmul.mubr.f32.gmra.mxu0 %v188_v37  ;;  %v221_v37 = vld [vmem:[%s7117_s0 + $0x668] sm:$0xff] }
 0x1ec   :  { %7144 = vst [vmem:[#allocation5_spill] sm:$0xff] %v6375_v51  ;;  %v6384_v10 = vadd.f32 %v2041_v13, %v1785_v52  ;;  %v1789_v4 = vadd.f32 %v1788_v16, %v7147_v33  ;;  %2724 = vmatprep.mubr.f32.mxu0 %v205_v24  ;;  %v2045_v46 = vpop.f32.mrf.mxu1  ;;  %2976 = vmatmul.mubr.f32.gmra.mxu1 %v190_v14  ;;  %v206_v52 = vld [vmem:[%s7117_s0 + $0x5f0] sm:$0xff]  ;;  %v223_v14 = vld [vmem:[%s7117_s0 + $0x678] sm:$0xff] }
 0x1ed   :  { %v1790_v30 = vpop.f32.mrf.mxu0  ;;  %2981 = vmatprep.mubr.f32.mxu1 %v207_v1  ;;  %v7151_v33 = vld [vmem:[#allocation9_spill] sm:$0xff] }
 0x1ee   :  { %7146 = vst [vmem:[#allocation6_spill] sm:$0xff] %v6384_v10  ;;  %v6393_v0 = vadd.f32 %v2045_v46, %v1789_v4  ;;  %v1791_v51 = vadd.f32 %v1790_v30, %v7149_v22  ;;  %v2047_v24 = vpop.f32.mrf.mxu1  ;;  %v220_v4 = vld [vmem:[%s7117_s0 + $0x660] sm:$0xff] }
 0x1ef   :  { %v1794_v13 = vpop.f32.mrf.mxu0  ;;  %2725 = vmatmul.mubr.f32.gmra.mxu0 %v204_v49  ;;  %v237_v49 = vld [vmem:[%s7117_s0 + $0x6e8] sm:$0xff]  ;;  %v7153_v22 = vld [vmem:[#allocation10_spill] sm:$0xff] }
 0x1f0   :  { %7148 = vst [vmem:[#allocation7_spill] sm:$0xff] %v6393_v0  ;;  %v6402_v16 = vadd.f32 %v2047_v24, %v1791_v51  ;;  %v1795_v10 = vadd.f32 %v1794_v13, %v7151_v33  ;;  %2730 = vmatprep.mubr.f32.mxu0 %v221_v37  ;;  %v2051_v1 = vpop.f32.mrf.mxu1  ;;  %2982 = vmatmul.mubr.f32.gmra.mxu1 %v206_v52  ;;  %v222_v51 = vld [vmem:[%s7117_s0 + $0x670] sm:$0xff]  ;;  %v239_v52 = vld [vmem:[%s7117_s0 + $0x6f8] sm:$0xff]  ;;  %v7155_v33 = vld [vmem:[#allocation11_spill] sm:$0xff] }
 0x1f1   :  { %v1796_v46 = vpop.f32.mrf.mxu0  ;;  %2987 = vmatprep.mubr.f32.mxu1 %v223_v14 }
 0x1f2   :  { %7150 = vst [vmem:[#allocation8_spill] sm:$0xff] %v6402_v16  ;;  %v6411_v30 = vadd.f32 %v2051_v1, %v1795_v10  ;;  %v1797_v0 = vadd.f32 %v1796_v46, %v7153_v22  ;;  %v2053_v37 = vpop.f32.mrf.mxu1  ;;  %v236_v10 = vld [vmem:[%s7117_s0 + $0x6e0] sm:$0xff]  ;;  %v7157_v22 = vld [vmem:[#allocation12_spill] sm:$0xff] }
 0x1f3   :  { %v1800_v24 = vpop.f32.mrf.mxu0  ;;  %2731 = vmatmul.mubr.f32.gmra.mxu0 %v220_v4  ;;  %v253_v4 = vld [vmem:[%s7117_s0 + $0x768] sm:$0xff] }
 0x1f4   :  { %7152 = vst [vmem:[#allocation9_spill] sm:$0xff] %v6411_v30  ;;  %v6420_v13 = vadd.f32 %v2053_v37, %v1797_v0  ;;  %v1801_v16 = vadd.f32 %v1800_v24, %v7155_v33  ;;  %2736 = vmatprep.mubr.f32.mxu0 %v237_v49  ;;  %v2057_v14 = vpop.f32.mrf.mxu1  ;;  %2988 = vmatmul.mubr.f32.gmra.mxu1 %v222_v51  ;;  %v238_v0 = vld [vmem:[%s7117_s0 + $0x6f0] sm:$0xff]  ;;  %v255_v51 = vld [vmem:[%s7117_s0 + $0x778] sm:$0xff] }
 0x1f5   :  { %v1802_v1 = vpop.f32.mrf.mxu0  ;;  %2993 = vmatprep.mubr.f32.mxu1 %v239_v52  ;;  %v7159_v33 = vld [vmem:[#allocation13_spill] sm:$0xff] }
 0x1f6   :  { %7154 = vst [vmem:[#allocation10_spill] sm:$0xff] %v6420_v13  ;;  %v6429_v46 = vadd.f32 %v2057_v14, %v1801_v16  ;;  %v1803_v30 = vadd.f32 %v1802_v1, %v7157_v22  ;;  %v2059_v49 = vpop.f32.mrf.mxu1  ;;  %v252_v16 = vld [vmem:[%s7117_s0 + $0x760] sm:$0xff] }
 0x1f7   :  { %v1806_v37 = vpop.f32.mrf.mxu0  ;;  %2737 = vmatmul.mubr.f32.gmra.mxu0 %v236_v10  ;;  %v269_v10 = vld [vmem:[%s7117_s0 + $0x7e8] sm:$0xff]  ;;  %v7160_v22 = vld [vmem:[#allocation14_spill] sm:$0xff] }
 0x1f8   :  { %7156 = vst [vmem:[#allocation11_spill] sm:$0xff] %v6429_v46  ;;  %v6438_v24 = vadd.f32 %v2059_v49, %v1803_v30  ;;  %v1807_v13 = vadd.f32 %v1806_v37, %v7159_v33  ;;  %2742 = vmatprep.mubr.f32.mxu0 %v253_v4  ;;  %v2063_v52 = vpop.f32.mrf.mxu1  ;;  %2994 = vmatmul.mubr.f32.gmra.mxu1 %v238_v0  ;;  %v254_v30 = vld [vmem:[%s7117_s0 + $0x770] sm:$0xff]  ;;  %v271_v0 = vld [vmem:[%s7117_s0 + $0x7f8] sm:$0xff]  ;;  %v7161_v33 = vld [vmem:[#allocation15_spill] sm:$0xff] }
 0x1f9   :  { %v1808_v14 = vpop.f32.mrf.mxu0  ;;  %2999 = vmatprep.mubr.f32.mxu1 %v255_v51 }
 0x1fa   :  { %7158 = vst [vmem:[#allocation12_spill] sm:$0xff] %v6438_v24  ;;  %v6447_v1 = vadd.f32 %v2063_v52, %v1807_v13  ;;  %v1809_v46 = vadd.f32 %v1808_v14, %v7160_v22  ;;  %v2065_v4 = vpop.f32.mrf.mxu1  ;;  %v268_v13 = vld [vmem:[%s7117_s0 + $0x7e0] sm:$0xff] }
 0x1fb   :  { %v1812_v49 = vpop.f32.mrf.mxu0  ;;  %2743 = vmatmul.mubr.f32.gmra.mxu0 %v252_v16  ;;  %v285_v16 = vld [vmem:[%s7117_s0 + $0x868] sm:$0xff] }
 0x1fc   :  { %v6456_v37 = vadd.f32 %v2065_v4, %v1809_v46  ;;  %v1813_v24 = vadd.f32 %v1812_v49, %v7161_v33  ;;  %2748 = vmatprep.mubr.f32.mxu0 %v269_v10  ;;  %v2069_v51 = vpop.f32.mrf.mxu1  ;;  %3000 = vmatmul.mubr.f32.gmra.mxu1 %v254_v30  ;;  %v270_v46 = vld [vmem:[%s7117_s0 + $0x7f0] sm:$0xff]  ;;  %v287_v30 = vld [vmem:[%s7117_s0 + $0x878] sm:$0xff] }
 0x1fd   :  { %v1814_v52 = vpop.f32.mrf.mxu0  ;;  %3005 = vmatprep.mubr.f32.mxu1 %v271_v0 }
 0x1fe   :  { %v6465_v14 = vadd.f32 %v2069_v51, %v1813_v24  ;;  %v1815_v22 = vadd.f32 %v1814_v52, %v5700_v59  ;;  %v2071_v10 = vpop.f32.mrf.mxu1  ;;  %v284_v59 = vld [vmem:[%s7117_s0 + $0x860] sm:$0xff] }
 0x1ff   :  { %v1818_v4 = vpop.f32.mrf.mxu0  ;;  %2749 = vmatmul.mubr.f32.gmra.mxu0 %v268_v13  ;;  %v301_v13 = vld [vmem:[%s7117_s0 + $0x8e8] sm:$0xff] }
 0x200   :  { %v6474_v49 = vadd.f32 %v2071_v10, %v1815_v22  ;;  %v1819_v33 = vadd.f32 %v1818_v4, %v5715_v48  ;;  %2754 = vmatprep.mubr.f32.mxu0 %v285_v16  ;;  %v2075_v24 = vpop.f32.mrf.mxu1  ;;  %3006 = vmatmul.mubr.f32.gmra.mxu1 %v270_v46  ;;  %v286_v48 = vld [vmem:[%s7117_s0 + $0x870] sm:$0xff]  ;;  %v303_v46 = vld [vmem:[%s7117_s0 + $0x8f8] sm:$0xff] }
 0x201   :  { %v1820_v0 = vpop.f32.mrf.mxu0  ;;  %3011 = vmatprep.mubr.f32.mxu1 %v287_v30 }
 0x202   :  { %v6483_v51 = vadd.f32 %v2075_v24, %v1819_v33  ;;  %v1821_v52 = vadd.f32 %v1820_v0, %v5730_v18  ;;  %v2077_v16 = vpop.f32.mrf.mxu1  ;;  %v300_v18 = vld [vmem:[%s7117_s0 + $0x8e0] sm:$0xff] }
 0x203   :  { %v2146_v22 = vpop.f32.mrf.mxu0  ;;  %2755 = vmatmul.mubr.f32.gmra.mxu0 %v284_v59  ;;  %v317_v59 = vld [vmem:[%s7117_s0 + $0x968] sm:$0xff] }
 0x204   :  { %v6492_v10 = vadd.f32 %v2077_v16, %v1821_v52  ;;  %v2147_v4 = vadd.f32 %v2146_v22, %v5745_v2  ;;  %2760 = vmatprep.mubr.f32.mxu0 %v301_v13  ;;  %v2403_v30 = vpop.f32.mrf.mxu1  ;;  %3012 = vmatmul.mubr.f32.gmra.mxu1 %v286_v48  ;;  %v302_v2 = vld [vmem:[%s7117_s0 + $0x8f0] sm:$0xff]  ;;  %v319_v48 = vld [vmem:[%s7117_s0 + $0x978] sm:$0xff] }
 0x205   :  { %v2148_v33 = vpop.f32.mrf.mxu0  ;;  %3017 = vmatprep.mubr.f32.mxu1 %v303_v46 }
 0x206   :  { %v6501_v24 = vadd.f32 %v2403_v30, %v2147_v4  ;;  %v2149_v0 = vadd.f32 %v2148_v33, %v5760_v11  ;;  %v2405_v13 = vpop.f32.mrf.mxu1  ;;  %v316_v11 = vld [vmem:[%s7117_s0 + $0x960] sm:$0xff] }
 0x207   :  { %v2152_v52 = vpop.f32.mrf.mxu0  ;;  %2761 = vmatmul.mubr.f32.gmra.mxu0 %v300_v18  ;;  %v333_v18 = vld [vmem:[%s7117_s0 + $0x9e8] sm:$0xff] }
 0x208   :  { %v6510_v16 = vadd.f32 %v2405_v13, %v2149_v0  ;;  %v2153_v22 = vadd.f32 %v2152_v52, %v5775_v28  ;;  %2766 = vmatprep.mubr.f32.mxu0 %v317_v59  ;;  %v2409_v46 = vpop.f32.mrf.mxu1  ;;  %3018 = vmatmul.mubr.f32.gmra.mxu1 %v302_v2  ;;  %v318_v28 = vld [vmem:[%s7117_s0 + $0x970] sm:$0xff]  ;;  %v335_v2 = vld [vmem:[%s7117_s0 + $0x9f8] sm:$0xff] }
 0x209   :  { %v2154_v4 = vpop.f32.mrf.mxu0  ;;  %3023 = vmatprep.mubr.f32.mxu1 %v319_v48 }
 0x20a   :  { %v6519_v30 = vadd.f32 %v2409_v46, %v2153_v22  ;;  %v2155_v33 = vadd.f32 %v2154_v4, %v5790_v34  ;;  %v2411_v59 = vpop.f32.mrf.mxu1  ;;  %v332_v34 = vld [vmem:[%s7117_s0 + $0x9e0] sm:$0xff] }
 0x20b   :  { %v2158_v0 = vpop.f32.mrf.mxu0  ;;  %2767 = vmatmul.mubr.f32.gmra.mxu0 %v316_v11  ;;  %v349_v11 = vld [vmem:[%s7117_s0 + $0xa68] sm:$0xff] }
 0x20c   :  { %v6528_v13 = vadd.f32 %v2411_v59, %v2155_v33  ;;  %v2159_v52 = vadd.f32 %v2158_v0, %v5805_v6  ;;  %2772 = vmatprep.mubr.f32.mxu0 %v333_v18  ;;  %v2415_v48 = vpop.f32.mrf.mxu1  ;;  %3024 = vmatmul.mubr.f32.gmra.mxu1 %v318_v28  ;;  %v334_v6 = vld [vmem:[%s7117_s0 + $0x9f0] sm:$0xff]  ;;  %v351_v28 = vld [vmem:[%s7117_s0 + $0xa78] sm:$0xff] }
 0x20d   :  { %v2160_v22 = vpop.f32.mrf.mxu0  ;;  %3029 = vmatprep.mubr.f32.mxu1 %v335_v2 }
 0x20e   :  { %v6537_v46 = vadd.f32 %v2415_v48, %v2159_v52  ;;  %v2161_v4 = vadd.f32 %v2160_v22, %v5820_v12  ;;  %v2417_v18 = vpop.f32.mrf.mxu1  ;;  %v348_v12 = vld [vmem:[%s7117_s0 + $0xa60] sm:$0xff] }
 0x20f   :  { %v2164_v33 = vpop.f32.mrf.mxu0  ;;  %2773 = vmatmul.mubr.f32.gmra.mxu0 %v332_v34  ;;  %v365_v34 = vld [vmem:[%s7117_s0 + $0xae8] sm:$0xff] }
 0x210   :  { %v6546_v59 = vadd.f32 %v2417_v18, %v2161_v4  ;;  %v2165_v0 = vadd.f32 %v2164_v33, %v5835_v23  ;;  %2778 = vmatprep.mubr.f32.mxu0 %v349_v11  ;;  %v2421_v2 = vpop.f32.mrf.mxu1  ;;  %3030 = vmatmul.mubr.f32.gmra.mxu1 %v334_v6  ;;  %v350_v23 = vld [vmem:[%s7117_s0 + $0xa70] sm:$0xff]  ;;  %v367_v6 = vld [vmem:[%s7117_s0 + $0xaf8] sm:$0xff] }
 0x211   :  { %v2166_v52 = vpop.f32.mrf.mxu0  ;;  %3035 = vmatprep.mubr.f32.mxu1 %v351_v28 }
 0x212   :  { %v6555_v48 = vadd.f32 %v2421_v2, %v2165_v0  ;;  %v2167_v22 = vadd.f32 %v2166_v52, %v5850_v31  ;;  %v2423_v11 = vpop.f32.mrf.mxu1  ;;  %v364_v31 = vld [vmem:[%s7117_s0 + $0xae0] sm:$0xff] }
 0x213   :  { %v2170_v4 = vpop.f32.mrf.mxu0  ;;  %2779 = vmatmul.mubr.f32.gmra.mxu0 %v348_v12  ;;  %v381_v12 = vld [vmem:[%s7117_s0 + $0xb68] sm:$0xff] }
 0x214   :  { %v6564_v18 = vadd.f32 %v2423_v11, %v2167_v22  ;;  %v2171_v33 = vadd.f32 %v2170_v4, %v5865_v39  ;;  %2784 = vmatprep.mubr.f32.mxu0 %v365_v34  ;;  %v2427_v28 = vpop.f32.mrf.mxu1  ;;  %3036 = vmatmul.mubr.f32.gmra.mxu1 %v350_v23  ;;  %v366_v39 = vld [vmem:[%s7117_s0 + $0xaf0] sm:$0xff]  ;;  %v383_v23 = vld [vmem:[%s7117_s0 + $0xb78] sm:$0xff] }
 0x215   :  { %v2172_v0 = vpop.f32.mrf.mxu0  ;;  %3041 = vmatprep.mubr.f32.mxu1 %v367_v6 }
 0x216   :  { %v6573_v2 = vadd.f32 %v2427_v28, %v2171_v33  ;;  %v2173_v52 = vadd.f32 %v2172_v0, %v5880_v47  ;;  %v2429_v34 = vpop.f32.mrf.mxu1  ;;  %v380_v47 = vld [vmem:[%s7117_s0 + $0xb60] sm:$0xff] }
 0x217   :  { %v2176_v22 = vpop.f32.mrf.mxu0  ;;  %2785 = vmatmul.mubr.f32.gmra.mxu0 %v364_v31  ;;  %v397_v31 = vld [vmem:[%s7117_s0 + $0xbe8] sm:$0xff] }
 0x218   :  { %v6582_v11 = vadd.f32 %v2429_v34, %v2173_v52  ;;  %v2177_v4 = vadd.f32 %v2176_v22, %v5895_v55  ;;  %2790 = vmatprep.mubr.f32.mxu0 %v381_v12  ;;  %v2433_v6 = vpop.f32.mrf.mxu1  ;;  %3042 = vmatmul.mubr.f32.gmra.mxu1 %v366_v39  ;;  %v382_v55 = vld [vmem:[%s7117_s0 + $0xb70] sm:$0xff]  ;;  %v399_v39 = vld [vmem:[%s7117_s0 + $0xbf8] sm:$0xff] }
 0x219   :  { %v2178_v33 = vpop.f32.mrf.mxu0  ;;  %3047 = vmatprep.mubr.f32.mxu1 %v383_v23 }
 0x21a   :  { %v6591_v28 = vadd.f32 %v2433_v6, %v2177_v4  ;;  %v2179_v0 = vadd.f32 %v2178_v33, %v5910_v63  ;;  %v2435_v12 = vpop.f32.mrf.mxu1  ;;  %v396_v63 = vld [vmem:[%s7117_s0 + $0xbe0] sm:$0xff] }
 0x21b   :  { %v2182_v52 = vpop.f32.mrf.mxu0  ;;  %2791 = vmatmul.mubr.f32.gmra.mxu0 %v380_v47  ;;  %v413_v47 = vld [vmem:[%s7117_s0 + $0xc68] sm:$0xff] }
 0x21c   :  { %v6600_v34 = vadd.f32 %v2435_v12, %v2179_v0  ;;  %v2183_v22 = vadd.f32 %v2182_v52, %v5925_v8  ;;  %2796 = vmatprep.mubr.f32.mxu0 %v397_v31  ;;  %v2439_v23 = vpop.f32.mrf.mxu1  ;;  %3048 = vmatmul.mubr.f32.gmra.mxu1 %v382_v55  ;;  %v398_v8 = vld [vmem:[%s7117_s0 + $0xbf0] sm:$0xff]  ;;  %v415_v55 = vld [vmem:[%s7117_s0 + $0xc78] sm:$0xff] }
 0x21d   :  { %v2184_v4 = vpop.f32.mrf.mxu0  ;;  %3053 = vmatprep.mubr.f32.mxu1 %v399_v39 }
 0x21e   :  { %v6609_v6 = vadd.f32 %v2439_v23, %v2183_v22  ;;  %v2185_v33 = vadd.f32 %v2184_v4, %v5940_v17  ;;  %v2441_v31 = vpop.f32.mrf.mxu1  ;;  %v412_v17 = vld [vmem:[%s7117_s0 + $0xc60] sm:$0xff] }
 0x21f   :  { %v2188_v0 = vpop.f32.mrf.mxu0  ;;  %2797 = vmatmul.mubr.f32.gmra.mxu0 %v396_v63  ;;  %v429_v63 = vld [vmem:[%s7117_s0 + $0xce8] sm:$0xff] }
 0x220   :  { %v6618_v12 = vadd.f32 %v2441_v31, %v2185_v33  ;;  %v2189_v52 = vadd.f32 %v2188_v0, %v5955_v26  ;;  %2802 = vmatprep.mubr.f32.mxu0 %v413_v47  ;;  %v2445_v39 = vpop.f32.mrf.mxu1  ;;  %3054 = vmatmul.mubr.f32.gmra.mxu1 %v398_v8  ;;  %v414_v26 = vld [vmem:[%s7117_s0 + $0xc70] sm:$0xff]  ;;  %v431_v8 = vld [vmem:[%s7117_s0 + $0xcf8] sm:$0xff] }
 0x221   :  { %v2190_v22 = vpop.f32.mrf.mxu0  ;;  %3059 = vmatprep.mubr.f32.mxu1 %v415_v55 }
 0x222   :  { %v6627_v23 = vadd.f32 %v2445_v39, %v2189_v52  ;;  %v2191_v4 = vadd.f32 %v2190_v22, %v5970_v35  ;;  %v2447_v47 = vpop.f32.mrf.mxu1  ;;  %v428_v35 = vld [vmem:[%s7117_s0 + $0xce0] sm:$0xff] }
 0x223   :  { %v2194_v33 = vpop.f32.mrf.mxu0  ;;  %2803 = vmatmul.mubr.f32.gmra.mxu0 %v412_v17  ;;  %v445_v17 = vld [vmem:[%s7117_s0 + $0xd68] sm:$0xff] }
 0x224   :  { %v6636_v31 = vadd.f32 %v2447_v47, %v2191_v4  ;;  %v2195_v0 = vadd.f32 %v2194_v33, %v5985_v44  ;;  %2808 = vmatprep.mubr.f32.mxu0 %v429_v63  ;;  %v2451_v55 = vpop.f32.mrf.mxu1  ;;  %3060 = vmatmul.mubr.f32.gmra.mxu1 %v414_v26  ;;  %v430_v44 = vld [vmem:[%s7117_s0 + $0xcf0] sm:$0xff]  ;;  %v447_v26 = vld [vmem:[%s7117_s0 + $0xd78] sm:$0xff] }
 0x225   :  { %v2196_v52 = vpop.f32.mrf.mxu0  ;;  %3065 = vmatprep.mubr.f32.mxu1 %v431_v8 }
 0x226   :  { %v6645_v39 = vadd.f32 %v2451_v55, %v2195_v0  ;;  %v2197_v22 = vadd.f32 %v2196_v52, %v6000_v53  ;;  %v2453_v63 = vpop.f32.mrf.mxu1  ;;  %v444_v53 = vld [vmem:[%s7117_s0 + $0xd60] sm:$0xff] }
 0x227   :  { %v2200_v4 = vpop.f32.mrf.mxu0  ;;  %2809 = vmatmul.mubr.f32.gmra.mxu0 %v428_v35  ;;  %v461_v35 = vld [vmem:[%s7117_s0 + $0xde8] sm:$0xff] }
 0x228   :  { %v6654_v47 = vadd.f32 %v2453_v63, %v2197_v22  ;;  %v2201_v33 = vadd.f32 %v2200_v4, %v6015_v62  ;;  %2814 = vmatprep.mubr.f32.mxu0 %v445_v17  ;;  %v2457_v8 = vpop.f32.mrf.mxu1  ;;  %3066 = vmatmul.mubr.f32.gmra.mxu1 %v430_v44  ;;  %v446_v62 = vld [vmem:[%s7117_s0 + $0xd70] sm:$0xff]  ;;  %v463_v44 = vld [vmem:[%s7117_s0 + $0xdf8] sm:$0xff] }
 0x229   :  { %v2202_v0 = vpop.f32.mrf.mxu0  ;;  %3071 = vmatprep.mubr.f32.mxu1 %v447_v26 }
 0x22a   :  { %v6663_v55 = vadd.f32 %v2457_v8, %v2201_v33  ;;  %v2203_v52 = vadd.f32 %v2202_v0, %v6030_v9  ;;  %v2459_v17 = vpop.f32.mrf.mxu1  ;;  %v460_v9 = vld [vmem:[%s7117_s0 + $0xde0] sm:$0xff] }
 0x22b   :  { %v2206_v22 = vpop.f32.mrf.mxu0  ;;  %2815 = vmatmul.mubr.f32.gmra.mxu0 %v444_v53  ;;  %v477_v53 = vld [vmem:[%s7117_s0 + $0xe68] sm:$0xff] }
 0x22c   :  { %v6672_v63 = vadd.f32 %v2459_v17, %v2203_v52  ;;  %v2207_v4 = vadd.f32 %v2206_v22, %v6045_v19  ;;  %2820 = vmatprep.mubr.f32.mxu0 %v461_v35  ;;  %v2463_v26 = vpop.f32.mrf.mxu1  ;;  %3072 = vmatmul.mubr.f32.gmra.mxu1 %v446_v62  ;;  %v462_v19 = vld [vmem:[%s7117_s0 + $0xdf0] sm:$0xff]  ;;  %v479_v62 = vld [vmem:[%s7117_s0 + $0xe78] sm:$0xff] }
 0x22d   :  { %v2208_v33 = vpop.f32.mrf.mxu0  ;;  %3077 = vmatprep.mubr.f32.mxu1 %v463_v44 }
 0x22e   :  { %v6681_v8 = vadd.f32 %v2463_v26, %v2207_v4  ;;  %v2209_v0 = vadd.f32 %v2208_v33, %v6060_v29  ;;  %v2465_v35 = vpop.f32.mrf.mxu1  ;;  %v476_v29 = vld [vmem:[%s7117_s0 + $0xe60] sm:$0xff] }
 0x22f   :  { %v2212_v52 = vpop.f32.mrf.mxu0  ;;  %2821 = vmatmul.mubr.f32.gmra.mxu0 %v460_v9  ;;  %v493_v9 = vld [vmem:[%s7117_s0 + $0xee8] sm:$0xff] }
 0x230   :  { %v6690_v17 = vadd.f32 %v2465_v35, %v2209_v0  ;;  %v2213_v22 = vadd.f32 %v2212_v52, %v6075_v40  ;;  %2826 = vmatprep.mubr.f32.mxu0 %v477_v53  ;;  %v2469_v44 = vpop.f32.mrf.mxu1  ;;  %3078 = vmatmul.mubr.f32.gmra.mxu1 %v462_v19  ;;  %v478_v40 = vld [vmem:[%s7117_s0 + $0xe70] sm:$0xff]  ;;  %v495_v19 = vld [vmem:[%s7117_s0 + $0xef8] sm:$0xff] }
 0x231   :  { %v2214_v4 = vpop.f32.mrf.mxu0  ;;  %3083 = vmatprep.mubr.f32.mxu1 %v479_v62 }
 0x232   :  { %v6699_v26 = vadd.f32 %v2469_v44, %v2213_v22  ;;  %v2215_v33 = vadd.f32 %v2214_v4, %v6090_v50  ;;  %v2471_v53 = vpop.f32.mrf.mxu1  ;;  %v492_v50 = vld [vmem:[%s7117_s0 + $0xee0] sm:$0xff] }
 0x233   :  { %v2218_v0 = vpop.f32.mrf.mxu0  ;;  %2827 = vmatmul.mubr.f32.gmra.mxu0 %v476_v29  ;;  %v509_v29 = vld [vmem:[%s7117_s0 + $0xf68] sm:$0xff] }
 0x234   :  { %v6708_v35 = vadd.f32 %v2471_v53, %v2215_v33  ;;  %v2219_v52 = vadd.f32 %v2218_v0, %v6105_v60  ;;  %2832 = vmatprep.mubr.f32.mxu0 %v493_v9  ;;  %v2475_v62 = vpop.f32.mrf.mxu1  ;;  %3084 = vmatmul.mubr.f32.gmra.mxu1 %v478_v40  ;;  %v494_v60 = vld [vmem:[%s7117_s0 + $0xef0] sm:$0xff]  ;;  %v511_v40 = vld [vmem:[%s7117_s0 + $0xf78] sm:$0xff] }
 0x235   :  { %v2220_v22 = vpop.f32.mrf.mxu0  ;;  %3089 = vmatprep.mubr.f32.mxu1 %v495_v19 }
 0x236   :  { %v6717_v44 = vadd.f32 %v2475_v62, %v2219_v52  ;;  %v2221_v4 = vadd.f32 %v2220_v22, %v6120_v7  ;;  %v2477_v9 = vpop.f32.mrf.mxu1  ;;  %v508_v7 = vld [vmem:[%s7117_s0 + $0xf60] sm:$0xff] }
 0x237   :  { %v2224_v33 = vpop.f32.mrf.mxu0  ;;  %2833 = vmatmul.mubr.f32.gmra.mxu0 %v492_v50  ;;  %v525_v50 = vld [vmem:[%s7117_s0 + $0xfe8] sm:$0xff] }
 0x238   :  { %v6726_v53 = vadd.f32 %v2477_v9, %v2221_v4  ;;  %v2225_v0 = vadd.f32 %v2224_v33, %v6135_v20  ;;  %2838 = vmatprep.mubr.f32.mxu0 %v509_v29  ;;  %v2481_v19 = vpop.f32.mrf.mxu1  ;;  %3090 = vmatmul.mubr.f32.gmra.mxu1 %v494_v60  ;;  %v510_v20 = vld [vmem:[%s7117_s0 + $0xf70] sm:$0xff]  ;;  %v527_v60 = vld [vmem:[%s7117_s0 + $0xff8] sm:$0xff] }
 0x239   :  { %v2226_v52 = vpop.f32.mrf.mxu0  ;;  %3095 = vmatprep.mubr.f32.mxu1 %v511_v40 }
 0x23a   :  { %7162 = vst [vmem:[#allocation13_spill] sm:$0xff] %v6726_v53  ;;  %v6735_v62 = vadd.f32 %v2481_v19, %v2225_v0  ;;  %v2227_v22 = vadd.f32 %v2226_v52, %v6150_v32  ;;  %v2483_v29 = vpop.f32.mrf.mxu1  ;;  %v524_v32 = vld [vmem:[%s7117_s0 + $0xfe0] sm:$0xff]  ;;  %v7166_v52 = vld [vmem:[#allocation16_spill] sm:$0xff] }
 0x23b   :  { %v2230_v4 = vpop.f32.mrf.mxu0  ;;  %2839 = vmatmul.mubr.f32.gmra.mxu0 %v508_v7 }
 0x23c   :  { %7163 = vst [vmem:[#allocation14_spill] sm:$0xff] %v6735_v62  ;;  %v6744_v9 = vadd.f32 %v2483_v29, %v2227_v22  ;;  %v2231_v33 = vadd.f32 %v2230_v4, %v6165_v43  ;;  %2844 = vmatprep.mubr.f32.mxu0 %v525_v50  ;;  %v2487_v40 = vpop.f32.mrf.mxu1  ;;  %3096 = vmatmul.mubr.f32.gmra.mxu1 %v510_v20  ;;  %v526_v22 = vld [vmem:[%s7117_s0 + $0xff0] sm:$0xff] }
 0x23d   :  { %v2232_v0 = vpop.f32.mrf.mxu0  ;;  %3101 = vmatprep.mubr.f32.mxu1 %v527_v60 }
 0x23e   :  { %7164 = vst [vmem:[#allocation15_spill] sm:$0xff] %v6744_v9  ;;  %v6750_v19 = vadd.f32 %v2487_v40, %v2231_v33  ;;  %v2233_v7 = vadd.f32 %v2232_v0, %v7166_v52  ;;  %v2489_v29 = vpop.f32.mrf.mxu1 }
 0x23f   :  { %v2236_v9 = vpop.f32.mrf.mxu0  ;;  %2845 = vmatmul.mubr.f32.gmra.mxu0 %v524_v32 }
 0x240   :  { %7165 = vst [vmem:[#allocation18_spill] sm:$0xff] %v6750_v19  ;;  %v6756_v43 = vadd.f32 %v2489_v29, %v2233_v7  ;;  %v2237_v50 = vadd.f32 %v2236_v9, %v6195_v3  ;;  %v2493_v4 = vpop.f32.mrf.mxu1  ;;  %3102 = vmatmul.mubr.f32.gmra.mxu1 %v526_v22 }
 0x241   :  { %v2238_v20 = vpop.f32.mrf.mxu0 }
 0x242   :  { %v6759_v62 = vadd.f32 %v2493_v4, %v2237_v50  ;;  %v2239_v33 = vadd.f32 %v2238_v20, %v6204_v56  ;;  %v2495_v40 = vpop.f32.mrf.mxu1 }
 0x243   :  { %v2242_v60 = vpop.f32.mrf.mxu0 }
 0x244   :  { %v6762_v0 = vadd.f32 %v2495_v40, %v2239_v33  ;;  %v2243_v52 = vadd.f32 %v2242_v60, %v6213_v21  ;;  %v2499_v19 = vpop.f32.mrf.mxu1 }
 0x245   :  { %v2244_v53 = vpop.f32.mrf.mxu0 }
 0x246   :  { %v6765_v32 = vadd.f32 %v2499_v19, %v2243_v52  ;;  %v2245_v7 = vadd.f32 %v2244_v53, %v6222_v58  ;;  %v2501_v3 = vpop.f32.mrf.mxu1 }
 0x247   :  { %v2248_v9 = vpop.f32.mrf.mxu0 }
 0x248   :  { %v6768_v22 = vadd.f32 %v2501_v3, %v2245_v7  ;;  %v2249_v29 = vadd.f32 %v2248_v9, %v6231_v45  ;;  %v2505_v50 = vpop.f32.mrf.mxu1 }
 0x249   :  { %v2250_v56 = vpop.f32.mrf.mxu0 }
 0x24a   :  { %v6771_v4 = vadd.f32 %v2505_v50, %v2249_v29  ;;  %v2251_v20 = vadd.f32 %v2250_v56, %v6240_v27  ;;  %v2507_v33 = vpop.f32.mrf.mxu1 }
 0x24b   :  { %v2254_v21 = vpop.f32.mrf.mxu0 }
 0x24c   :  { %v6774_v40 = vadd.f32 %v2507_v33, %v2251_v20  ;;  %v2255_v19 = vadd.f32 %v2254_v21, %v6249_v41  ;;  %v2511_v60 = vpop.f32.mrf.mxu1 }
 0x24d   :  { %v2256_v58 = vpop.f32.mrf.mxu0 }
 0x24e   :  { %v6777_v53 = vadd.f32 %v2511_v60, %v2255_v19  ;;  %v2257_v52 = vadd.f32 %v2256_v58, %v6258_v38  ;;  %v2513_v7 = vpop.f32.mrf.mxu1 }
 0x24f   :  { %v2260_v45 = vpop.f32.mrf.mxu0 }
 0x250   :  { %v6780_v3 = vadd.f32 %v2513_v7, %v2257_v52  ;;  %v2261_v9 = vadd.f32 %v2260_v45, %v6267_v54  ;;  %v2517_v29 = vpop.f32.mrf.mxu1 }
 0x251   :  { %v2262_v27 = vpop.f32.mrf.mxu0 }
 0x252   :  { %v6783_v50 = vadd.f32 %v2517_v29, %v2261_v9  ;;  %v2263_v56 = vadd.f32 %v2262_v27, %v6276_v5  ;;  %v2519_v20 = vpop.f32.mrf.mxu1 }
 0x253   :  { %v2266_v41 = vpop.f32.mrf.mxu0 }
 0x254   :  { %v6786_v33 = vadd.f32 %v2519_v20, %v2263_v56  ;;  %v2267_v21 = vadd.f32 %v2266_v41, %v6285_v25  ;;  %v2523_v19 = vpop.f32.mrf.mxu1 }
 0x255   :  { %v2268_v38 = vpop.f32.mrf.mxu0 }
 0x256   :  { %v6789_v60 = vadd.f32 %v2523_v19, %v2267_v21  ;;  %v2269_v58 = vadd.f32 %v2268_v38, %v6294_v42  ;;  %v2525_v52 = vpop.f32.mrf.mxu1 }
 0x257   :  { %v2272_v54 = vpop.f32.mrf.mxu0 }
 0x258   :  { %v6792_v7 = vadd.f32 %v2525_v52, %v2269_v58  ;;  %v2273_v45 = vadd.f32 %v2272_v54, %v6303_v61  ;;  %v2529_v9 = vpop.f32.mrf.mxu1  ;;  %v7170_v54 = vld [vmem:[#allocation17_spill] sm:$0xff] }
 0x259   :  { %v2274_v5 = vpop.f32.mrf.mxu0 }
 0x25a   :  { %v6795_v29 = vadd.f32 %v2529_v9, %v2273_v45  ;;  %v2275_v27 = vadd.f32 %v2274_v5, %v6312_v15  ;;  %v2531_v56 = vpop.f32.mrf.mxu1 }
 0x25b   :  { %v2278_v25 = vpop.f32.mrf.mxu0 }
 0x25c   :  { %v6798_v20 = vadd.f32 %v2531_v56, %v2275_v27  ;;  %v2279_v41 = vadd.f32 %v2278_v25, %v6321_v36  ;;  %v2535_v21 = vpop.f32.mrf.mxu1  ;;  %v7172_v27 = vld [vmem:[#allocation2_spill] sm:$0xff] }
 0x25d   :  { %v2280_v42 = vpop.f32.mrf.mxu0 }
 0x25e   :  { %7167 = vst [vmem:[#allocation16_spill] sm:$0xff] %v6798_v20  ;;  %v6801_v19 = vadd.f32 %v2535_v21, %v2279_v41  ;;  %v2281_v38 = vadd.f32 %v2280_v42, %v6330_v57  ;;  %v2537_v58 = vpop.f32.mrf.mxu1  ;;  %v7174_v41 = vld [vmem:[#allocation3_spill] sm:$0xff] }
 0x25f   :  { %v2284_v61 = vpop.f32.mrf.mxu0 }
 0x260   :  { %7168 = vst [vmem:[#allocation19_spill] sm:$0xff] %v6801_v19  ;;  %v6804_v52 = vadd.f32 %v2537_v58, %v2281_v38  ;;  %v2285_v45 = vadd.f32 %v2284_v61, %v7170_v54  ;;  %v2541_v9 = vpop.f32.mrf.mxu1  ;;  %v7176_v38 = vld [vmem:[#allocation4_spill] sm:$0xff] }
 0x261   :  { %v2286_v15 = vpop.f32.mrf.mxu0 }
 0x262   :  { %7169 = vst [vmem:[#allocation20_spill] sm:$0xff] %v6804_v52  ;;  %v6807_v5 = vadd.f32 %v2541_v9, %v2285_v45  ;;  %v2287_v56 = vadd.f32 %v2286_v15, %v7172_v27  ;;  %v2543_v20 = vpop.f32.mrf.mxu1  ;;  %v7178_v45 = vld [vmem:[#allocation5_spill] sm:$0xff] }
 0x263   :  { %v2290_v36 = vpop.f32.mrf.mxu0 }
 0x264   :  { %7171 = vst [vmem:[#allocation17_spill] sm:$0xff] %v6807_v5  ;;  %v6810_v25 = vadd.f32 %v2543_v20, %v2287_v56  ;;  %v2291_v21 = vadd.f32 %v2290_v36, %v7174_v41  ;;  %v2547_v19 = vpop.f32.mrf.mxu1  ;;  %v7180_v20 = vld [vmem:[#allocation6_spill] sm:$0xff] }
 0x265   :  { %v2292_v57 = vpop.f32.mrf.mxu0 }
 0x266   :  { %7173 = vst [vmem:[#allocation2_spill] sm:$0xff] %v6810_v25  ;;  %v6813_v42 = vadd.f32 %v2547_v19, %v2291_v21  ;;  %v2293_v58 = vadd.f32 %v2292_v57, %v7176_v38  ;;  %v2549_v52 = vpop.f32.mrf.mxu1  ;;  %v7182_v19 = vld [vmem:[#allocation7_spill] sm:$0xff] }
 0x267   :  { %v2296_v61 = vpop.f32.mrf.mxu0 }
 0x268   :  { %7175 = vst [vmem:[#allocation3_spill] sm:$0xff] %v6813_v42  ;;  %v6816_v54 = vadd.f32 %v2549_v52, %v2293_v58  ;;  %v2297_v9 = vadd.f32 %v2296_v61, %v7178_v45  ;;  %v2553_v5 = vpop.f32.mrf.mxu1  ;;  %v7184_v52 = vld [vmem:[#allocation8_spill] sm:$0xff] }
 0x269   :  { %v2298_v15 = vpop.f32.mrf.mxu0 }
 0x26a   :  { %7177 = vst [vmem:[#allocation4_spill] sm:$0xff] %v6816_v54  ;;  %v6819_v27 = vadd.f32 %v2553_v5, %v2297_v9  ;;  %v2299_v56 = vadd.f32 %v2298_v15, %v7180_v20  ;;  %v2555_v25 = vpop.f32.mrf.mxu1  ;;  %v7186_v5 = vld [vmem:[#allocation9_spill] sm:$0xff] }
 0x26b   :  { %v2302_v36 = vpop.f32.mrf.mxu0 }
 0x26c   :  { %7179 = vst [vmem:[#allocation5_spill] sm:$0xff] %v6819_v27  ;;  %v6822_v41 = vadd.f32 %v2555_v25, %v2299_v56  ;;  %v2303_v21 = vadd.f32 %v2302_v36, %v7182_v19  ;;  %v2559_v42 = vpop.f32.mrf.mxu1  ;;  %v7187_v25 = vld [vmem:[#allocation10_spill] sm:$0xff] }
 0x26d   :  { %v2304_v57 = vpop.f32.mrf.mxu0 }
 0x26e   :  { %7181 = vst [vmem:[#allocation6_spill] sm:$0xff] %v6822_v41  ;;  %v6825_v38 = vadd.f32 %v2559_v42, %v2303_v21  ;;  %v2305_v58 = vadd.f32 %v2304_v57, %v7184_v52  ;;  %v2561_v54 = vpop.f32.mrf.mxu1  ;;  %v7188_v42 = vld [vmem:[#allocation11_spill] sm:$0xff] }
 0x26f   :  { %v2308_v61 = vpop.f32.mrf.mxu0 }
 0x270   :  { %7183 = vst [vmem:[#allocation7_spill] sm:$0xff] %v6825_v38  ;;  %v6828_v45 = vadd.f32 %v2561_v54, %v2305_v58  ;;  %v2309_v9 = vadd.f32 %v2308_v61, %v7186_v5  ;;  %v2565_v27 = vpop.f32.mrf.mxu1  ;;  %v7189_v54 = vld [vmem:[#allocation12_spill] sm:$0xff] }
 0x271   :  { %v2310_v15 = vpop.f32.mrf.mxu0 }
 0x272   :  { %7185 = vst [vmem:[#allocation8_spill] sm:$0xff] %v6828_v45  ;;  %v6831_v20 = vadd.f32 %v2565_v27, %v2309_v9  ;;  %v2311_v56 = vadd.f32 %v2310_v15, %v7187_v25  ;;  %v2567_v41 = vpop.f32.mrf.mxu1 }
 0x273   :  { %v2314_v36 = vpop.f32.mrf.mxu0 }
 0x274   :  { %v6834_v19 = vadd.f32 %v2567_v41, %v2311_v56  ;;  %v2315_v21 = vadd.f32 %v2314_v36, %v7188_v42  ;;  %v2571_v38 = vpop.f32.mrf.mxu1 }
 0x275   :  { %v2316_v57 = vpop.f32.mrf.mxu0 }
 0x276   :  { %v6837_v52 = vadd.f32 %v2571_v38, %v2315_v21  ;;  %v2317_v58 = vadd.f32 %v2316_v57, %v7189_v54  ;;  %v2573_v45 = vpop.f32.mrf.mxu1 }
 0x277   :  { %v2320_v61 = vpop.f32.mrf.mxu0 }
 0x278   :  { %v6840_v5 = vadd.f32 %v2573_v45, %v2317_v58  ;;  %v2321_v27 = vadd.f32 %v2320_v61, %v6447_v1  ;;  %v2577_v9 = vpop.f32.mrf.mxu1 }
 0x279   :  { %v2322_v15 = vpop.f32.mrf.mxu0 }
 0x27a   :  { %v6843_v25 = vadd.f32 %v2577_v9, %v2321_v27  ;;  %v2323_v41 = vadd.f32 %v2322_v15, %v6456_v37  ;;  %v2579_v56 = vpop.f32.mrf.mxu1 }
 0x27b   :  { %v2326_v36 = vpop.f32.mrf.mxu0 }
 0x27c   :  { %v6846_v42 = vadd.f32 %v2579_v56, %v2323_v41  ;;  %v2327_v38 = vadd.f32 %v2326_v36, %v6465_v14  ;;  %v2583_v21 = vpop.f32.mrf.mxu1 }
 0x27d   :  { %v2328_v57 = vpop.f32.mrf.mxu0 }
 0x27e   :  { %v6849_v54 = vadd.f32 %v2583_v21, %v2327_v38  ;;  %v2329_v45 = vadd.f32 %v2328_v57, %v6474_v49  ;;  %v2585_v58 = vpop.f32.mrf.mxu1 }
 0x27f   :  { %v2332_v1 = vpop.f32.mrf.mxu0 }
 0x280   :  { %v6852_v61 = vadd.f32 %v2585_v58, %v2329_v45  ;;  %v2333_v27 = vadd.f32 %v2332_v1, %v6483_v51  ;;  %v2589_v9 = vpop.f32.mrf.mxu1 }
 0x281   :  { %v2334_v37 = vpop.f32.mrf.mxu0 }
 0x282   :  { %7190 = vst [vmem:[#allocation9_spill] sm:$0xff] %v6852_v61  ;;  %v6855_v15 = vadd.f32 %v2589_v9, %v2333_v27  ;;  %v2335_v41 = vadd.f32 %v2334_v37, %v6492_v10  ;;  %v2591_v56 = vpop.f32.mrf.mxu1 }
 0x283   :  { %v2660_v14 = vpop.f32.mrf.mxu0 }
 0x284   :  { %v6858_v36 = vadd.f32 %v2591_v56, %v2335_v41  ;;  %v2661_v38 = vadd.f32 %v2660_v14, %v6501_v24  ;;  %v2917_v21 = vpop.f32.mrf.mxu1 }
 0x285   :  { %v2662_v49 = vpop.f32.mrf.mxu0 }
 0x286   :  { %v2918_v57 = vadd.f32 %v2917_v21, %v2661_v38  ;;  %v2663_v45 = vadd.f32 %v2662_v49, %v6510_v16  ;;  %v2919_v58 = vpop.f32.mrf.mxu1 }
 0x287   :  { %v2666_v61 = vpop.f32.mrf.mxu0 }
 0x288   :  { %3108 = vst [vmem:[%s7119_s3] sm:$0xff] %v2918_v57  ;;  %v2920_v51 = vadd.f32 %v2919_v58, %v2663_v45  ;;  %v2667_v10 = vadd.f32 %v2666_v61, %v6519_v30  ;;  %v2923_v1 = vpop.f32.mrf.mxu1 }
 0x289   :  { %v2668_v27 = vpop.f32.mrf.mxu0 }
 0x28a   :  { %3140 = vst [vmem:[%s7120_s4] sm:$0xff] %v2920_v51  ;;  %v2924_v24 = vadd.f32 %v2923_v1, %v2667_v10  ;;  %v2669_v9 = vadd.f32 %v2668_v27, %v6528_v13  ;;  %v2925_v37 = vpop.f32.mrf.mxu1 }
 0x28b   :  { %v2672_v16 = vpop.f32.mrf.mxu0 }
 0x28c   :  { %3109 = vst [vmem:[%s7119_s3 + $0x8] sm:$0xff] %v2924_v24  ;;  %v2926_v41 = vadd.f32 %v2925_v37, %v2669_v9  ;;  %v2673_v56 = vadd.f32 %v2672_v16, %v6537_v46  ;;  %v2929_v14 = vpop.f32.mrf.mxu1 }
 0x28d   :  { %v2674_v30 = vpop.f32.mrf.mxu0 }
 0x28e   :  { %3141 = vst [vmem:[%s7120_s4 + $0x8] sm:$0xff] %v2926_v41  ;;  %v2930_v61 = vadd.f32 %v2929_v14, %v2673_v56  ;;  %v2675_v38 = vadd.f32 %v2674_v30, %v6546_v59  ;;  %v2931_v21 = vpop.f32.mrf.mxu1 }
 0x28f   :  { %v2678_v13 = vpop.f32.mrf.mxu0 }
 0x290   :  { %3110 = vst [vmem:[%s7119_s3 + $0x10] sm:$0xff] %v2930_v61  ;;  %v2932_v49 = vadd.f32 %v2931_v21, %v2675_v38  ;;  %v2679_v57 = vadd.f32 %v2678_v13, %v6555_v48  ;;  %v2935_v45 = vpop.f32.mrf.mxu1 }
 0x291   :  { %v2680_v46 = vpop.f32.mrf.mxu0 }
 0x292   :  { %3142 = vst [vmem:[%s7120_s4 + $0x10] sm:$0xff] %v2932_v49  ;;  %v2936_v58 = vadd.f32 %v2935_v45, %v2679_v57  ;;  %v2681_v51 = vadd.f32 %v2680_v46, %v6564_v18  ;;  %v2937_v10 = vpop.f32.mrf.mxu1 }
 0x293   :  { %v2684_v59 = vpop.f32.mrf.mxu0 }
 0x294   :  { %3111 = vst [vmem:[%s7119_s3 + $0x18] sm:$0xff] %v2936_v58  ;;  %v2938_v1 = vadd.f32 %v2937_v10, %v2681_v51  ;;  %v2685_v27 = vadd.f32 %v2684_v59, %v6573_v2  ;;  %v2941_v24 = vpop.f32.mrf.mxu1 }
 0x295   :  { %v2686_v48 = vpop.f32.mrf.mxu0 }
 0x296   :  { %3143 = vst [vmem:[%s7120_s4 + $0x18] sm:$0xff] %v2938_v1  ;;  %v2942_v9 = vadd.f32 %v2941_v24, %v2685_v27  ;;  %v2687_v37 = vadd.f32 %v2686_v48, %v6582_v11  ;;  %v2943_v16 = vpop.f32.mrf.mxu1 }
 0x297   :  { %v2690_v18 = vpop.f32.mrf.mxu0 }
 0x298   :  { %3112 = vst [vmem:[%s7119_s3 + $0x20] sm:$0xff] %v2942_v9  ;;  %v2944_v41 = vadd.f32 %v2943_v16, %v2687_v37  ;;  %v2691_v56 = vadd.f32 %v2690_v18, %v6591_v28  ;;  %v2947_v14 = vpop.f32.mrf.mxu1 }
 0x299   :  { %v2692_v2 = vpop.f32.mrf.mxu0 }
 0x29a   :  { %3144 = vst [vmem:[%s7120_s4 + $0x20] sm:$0xff] %v2944_v41  ;;  %v2948_v30 = vadd.f32 %v2947_v14, %v2691_v56  ;;  %v2693_v61 = vadd.f32 %v2692_v2, %v6600_v34  ;;  %v2949_v38 = vpop.f32.mrf.mxu1 }
 0x29b   :  { %v2696_v11 = vpop.f32.mrf.mxu0 }
 0x29c   :  { %3113 = vst [vmem:[%s7119_s3 + $0x28] sm:$0xff] %v2948_v30  ;;  %v2950_v21 = vadd.f32 %v2949_v38, %v2693_v61  ;;  %v2697_v13 = vadd.f32 %v2696_v11, %v6609_v6  ;;  %v2953_v49 = vpop.f32.mrf.mxu1 }
 0x29d   :  { %v2698_v28 = vpop.f32.mrf.mxu0 }
 0x29e   :  { %3145 = vst [vmem:[%s7120_s4 + $0x28] sm:$0xff] %v2950_v21  ;;  %v2954_v57 = vadd.f32 %v2953_v49, %v2697_v13  ;;  %v2699_v45 = vadd.f32 %v2698_v28, %v6618_v12  ;;  %v2955_v46 = vpop.f32.mrf.mxu1 }
 0x29f   :  { %v2702_v34 = vpop.f32.mrf.mxu0 }
 0x2a0   :  { %3114 = vst [vmem:[%s7119_s3 + $0x30] sm:$0xff] %v2954_v57  ;;  %v2956_v58 = vadd.f32 %v2955_v46, %v2699_v45  ;;  %v2703_v51 = vadd.f32 %v2702_v34, %v6627_v23  ;;  %v2959_v10 = vpop.f32.mrf.mxu1 }
 0x2a1   :  { %v2704_v6 = vpop.f32.mrf.mxu0 }
 0x2a2   :  { %3146 = vst [vmem:[%s7120_s4 + $0x30] sm:$0xff] %v2956_v58  ;;  %v2960_v59 = vadd.f32 %v2959_v10, %v2703_v51  ;;  %v2705_v1 = vadd.f32 %v2704_v6, %v6636_v31  ;;  %v2961_v27 = vpop.f32.mrf.mxu1 }
 0x2a3   :  { %v2708_v12 = vpop.f32.mrf.mxu0 }
 0x2a4   :  { %3115 = vst [vmem:[%s7119_s3 + $0x38] sm:$0xff] %v2960_v59  ;;  %v2962_v24 = vadd.f32 %v2961_v27, %v2705_v1  ;;  %v2709_v48 = vadd.f32 %v2708_v12, %v6645_v39  ;;  %v2965_v9 = vpop.f32.mrf.mxu1  ;;  %v7191_v27 = vld [vmem:[#allocation13_spill] sm:$0xff] }
 0x2a5   :  { %v2710_v23 = vpop.f32.mrf.mxu0 }
 0x2a6   :  { %3147 = vst [vmem:[%s7120_s4 + $0x38] sm:$0xff] %v2962_v24  ;;  %v2966_v37 = vadd.f32 %v2965_v9, %v2709_v48  ;;  %v2711_v16 = vadd.f32 %v2710_v23, %v6654_v47  ;;  %v2967_v18 = vpop.f32.mrf.mxu1  ;;  %v7192_v9 = vld [vmem:[#allocation14_spill] sm:$0xff] }
 0x2a7   :  { %v2714_v31 = vpop.f32.mrf.mxu0 }
 0x2a8   :  { %3116 = vst [vmem:[%s7119_s3 + $0x40] sm:$0xff] %v2966_v37  ;;  %v2968_v41 = vadd.f32 %v2967_v18, %v2711_v16  ;;  %v2715_v56 = vadd.f32 %v2714_v31, %v6663_v55  ;;  %v2971_v14 = vpop.f32.mrf.mxu1  ;;  %v7193_v18 = vld [vmem:[#allocation15_spill] sm:$0xff] }
 0x2a9   :  { %v2716_v39 = vpop.f32.mrf.mxu0 }
 0x2aa   :  { %3148 = vst [vmem:[%s7120_s4 + $0x40] sm:$0xff] %v2968_v41  ;;  %v2972_v2 = vadd.f32 %v2971_v14, %v2715_v56  ;;  %v2717_v30 = vadd.f32 %v2716_v39, %v6672_v63  ;;  %v2973_v61 = vpop.f32.mrf.mxu1  ;;  %v7194_v39 = vld [vmem:[#allocation18_spill] sm:$0xff] }
 0x2ab   :  { %v2720_v47 = vpop.f32.mrf.mxu0 }
 0x2ac   :  { %3117 = vst [vmem:[%s7119_s3 + $0x48] sm:$0xff] %v2972_v2  ;;  %v2974_v38 = vadd.f32 %v2973_v61, %v2717_v30  ;;  %v2721_v11 = vadd.f32 %v2720_v47, %v6681_v8  ;;  %v2977_v21 = vpop.f32.mrf.mxu1 }
 0x2ad   :  { %v2722_v55 = vpop.f32.mrf.mxu0 }
 0x2ae   :  { %3149 = vst [vmem:[%s7120_s4 + $0x48] sm:$0xff] %v2974_v38  ;;  %v2978_v13 = vadd.f32 %v2977_v21, %v2721_v11  ;;  %v2723_v49 = vadd.f32 %v2722_v55, %v6690_v17  ;;  %v2979_v28 = vpop.f32.mrf.mxu1 }
 0x2af   :  { %v2726_v63 = vpop.f32.mrf.mxu0 }
 0x2b0   :  { %3118 = vst [vmem:[%s7119_s3 + $0x50] sm:$0xff] %v2978_v13  ;;  %v2980_v57 = vadd.f32 %v2979_v28, %v2723_v49  ;;  %v2727_v45 = vadd.f32 %v2726_v63, %v6699_v26  ;;  %v2983_v46 = vpop.f32.mrf.mxu1 }
 0x2b1   :  { %v2728_v8 = vpop.f32.mrf.mxu0 }
 0x2b2   :  { %3150 = vst [vmem:[%s7120_s4 + $0x50] sm:$0xff] %v2980_v57  ;;  %v2984_v34 = vadd.f32 %v2983_v46, %v2727_v45  ;;  %v2729_v58 = vadd.f32 %v2728_v8, %v6708_v35  ;;  %v2985_v51 = vpop.f32.mrf.mxu1 }
 0x2b3   :  { %v2732_v17 = vpop.f32.mrf.mxu0 }
 0x2b4   :  { %3119 = vst [vmem:[%s7119_s3 + $0x58] sm:$0xff] %v2984_v34  ;;  %v2986_v10 = vadd.f32 %v2985_v51, %v2729_v58  ;;  %v2733_v6 = vadd.f32 %v2732_v17, %v6717_v44  ;;  %v2989_v59 = vpop.f32.mrf.mxu1 }
 0x2b5   :  { %v2734_v26 = vpop.f32.mrf.mxu0 }
 0x2b6   :  { %3151 = vst [vmem:[%s7120_s4 + $0x58] sm:$0xff] %v2986_v10  ;;  %v2990_v1 = vadd.f32 %v2989_v59, %v2733_v6  ;;  %v2735_v12 = vadd.f32 %v2734_v26, %v7191_v27  ;;  %v2991_v24 = vpop.f32.mrf.mxu1 }
 0x2b7   :  { %v2738_v35 = vpop.f32.mrf.mxu0 }
 0x2b8   :  { %3120 = vst [vmem:[%s7119_s3 + $0x60] sm:$0xff] %v2990_v1  ;;  %v2992_v48 = vadd.f32 %v2991_v24, %v2735_v12  ;;  %v2739_v23 = vadd.f32 %v2738_v35, %v7192_v9  ;;  %v2995_v37 = vpop.f32.mrf.mxu1 }
 0x2b9   :  { %v2740_v44 = vpop.f32.mrf.mxu0 }
 0x2ba   :  { %3152 = vst [vmem:[%s7120_s4 + $0x60] sm:$0xff] %v2992_v48  ;;  %v2996_v16 = vadd.f32 %v2995_v37, %v2739_v23  ;;  %v2741_v31 = vadd.f32 %v2740_v44, %v7193_v18  ;;  %v2997_v41 = vpop.f32.mrf.mxu1 }
 0x2bb   :  { %v2744_v56 = vpop.f32.mrf.mxu0 }
 0x2bc   :  { %3121 = vst [vmem:[%s7119_s3 + $0x68] sm:$0xff] %v2996_v16  ;;  %v2998_v14 = vadd.f32 %v2997_v41, %v2741_v31  ;;  %v2745_v2 = vadd.f32 %v2744_v56, %v7194_v39  ;;  %v3001_v30 = vpop.f32.mrf.mxu1 }
 0x2bd   :  { %v2746_v61 = vpop.f32.mrf.mxu0 }
 0x2be   :  { %3153 = vst [vmem:[%s7120_s4 + $0x68] sm:$0xff] %v2998_v14  ;;  %v3002_v47 = vadd.f32 %v3001_v30, %v2745_v2  ;;  %v2747_v38 = vadd.f32 %v2746_v61, %v6756_v43  ;;  %v3003_v11 = vpop.f32.mrf.mxu1 }
 0x2bf   :  { %v2750_v21 = vpop.f32.mrf.mxu0 }
 0x2c0   :  { %3122 = vst [vmem:[%s7119_s3 + $0x70] sm:$0xff] %v3002_v47  ;;  %v3004_v55 = vadd.f32 %v3003_v11, %v2747_v38  ;;  %v2751_v13 = vadd.f32 %v2750_v21, %v6759_v62  ;;  %v3007_v49 = vpop.f32.mrf.mxu1 }
 0x2c1   :  { %v2752_v28 = vpop.f32.mrf.mxu0 }
 0x2c2   :  { %3154 = vst [vmem:[%s7120_s4 + $0x70] sm:$0xff] %v3004_v55  ;;  %v3008_v63 = vadd.f32 %v3007_v49, %v2751_v13  ;;  %v2753_v57 = vadd.f32 %v2752_v28, %v6762_v0  ;;  %v3009_v45 = vpop.f32.mrf.mxu1  ;;  %v7195_v55 = vld [vmem:[#allocation16_spill] sm:$0xff] }
 0x2c3   :  { %v2756_v43 = vpop.f32.mrf.mxu0 }
 0x2c4   :  { %3123 = vst [vmem:[%s7119_s3 + $0x78] sm:$0xff] %v3008_v63  ;;  %v3010_v46 = vadd.f32 %v3009_v45, %v2753_v57  ;;  %v2757_v8 = vadd.f32 %v2756_v43, %v6765_v32  ;;  %v3013_v34 = vpop.f32.mrf.mxu1  ;;  %v7196_v63 = vld [vmem:[#allocation19_spill] sm:$0xff] }
 0x2c5   :  { %v2758_v62 = vpop.f32.mrf.mxu0 }
 0x2c6   :  { %3155 = vst [vmem:[%s7120_s4 + $0x78] sm:$0xff] %v3010_v46  ;;  %v3014_v58 = vadd.f32 %v3013_v34, %v2757_v8  ;;  %v2759_v51 = vadd.f32 %v2758_v62, %v6768_v22  ;;  %v3015_v17 = vpop.f32.mrf.mxu1  ;;  %v7197_v46 = vld [vmem:[#allocation20_spill] sm:$0xff] }
 0x2c7   :  { %v2762_v0 = vpop.f32.mrf.mxu0 }
 0x2c8   :  { %3124 = vst [vmem:[%s7119_s3 + $0x80] sm:$0xff] %v3014_v58  ;;  %v3016_v10 = vadd.f32 %v3015_v17, %v2759_v51  ;;  %v2763_v6 = vadd.f32 %v2762_v0, %v6771_v4  ;;  %v3019_v59 = vpop.f32.mrf.mxu1  ;;  %v7198_v51 = vld [vmem:[#allocation17_spill] sm:$0xff] }
 0x2c9   :  { %v2764_v32 = vpop.f32.mrf.mxu0 }
 0x2ca   :  { %3156 = vst [vmem:[%s7120_s4 + $0x80] sm:$0xff] %v3016_v10  ;;  %v3020_v26 = vadd.f32 %v3019_v59, %v2763_v6  ;;  %v2765_v1 = vadd.f32 %v2764_v32, %v6774_v40  ;;  %v3021_v27 = vpop.f32.mrf.mxu1  ;;  %v7199_v59 = vld [vmem:[#allocation2_spill] sm:$0xff] }
 0x2cb   :  { %v2768_v22 = vpop.f32.mrf.mxu0 }
 0x2cc   :  { %3125 = vst [vmem:[%s7119_s3 + $0x88] sm:$0xff] %v3020_v26  ;;  %v3022_v12 = vadd.f32 %v3021_v27, %v2765_v1  ;;  %v2769_v24 = vadd.f32 %v2768_v22, %v6777_v53  ;;  %v3025_v35 = vpop.f32.mrf.mxu1  ;;  %v7200_v22 = vld [vmem:[#allocation3_spill] sm:$0xff] }
 0x2cd   :  { %v2770_v4 = vpop.f32.mrf.mxu0 }
 0x2ce   :  { %3157 = vst [vmem:[%s7120_s4 + $0x88] sm:$0xff] %v3022_v12  ;;  %v3026_v48 = vadd.f32 %v3025_v35, %v2769_v24  ;;  %v2771_v9 = vadd.f32 %v2770_v4, %v6780_v3  ;;  %v3027_v23 = vpop.f32.mrf.mxu1 }
 0x2cf   :  { %v2774_v40 = vpop.f32.mrf.mxu0 }
 0x2d0   :  { %3126 = vst [vmem:[%s7119_s3 + $0x90] sm:$0xff] %v3026_v48  ;;  %v3028_v37 = vadd.f32 %v3027_v23, %v2771_v9  ;;  %v2775_v44 = vadd.f32 %v2774_v40, %v6783_v50  ;;  %v3031_v16 = vpop.f32.mrf.mxu1  ;;  %v7201_v48 = vld [vmem:[#allocation4_spill] sm:$0xff] }
 0x2d1   :  { %v2776_v53 = vpop.f32.mrf.mxu0 }
 0x2d2   :  { %3158 = vst [vmem:[%s7120_s4 + $0x90] sm:$0xff] %v3028_v37  ;;  %v3032_v18 = vadd.f32 %v3031_v16, %v2775_v44  ;;  %v2777_v31 = vadd.f32 %v2776_v53, %v6786_v33  ;;  %v3033_v41 = vpop.f32.mrf.mxu1  ;;  %v7202_v44 = vld [vmem:[#allocation5_spill] sm:$0xff] }
 0x2d3   :  { %v2780_v3 = vpop.f32.mrf.mxu0 }
 0x2d4   :  { %3127 = vst [vmem:[%s7119_s3 + $0x98] sm:$0xff] %v3032_v18  ;;  %v3034_v56 = vadd.f32 %v3033_v41, %v2777_v31  ;;  %v2781_v14 = vadd.f32 %v2780_v3, %v6789_v60  ;;  %v3037_v39 = vpop.f32.mrf.mxu1  ;;  %v7203_v41 = vld [vmem:[#allocation6_spill] sm:$0xff] }
 0x2d5   :  { %v2782_v50 = vpop.f32.mrf.mxu0 }
 0x2d6   :  { %3159 = vst [vmem:[%s7120_s4 + $0x98] sm:$0xff] %v3034_v56  ;;  %v3038_v2 = vadd.f32 %v3037_v39, %v2781_v14  ;;  %v2783_v30 = vadd.f32 %v2782_v50, %v6792_v7  ;;  %v3039_v61 = vpop.f32.mrf.mxu1  ;;  %v7204_v50 = vld [vmem:[#allocation7_spill] sm:$0xff] }
 0x2d7   :  { %v2786_v33 = vpop.f32.mrf.mxu0 }
 0x2d8   :  { %3128 = vst [vmem:[%s7119_s3 + $0xa0] sm:$0xff] %v3038_v2  ;;  %v3040_v47 = vadd.f32 %v3039_v61, %v2783_v30  ;;  %v2787_v38 = vadd.f32 %v2786_v33, %v6795_v29  ;;  %v3043_v11 = vpop.f32.mrf.mxu1 }
 0x2d9   :  { %v2788_v60 = vpop.f32.mrf.mxu0 }
 0x2da   :  { %3160 = vst [vmem:[%s7120_s4 + $0xa0] sm:$0xff] %v3040_v47  ;;  %v3044_v21 = vadd.f32 %v3043_v11, %v2787_v38  ;;  %v2789_v13 = vadd.f32 %v2788_v60, %v7195_v55  ;;  %v3045_v49 = vpop.f32.mrf.mxu1  ;;  %v7205_v47 = vld [vmem:[#allocation8_spill] sm:$0xff] }
 0x2db   :  { %v2792_v7 = vpop.f32.mrf.mxu0 }
 0x2dc   :  { %3129 = vst [vmem:[%s7119_s3 + $0xa8] sm:$0xff] %v3044_v21  ;;  %v3046_v28 = vadd.f32 %v3045_v49, %v2789_v13  ;;  %v2793_v57 = vadd.f32 %v2792_v7, %v7196_v63  ;;  %v3049_v45 = vpop.f32.mrf.mxu1 }
 0x2dd   :  { %v2794_v29 = vpop.f32.mrf.mxu0 }
 0x2de   :  { %3161 = vst [vmem:[%s7120_s4 + $0xa8] sm:$0xff] %v3046_v28  ;;  %v3050_v43 = vadd.f32 %v3049_v45, %v2793_v57  ;;  %v2795_v8 = vadd.f32 %v2794_v29, %v7197_v46  ;;  %v3051_v34 = vpop.f32.mrf.mxu1 }
 0x2df   :  { %v2798_v62 = vpop.f32.mrf.mxu0 }
 0x2e0   :  { %3130 = vst [vmem:[%s7119_s3 + $0xb0] sm:$0xff] %v3050_v43  ;;  %v3052_v58 = vadd.f32 %v3051_v34, %v2795_v8  ;;  %v2799_v17 = vadd.f32 %v2798_v62, %v7198_v51  ;;  %v3055_v0 = vpop.f32.mrf.mxu1 }
 0x2e1   :  { %v2800_v10 = vpop.f32.mrf.mxu0 }
 0x2e2   :  { %3162 = vst [vmem:[%s7120_s4 + $0xb0] sm:$0xff] %v3052_v58  ;;  %v3056_v6 = vadd.f32 %v3055_v0, %v2799_v17  ;;  %v2801_v32 = vadd.f32 %v2800_v10, %v7199_v59  ;;  %v3057_v26 = vpop.f32.mrf.mxu1 }
 0x2e3   :  { %v2804_v1 = vpop.f32.mrf.mxu0 }
 0x2e4   :  { %3131 = vst [vmem:[%s7119_s3 + $0xb8] sm:$0xff] %v3056_v6  ;;  %v3058_v27 = vadd.f32 %v3057_v26, %v2801_v32  ;;  %v2805_v12 = vadd.f32 %v2804_v1, %v7200_v22  ;;  %v3061_v24 = vpop.f32.mrf.mxu1  ;;  %v7206_v1 = vld [vmem:[#allocation9_spill] sm:$0xff] }
 0x2e5   :  { %v2806_v35 = vpop.f32.mrf.mxu0 }
 0x2e6   :  { %3163 = vst [vmem:[%s7120_s4 + $0xb8] sm:$0xff] %v3058_v27  ;;  %v3062_v4 = vadd.f32 %v3061_v24, %v2805_v12  ;;  %v2807_v9 = vadd.f32 %v2806_v35, %v7201_v48  ;;  %v3063_v23 = vpop.f32.mrf.mxu1 }
 0x2e7   :  { %v2810_v40 = vpop.f32.mrf.mxu0 }
 0x2e8   :  { %3132 = vst [vmem:[%s7119_s3 + $0xc0] sm:$0xff] %v3062_v4  ;;  %v3064_v37 = vadd.f32 %v3063_v23, %v2807_v9  ;;  %v2811_v16 = vadd.f32 %v2810_v40, %v7202_v44  ;;  %v3067_v53 = vpop.f32.mrf.mxu1 }
 0x2e9   :  { %v2812_v18 = vpop.f32.mrf.mxu0 }
 0x2ea   :  { %3164 = vst [vmem:[%s7120_s4 + $0xc0] sm:$0xff] %v3064_v37  ;;  %v3068_v31 = vadd.f32 %v3067_v53, %v2811_v16  ;;  %v2813_v3 = vadd.f32 %v2812_v18, %v7203_v41  ;;  %v3069_v56 = vpop.f32.mrf.mxu1 }
 0x2eb   :  { %v2816_v14 = vpop.f32.mrf.mxu0 }
 0x2ec   :  { %3133 = vst [vmem:[%s7119_s3 + $0xc8] sm:$0xff] %v3068_v31  ;;  %v3070_v39 = vadd.f32 %v3069_v56, %v2813_v3  ;;  %v2817_v2 = vadd.f32 %v2816_v14, %v7204_v50  ;;  %v3073_v30 = vpop.f32.mrf.mxu1 }
 0x2ed   :  { %v2818_v61 = vpop.f32.mrf.mxu0 }
 0x2ee   :  { %3165 = vst [vmem:[%s7120_s4 + $0xc8] sm:$0xff] %v3070_v39  ;;  %v3074_v33 = vadd.f32 %v3073_v30, %v2817_v2  ;;  %v2819_v38 = vadd.f32 %v2818_v61, %v7205_v47  ;;  %v3075_v11 = vpop.f32.mrf.mxu1 }
 0x2ef   :  { %v2822_v60 = vpop.f32.mrf.mxu0 }
 0x2f0   :  { %3134 = vst [vmem:[%s7119_s3 + $0xd0] sm:$0xff] %v3074_v33  ;;  %v3076_v21 = vadd.f32 %v3075_v11, %v2819_v38  ;;  %v2823_v55 = vadd.f32 %v2822_v60, %v6831_v20  ;;  %v3079_v13 = vpop.f32.mrf.mxu1 }
 0x2f1   :  { %v2824_v49 = vpop.f32.mrf.mxu0 }
 0x2f2   :  { %3166 = vst [vmem:[%s7120_s4 + $0xd0] sm:$0xff] %v3076_v21  ;;  %v3080_v7 = vadd.f32 %v3079_v13, %v2823_v55  ;;  %v2825_v28 = vadd.f32 %v2824_v49, %v6834_v19  ;;  %v3081_v63 = vpop.f32.mrf.mxu1 }
 0x2f3   :  { %v2828_v57 = vpop.f32.mrf.mxu0 }
 0x2f4   :  { %3135 = vst [vmem:[%s7119_s3 + $0xd8] sm:$0xff] %v3080_v7  ;;  %v3082_v45 = vadd.f32 %v3081_v63, %v2825_v28  ;;  %v2829_v29 = vadd.f32 %v2828_v57, %v6837_v52  ;;  %v3085_v43 = vpop.f32.mrf.mxu1 }
 0x2f5   :  { %v2830_v20 = vpop.f32.mrf.mxu0 }
 0x2f6   :  { %3167 = vst [vmem:[%s7120_s4 + $0xd8] sm:$0xff] %v3082_v45  ;;  %v3086_v46 = vadd.f32 %v3085_v43, %v2829_v29  ;;  %v2831_v8 = vadd.f32 %v2830_v20, %v6840_v5  ;;  %v3087_v34 = vpop.f32.mrf.mxu1 }
 0x2f7   :  { %v2834_v19 = vpop.f32.mrf.mxu0 }
 0x2f8   :  { %3136 = vst [vmem:[%s7119_s3 + $0xe0] sm:$0xff] %v3086_v46  ;;  %v3088_v62 = vadd.f32 %v3087_v34, %v2831_v8  ;;  %v2835_v58 = vadd.f32 %v2834_v19, %v6843_v25  ;;  %v3091_v51 = vpop.f32.mrf.mxu1 }
 0x2f9   :  { %v2836_v52 = vpop.f32.mrf.mxu0 }
 0x2fa   :  { %3168 = vst [vmem:[%s7120_s4 + $0xe0] sm:$0xff] %v3088_v62  ;;  %v3092_v17 = vadd.f32 %v3091_v51, %v2835_v58  ;;  %v2837_v0 = vadd.f32 %v2836_v52, %v6846_v42  ;;  %v3093_v10 = vpop.f32.mrf.mxu1 }
 0x2fb   :  { %v2840_v5 = vpop.f32.mrf.mxu0 }
 0x2fc   :  { %3137 = vst [vmem:[%s7119_s3 + $0xe8] sm:$0xff] %v3092_v17  ;;  %v3094_v6 = vadd.f32 %v3093_v10, %v2837_v0  ;;  %v2841_v59 = vadd.f32 %v2840_v5, %v6849_v54  ;;  %v3097_v32 = vpop.f32.mrf.mxu1 }
 0x2fd   :  { %v2842_v25 = vpop.f32.mrf.mxu0 }
 0x2fe   :  { %3169 = vst [vmem:[%s7120_s4 + $0xe8] sm:$0xff] %v3094_v6  ;;  %v3098_v26 = vadd.f32 %v3097_v32, %v2841_v59  ;;  %v2843_v27 = vadd.f32 %v2842_v25, %v7206_v1  ;;  %v3099_v22 = vpop.f32.mrf.mxu1 }
 0x2ff   :  { %v2846_v42 = vpop.f32.mrf.mxu0 }
 0x300   :  { %3138 = vst [vmem:[%s7119_s3 + $0xf0] sm:$0xff] %v3098_v26  ;;  %v3100_v12 = vadd.f32 %v3099_v22, %v2843_v27  ;;  %v2847_v24 = vadd.f32 %v2846_v42, %v6855_v15  ;;  %v3103_v35 = vpop.f32.mrf.mxu1 }
 0x301   :  { %v2848_v54 = vpop.f32.mrf.mxu0 }
 0x302   :  { %3170 = vst [vmem:[%s7120_s4 + $0xf0] sm:$0xff] %v3100_v12  ;;  %v3104_v4 = vadd.f32 %v3103_v35, %v2847_v24  ;;  %v2849_v48 = vadd.f32 %v2848_v54, %v6858_v36  ;;  %v3105_v9 = vpop.f32.mrf.mxu1 }
 0x304   :  { %3139 = vst [vmem:[%s7119_s3 + $0xf8] sm:$0xff] %v3104_v4  ;;  %v3106_v23 = vadd.f32 %v3105_v9, %v2849_v48 }
 0x306   :  { %3171 = vst [vmem:[%s7120_s4 + $0xf8] sm:$0xff] %v3106_v23 }

</bundles_post_ra>
